<compile_context>
chip_gen: v6e
topology: v6e:2x2x1
jax: 0.10.0
libtpu: 0.0.40
codegen_flags: <defaults>
</compile_context>

<pallas_src>
import numpy as np
import jax
import jax.numpy as jnp
from jax import lax
from jax.experimental import pallas as pl
from jax.experimental.pallas import tpu as pltpu

N_ACTIONS = 9  # gym MsPacmanNoFrameskip-v4 action_space.n (hard-coded; no gym here)


def conv2d_size_out(size, kernel_size, stride):
    return (size - (kernel_size - 1) - 1) // stride + 1


# ----------------------------- fused Pallas kernel ------------------------- #
def _dqn_fused_kernel(col1_ref, w1_ref, b1_ref,
                      g2_ref, w2_ref, b2_ref,
                      g3_ref, w3_ref, b3_ref,
                      s_ref, fc1w_ref, fc1b_ref,
                      outw_ref, outb_ref,
                      q_ref):
    f32 = jnp.float32

    # conv1: a single MXU matmul over the pre-built im2col matrix.
    h = jnp.dot(col1_ref[...], w1_ref[...], preferred_element_type=f32)
    h = jnp.maximum(h + b1_ref[...], 0.0)                      # (B*OH1*OW1, 32)

    # conv2: in-VMEM im2col via one-hot row gathers; one small matmul pair per
    # kernel tap, accumulated in registers (intermediates never touch HBM).
    acc = None
    for t in range(g2_ref.shape[0]):                           # 4*4 taps, unrolled
        rows = jnp.dot(g2_ref[t], h, preferred_element_type=f32)      # (B*OH2*OW2, 32)
        term = jnp.dot(rows, w2_ref[t], preferred_element_type=f32)   # (B*OH2*OW2, 64)
        acc = term if acc is None else acc + term
    h = jnp.maximum(acc + b2_ref[...], 0.0)

    # conv3: same per-tap scheme.
    acc = None
    for t in range(g3_ref.shape[0]):                           # 3*3 taps, unrolled
        rows = jnp.dot(g3_ref[t], h, preferred_element_type=f32)      # (B*OH3*OW3, 64)
        term = jnp.dot(rows, w3_ref[t], preferred_element_type=f32)   # (B*OH3*OW3, 64)
        acc = term if acc is None else acc + term
    h = jnp.maximum(acc + b3_ref[...], 0.0)                    # (B*OH3*OW3, 64)

    # flatten (torch x.view(B,-1), NCHW order) folded into fc1 weight blocks:
    # fc1(x) = sum_p (S[p] @ h) @ W_fc1[p]
    acc = None
    for p in range(fc1w_ref.shape[0]):                         # OH3*OW3 positions
        xb = jnp.dot(s_ref[p], h, preferred_element_type=f32)         # (B, 64)
        term = jnp.dot(xb, fc1w_ref[p], preferred_element_type=f32)   # (B, 512)
        acc = term if acc is None else acc + term
    h = jnp.maximum(acc + fc1b_ref[...], 0.0)                  # (B, 512)

    # output head, zero-padded to 128 lanes for a dense (unmasked) store.
    q = jnp.dot(h, outw_ref[...], preferred_element_type=f32) + outb_ref[...]
    q_ref[...] = q.astype(q_ref.dtype)


def _dqn_pallas(col1, prep):
    operands = (col1,
                prep["w1m"], prep["b1"],
                prep["g2"], prep["w2m"], prep["b2"],
                prep["g3"], prep["w3m"], prep["b3"],
                prep["S"], prep["fc1_wb"], prep["fc1_b"],
                prep["out_w"], prep["out_b"])
    batch = prep["S"].shape[1]
    n_pad = prep["out_w"].shape[1]

    def full_spec(a):
        nd = a.ndim
        return pl.BlockSpec(a.shape, lambda i, _nd=nd: (0,) * _nd)

    # Single full-VMEM block: weights + gather matrices + activations total
    # ~2 MiB, far under every generation's VMEM budget, so one invocation with
    # no inter-layer HBM round trips is optimal here.  For large replay
    # batches, tile the leading M = B*OH*OW rows of col1 / the gather matrices
    # with a grid axis marked 'parallel' (shards across v7x's two TCs).
    return pl.pallas_call(
        _dqn_fused_kernel,
        out_shape=jax.ShapeDtypeStruct((batch, n_pad), jnp.float32),
        grid=(1,),
        in_specs=[full_spec(a) for a in operands],
        out_specs=pl.BlockSpec((batch, n_pad), lambda i: (0, 0)),
        compiler_params=pltpu.CompilerParams(
            dimension_semantics=("arbitrary",)),
    )(*operands)


# ------------------------------ wrapper glue ------------------------------- #
def _im2col(x, kh, kw, stride):
    """x: (B, C, H, W) -> ((B*OH*OW, C*kh*kw), OH, OW); K order (C, kh, kw)."""
    B, C, H, W = x.shape
    oh = conv2d_size_out(H, kh, stride)
    ow = conv2d_size_out(W, kw, stride)
    cols = []
    for i in range(kh):
        for j in range(kw):
            cols.append(x[:, :, i:i + stride * oh:stride, j:j + stride * ow:stride])
    col = jnp.stack(cols, axis=0).reshape(kh, kw, B, C, oh, ow)
    col = col.transpose(2, 4, 5, 3, 0, 1)                  # (B, oh, ow, C, kh, kw)
    return col.reshape(B * oh * ow, C * kh * kw), oh, ow


def _tap_gather(batch, ih, iw, kh, kw, stride):
    """One-hot row-gather matrices: G[t] @ rows(X) picks input row
    (b, oy*stride + i, ox*stride + j) for every output position (b, oy, ox),
    with t = i*kw + j and rows laid out (b, y, x)-major."""
    oh = conv2d_size_out(ih, kh, stride)
    ow = conv2d_size_out(iw, kw, stride)
    g = np.zeros((kh * kw, batch * oh * ow, batch * ih * iw), np.float32)
    for i in range(kh):
        for j in range(kw):
            t = i * kw + j
            for b in range(batch):
                for oy in range(oh):
                    for ox in range(ow):
                        m = (b * oh + oy) * ow + ox
                        r = (b * ih + oy * stride + i) * iw + (ox * stride + j)
                        g[t, m, r] = 1.0
    return g


def prepare_params(params, batch, h, w):
    """One-time conversion of torch-layout params into kernel-ready operands."""
    h1s, w1s = conv2d_size_out(h, 8, 4), conv2d_size_out(w, 8, 4)
    h2s, w2s = conv2d_size_out(h1s, 4, 2), conv2d_size_out(w1s, 4, 2)
    h3s, w3s = conv2d_size_out(h2s, 3, 1), conv2d_size_out(w2s, 3, 1)

    # conv1 as one (K, OC) matrix; K order (C, kh, kw) matches _im2col.
    oc1 = params["conv1_w"].shape[0]
    w1m = params["conv1_w"].reshape(oc1, -1).T             # (C*8*8, 32)
    b1 = params["conv1_b"].reshape(1, -1)

    # conv2 / conv3 as per-tap (C, OC) matrices; tap index t = i*kw + j.
    def tapify(wc):                                        # (OC,C,kh,kw)->(kh*kw,C,OC)
        oc, c, kh, kw = wc.shape
        return wc.transpose(2, 3, 1, 0).reshape(kh * kw, c, oc)

    w2m, b2 = tapify(params["conv2_w"]), params["conv2_b"].reshape(1, -1)
    w3m, b3 = tapify(params["conv3_w"]), params["conv3_b"].reshape(1, -1)

    g2 = jnp.asarray(_tap_gather(batch, h1s, w1s, 4, 4, 2))
    g3 = jnp.asarray(_tap_gather(batch, h2s, w2s, 3, 3, 1))

    # fc1: torch flattens NCHW, i.e. feature index = c*(OH3*OW3) + p.  Split
    # fc1_w into one (C3, 512) block per spatial position p, and build S[p]
    # that pulls conv3-output row (b, p) for every batch element.
    P = h3s * w3s
    c3 = params["conv3_w"].shape[0]
    fc1_wb = params["fc1_w"].reshape(c3, P, -1).transpose(1, 0, 2)   # (P, C3, 512)
    fc1_b = params["fc1_b"].reshape(1, -1)
    s = np.zeros((P, batch, batch * P), np.float32)
    for p in range(P):
        for b in range(batch):
            s[p, b, b * P + p] = 1.0

    # output head zero-padded to 128 lanes (bit-exact; sliced off afterwards).
    n_in, n_act = params["out_w"].shape
    n_pad = max(128, -(-n_act // 128) * 128)
    out_w = jnp.zeros((n_in, n_pad), jnp.float32).at[:, :n_act].set(params["out_w"])
    out_b = jnp.zeros((1, n_pad), jnp.float32).at[:, :n_act].set(params["out_b"])

    return {"w1m": w1m, "b1": b1,
            "g2": g2, "w2m": w2m, "b2": b2,
            "g3": g3, "w3m": w3m, "b3": b3,
            "S": jnp.asarray(s), "fc1_wb": fc1_wb, "fc1_b": fc1_b,
            "out_w": out_w, "out_b": out_b}


def deep_q_net_forward(prep, x):
    """x: (B, 4, H, W) NCHW (PyTorch layout). Returns (B, N_ACTIONS) float32."""
    x = x.astype(jnp.float32)
    col1, _, _ = _im2col(x, 8, 8, 4)   # only per-forward glue: conv1 input patches
    q_pad = _dqn_pallas(col1, prep)    # entire network runs in one Pallas kernel
    return q_pad[:, :N_ACTIONS]


# ------------------------------ params / reference ------------------------- #
def init_params(h, w, key):
    ks = jax.random.split(key, 10)
    s = 0.05

    def nrm(k, shape):
        return jax.random.normal(k, shape, dtype=jnp.float32) * s

    convw = conv2d_size_out(conv2d_size_out(conv2d_size_out(w, 8, 4), 4, 2), 3, 1)
    convh = conv2d_size_out(conv2d_size_out(conv2d_size_out(h, 8, 4), 4, 2), 3, 1)
    linear_input = convh * convw * 64
    return {
        "conv1_w": nrm(ks[0], (32, 4, 8, 8)),  "conv1_b": nrm(ks[1], (32,)),
        "conv2_w": nrm(ks[2], (64, 32, 4, 4)), "conv2_b": nrm(ks[3], (64,)),
        "conv3_w": nrm(ks[4], (64, 64, 3, 3)), "conv3_b": nrm(ks[5], (64,)),
        "fc1_w":   nrm(ks[6], (linear_input, 512)), "fc1_b": nrm(ks[7], (512,)),
        "out_w":   nrm(ks[8], (512, N_ACTIONS)),    "out_b": nrm(ks[9], (N_ACTIONS,)),
    }


def _reference_forward(params, x):
    """Pure-JAX (XLA) reference with identical torch semantics, for checking."""
    dn = ("NCHW", "OIHW", "NCHW")
    hp = lax.Precision.HIGHEST
    y = x.astype(jnp.float32)
    y = jax.nn.relu(lax.conv_general_dilated(y, params["conv1_w"], (4, 4), "VALID",
                                             dimension_numbers=dn, precision=hp)
                    + params["conv1_b"][None, :, None, None])
    y = jax.nn.relu(lax.conv_general_dilated(y, params["conv2_w"], (2, 2), "VALID",
                                             dimension_numbers=dn, precision=hp)
                    + params["conv2_b"][None, :, None, None])
    y = jax.nn.relu(lax.conv_general_dilated(y, params["conv3_w"], (1, 1), "VALID",
                                             dimension_numbers=dn, precision=hp)
                    + params["conv3_b"][None, :, None, None])
    f = y.reshape(y.shape[0], -1)
    h = jax.nn.relu(jnp.dot(f, params["fc1_w"], precision=hp) + params["fc1_b"])
    return jnp.dot(h, params["out_w"], precision=hp) + params["out_b"]


# ------------------------------------ main --------------------------------- #
if __name__ == "__main__":
    # Smallest valid spatial size for the conv stack: H = W = 36
    # (conv outputs 8 -> 3 -> 1, so linear_input = 64).
    B, H, W = 2, 36, 36
    key = jax.random.PRNGKey(0)
    k_params, k_x = jax.random.split(key)

    params = init_params(H, W, k_params)
    x = jax.random.normal(k_x, (B, 4, H, W), dtype=jnp.float32)

    prep = prepare_params(params, B, H, W)                 # one-time weight prep
    fwd = jax.jit(deep_q_net_forward)
    q = jax.block_until_ready(fwd(prep, x))
    assert q.shape == (B, N_ACTIONS)

    q_ref = jax.block_until_ready(jax.jit(_reference_forward)(params, x))
    assert np.allclose(np.asarray(q), np.asarray(q_ref), rtol=3e-2, atol=3e-3), (
        float(np.abs(np.asarray(q) - np.asarray(q_ref)).max()))
    print("KERNEL_OK")
</pallas_src>

<mosaic_0001>
module attributes {stable_mosaic.version = 11 : i64} {
  func.func @_dqn_fused_kernel(%arg0: i32, %arg1: memref<128x256xf32, #tpu.memory_space<vmem>>, %arg2: memref<256x32xf32, #tpu.memory_space<vmem>>, %arg3: memref<1x32xf32, #tpu.memory_space<vmem>>, %arg4: memref<16x18x128xf32, #tpu.memory_space<vmem>>, %arg5: memref<16x32x64xf32, #tpu.memory_space<vmem>>, %arg6: memref<1x64xf32, #tpu.memory_space<vmem>>, %arg7: memref<9x2x18xf32, #tpu.memory_space<vmem>>, %arg8: memref<9x64x64xf32, #tpu.memory_space<vmem>>, %arg9: memref<1x64xf32, #tpu.memory_space<vmem>>, %arg10: memref<1x2x2xf32, #tpu.memory_space<vmem>>, %arg11: memref<1x64x512xf32, #tpu.memory_space<vmem>>, %arg12: memref<1x512xf32, #tpu.memory_space<vmem>>, %arg13: memref<512x128xf32, #tpu.memory_space<vmem>>, %arg14: memref<1x128xf32, #tpu.memory_space<vmem>>, %arg15: memref<2x128xf32, #tpu.memory_space<vmem>>) attributes {dimension_semantics = [#tpu.dimension_semantics<arbitrary>], iteration_bounds = array<i64: 1>, scalar_prefetch = 0 : i64, scratch_operands = 0 : i64, tpu.core_type = #tpu.core_type<tc>, window_params = [{pipeline_mode = #tpu.pipeline_mode<synchronous>, transform_indices = @transform_0, window_bounds = array<i64: 128, 256>}, {pipeline_mode = #tpu.pipeline_mode<synchronous>, transform_indices = @transform_1, window_bounds = array<i64: 256, 32>}, {pipeline_mode = #tpu.pipeline_mode<synchronous>, transform_indices = @transform_2, window_bounds = array<i64: 1, 32>}, {pipeline_mode = #tpu.pipeline_mode<synchronous>, transform_indices = @transform_3, window_bounds = array<i64: 16, 18, 128>}, {pipeline_mode = #tpu.pipeline_mode<synchronous>, transform_indices = @transform_4, window_bounds = array<i64: 16, 32, 64>}, {pipeline_mode = #tpu.pipeline_mode<synchronous>, transform_indices = @transform_5, window_bounds = array<i64: 1, 64>}, {pipeline_mode = #tpu.pipeline_mode<synchronous>, transform_indices = @transform_6, window_bounds = array<i64: 9, 2, 18>}, {pipeline_mode = #tpu.pipeline_mode<synchronous>, transform_indices = @transform_7, window_bounds = array<i64: 9, 64, 64>}, {pipeline_mode = #tpu.pipeline_mode<synchronous>, transform_indices = @transform_8, window_bounds = array<i64: 1, 64>}, {pipeline_mode = #tpu.pipeline_mode<synchronous>, transform_indices = @transform_9, window_bounds = array<i64: 1, 2, 2>}, {pipeline_mode = #tpu.pipeline_mode<synchronous>, transform_indices = @transform_10, window_bounds = array<i64: 1, 64, 512>}, {pipeline_mode = #tpu.pipeline_mode<synchronous>, transform_indices = @transform_11, window_bounds = array<i64: 1, 512>}, {pipeline_mode = #tpu.pipeline_mode<synchronous>, transform_indices = @transform_12, window_bounds = array<i64: 512, 128>}, {pipeline_mode = #tpu.pipeline_mode<synchronous>, transform_indices = @transform_13, window_bounds = array<i64: 1, 128>}, {pipeline_mode = #tpu.pipeline_mode<synchronous>, transform_indices = @transform_14, window_bounds = array<i64: 2, 128>}]} {
    %c0 = arith.constant 0 : index
    %c0_0 = arith.constant 0 : index
    %0 = vector.load %arg1[%c0, %c0_0] : memref<128x256xf32, #tpu.memory_space<vmem>>, vector<128x256xf32>
    %c0_1 = arith.constant 0 : index
    %c0_2 = arith.constant 0 : index
    %1 = vector.load %arg2[%c0_1, %c0_2] : memref<256x32xf32, #tpu.memory_space<vmem>>, vector<256x32xf32>
    %cst = arith.constant dense<0.000000e+00> : vector<128x32xf32>
    %2 = tpu.matmul %0, %1, %cst {dimension_numbers = #tpu.dot_dimension_numbers<[1], [0], [0], [1], [0, 0, 1, 1], [], []>} : vector<128x256xf32>, vector<256x32xf32>, vector<128x32xf32> -> vector<128x32xf32>
    %c0_3 = arith.constant 0 : index
    %c0_4 = arith.constant 0 : index
    %3 = vector.load %arg3[%c0_3, %c0_4] : memref<1x32xf32, #tpu.memory_space<vmem>>, vector<1x32xf32>
    %4 = vector.broadcast %3 : vector<1x32xf32> to vector<128x32xf32>
    %5 = arith.addf %2, %4 : vector<128x32xf32>
    %cst_5 = arith.constant 0.000000e+00 : f32
    %6 = vector.broadcast %cst_5 : f32 to vector<128x32xf32>
    %7 = arith.maximumf %5, %6 : vector<128x32xf32>
    %c0_6 = arith.constant 0 : index
    %c0_7 = arith.constant 0 : index
    %c0_8 = arith.constant 0 : index
    %8 = vector.load %arg4[%c0_6, %c0_7, %c0_8] : memref<16x18x128xf32, #tpu.memory_space<vmem>>, vector<1x18x128xf32>
    %9 = vector.shape_cast %8 : vector<1x18x128xf32> to vector<18x128xf32>
    %cst_9 = arith.constant dense<0.000000e+00> : vector<18x32xf32>
    %10 = tpu.matmul %9, %7, %cst_9 {dimension_numbers = #tpu.dot_dimension_numbers<[1], [0], [0], [1], [0, 0, 1, 1], [], []>} : vector<18x128xf32>, vector<128x32xf32>, vector<18x32xf32> -> vector<18x32xf32>
    %c0_10 = arith.constant 0 : index
    %c0_11 = arith.constant 0 : index
    %c0_12 = arith.constant 0 : index
    %11 = vector.load %arg5[%c0_10, %c0_11, %c0_12] : memref<16x32x64xf32, #tpu.memory_space<vmem>>, vector<1x32x64xf32>
    %12 = vector.shape_cast %11 : vector<1x32x64xf32> to vector<32x64xf32>
    %cst_13 = arith.constant dense<0.000000e+00> : vector<18x64xf32>
    %13 = tpu.matmul %10, %12, %cst_13 {dimension_numbers = #tpu.dot_dimension_numbers<[1], [0], [0], [1], [0, 0, 1, 1], [], []>} : vector<18x32xf32>, vector<32x64xf32>, vector<18x64xf32> -> vector<18x64xf32>
    %c1 = arith.constant 1 : index
    %c0_14 = arith.constant 0 : index
    %c0_15 = arith.constant 0 : index
    %14 = vector.load %arg4[%c1, %c0_14, %c0_15] : memref<16x18x128xf32, #tpu.memory_space<vmem>>, vector<1x18x128xf32>
    %15 = vector.shape_cast %14 : vector<1x18x128xf32> to vector<18x128xf32>
    %cst_16 = arith.constant dense<0.000000e+00> : vector<18x32xf32>
    %16 = tpu.matmul %15, %7, %cst_16 {dimension_numbers = #tpu.dot_dimension_numbers<[1], [0], [0], [1], [0, 0, 1, 1], [], []>} : vector<18x128xf32>, vector<128x32xf32>, vector<18x32xf32> -> vector<18x32xf32>
    %c1_17 = arith.constant 1 : index
    %c0_18 = arith.constant 0 : index
    %c0_19 = arith.constant 0 : index
    %17 = vector.load %arg5[%c1_17, %c0_18, %c0_19] : memref<16x32x64xf32, #tpu.memory_space<vmem>>, vector<1x32x64xf32>
    %18 = vector.shape_cast %17 : vector<1x32x64xf32> to vector<32x64xf32>
    %cst_20 = arith.constant dense<0.000000e+00> : vector<18x64xf32>
    %19 = tpu.matmul %16, %18, %cst_20 {dimension_numbers = #tpu.dot_dimension_numbers<[1], [0], [0], [1], [0, 0, 1, 1], [], []>} : vector<18x32xf32>, vector<32x64xf32>, vector<18x64xf32> -> vector<18x64xf32>
    %20 = arith.addf %13, %19 : vector<18x64xf32>
    %c2 = arith.constant 2 : index
    %c0_21 = arith.constant 0 : index
    %c0_22 = arith.constant 0 : index
    %21 = vector.load %arg4[%c2, %c0_21, %c0_22] : memref<16x18x128xf32, #tpu.memory_space<vmem>>, vector<1x18x128xf32>
    %22 = vector.shape_cast %21 : vector<1x18x128xf32> to vector<18x128xf32>
    %cst_23 = arith.constant dense<0.000000e+00> : vector<18x32xf32>
    %23 = tpu.matmul %22, %7, %cst_23 {dimension_numbers = #tpu.dot_dimension_numbers<[1], [0], [0], [1], [0, 0, 1, 1], [], []>} : vector<18x128xf32>, vector<128x32xf32>, vector<18x32xf32> -> vector<18x32xf32>
    %c2_24 = arith.constant 2 : index
    %c0_25 = arith.constant 0 : index
    %c0_26 = arith.constant 0 : index
    %24 = vector.load %arg5[%c2_24, %c0_25, %c0_26] : memref<16x32x64xf32, #tpu.memory_space<vmem>>, vector<1x32x64xf32>
    %25 = vector.shape_cast %24 : vector<1x32x64xf32> to vector<32x64xf32>
    %cst_27 = arith.constant dense<0.000000e+00> : vector<18x64xf32>
    %26 = tpu.matmul %23, %25, %cst_27 {dimension_numbers = #tpu.dot_dimension_numbers<[1], [0], [0], [1], [0, 0, 1, 1], [], []>} : vector<18x32xf32>, vector<32x64xf32>, vector<18x64xf32> -> vector<18x64xf32>
    %27 = arith.addf %20, %26 : vector<18x64xf32>
    %c3 = arith.constant 3 : index
    %c0_28 = arith.constant 0 : index
    %c0_29 = arith.constant 0 : index
    %28 = vector.load %arg4[%c3, %c0_28, %c0_29] : memref<16x18x128xf32, #tpu.memory_space<vmem>>, vector<1x18x128xf32>
    %29 = vector.shape_cast %28 : vector<1x18x128xf32> to vector<18x128xf32>
    %cst_30 = arith.constant dense<0.000000e+00> : vector<18x32xf32>
    %30 = tpu.matmul %29, %7, %cst_30 {dimension_numbers = #tpu.dot_dimension_numbers<[1], [0], [0], [1], [0, 0, 1, 1], [], []>} : vector<18x128xf32>, vector<128x32xf32>, vector<18x32xf32> -> vector<18x32xf32>
    %c3_31 = arith.constant 3 : index
    %c0_32 = arith.constant 0 : index
    %c0_33 = arith.constant 0 : index
    %31 = vector.load %arg5[%c3_31, %c0_32, %c0_33] : memref<16x32x64xf32, #tpu.memory_space<vmem>>, vector<1x32x64xf32>
    %32 = vector.shape_cast %31 : vector<1x32x64xf32> to vector<32x64xf32>
    %cst_34 = arith.constant dense<0.000000e+00> : vector<18x64xf32>
    %33 = tpu.matmul %30, %32, %cst_34 {dimension_numbers = #tpu.dot_dimension_numbers<[1], [0], [0], [1], [0, 0, 1, 1], [], []>} : vector<18x32xf32>, vector<32x64xf32>, vector<18x64xf32> -> vector<18x64xf32>
    %34 = arith.addf %27, %33 : vector<18x64xf32>
    %c4 = arith.constant 4 : index
    %c0_35 = arith.constant 0 : index
    %c0_36 = arith.constant 0 : index
    %35 = vector.load %arg4[%c4, %c0_35, %c0_36] : memref<16x18x128xf32, #tpu.memory_space<vmem>>, vector<1x18x128xf32>
    %36 = vector.shape_cast %35 : vector<1x18x128xf32> to vector<18x128xf32>
    %cst_37 = arith.constant dense<0.000000e+00> : vector<18x32xf32>
    %37 = tpu.matmul %36, %7, %cst_37 {dimension_numbers = #tpu.dot_dimension_numbers<[1], [0], [0], [1], [0, 0, 1, 1], [], []>} : vector<18x128xf32>, vector<128x32xf32>, vector<18x32xf32> -> vector<18x32xf32>
    %c4_38 = arith.constant 4 : index
    %c0_39 = arith.constant 0 : index
    %c0_40 = arith.constant 0 : index
    %38 = vector.load %arg5[%c4_38, %c0_39, %c0_40] : memref<16x32x64xf32, #tpu.memory_space<vmem>>, vector<1x32x64xf32>
    %39 = vector.shape_cast %38 : vector<1x32x64xf32> to vector<32x64xf32>
    %cst_41 = arith.constant dense<0.000000e+00> : vector<18x64xf32>
    %40 = tpu.matmul %37, %39, %cst_41 {dimension_numbers = #tpu.dot_dimension_numbers<[1], [0], [0], [1], [0, 0, 1, 1], [], []>} : vector<18x32xf32>, vector<32x64xf32>, vector<18x64xf32> -> vector<18x64xf32>
    %41 = arith.addf %34, %40 : vector<18x64xf32>
    %c5 = arith.constant 5 : index
    %c0_42 = arith.constant 0 : index
    %c0_43 = arith.constant 0 : index
    %42 = vector.load %arg4[%c5, %c0_42, %c0_43] : memref<16x18x128xf32, #tpu.memory_space<vmem>>, vector<1x18x128xf32>
    %43 = vector.shape_cast %42 : vector<1x18x128xf32> to vector<18x128xf32>
    %cst_44 = arith.constant dense<0.000000e+00> : vector<18x32xf32>
    %44 = tpu.matmul %43, %7, %cst_44 {dimension_numbers = #tpu.dot_dimension_numbers<[1], [0], [0], [1], [0, 0, 1, 1], [], []>} : vector<18x128xf32>, vector<128x32xf32>, vector<18x32xf32> -> vector<18x32xf32>
    %c5_45 = arith.constant 5 : index
    %c0_46 = arith.constant 0 : index
    %c0_47 = arith.constant 0 : index
    %45 = vector.load %arg5[%c5_45, %c0_46, %c0_47] : memref<16x32x64xf32, #tpu.memory_space<vmem>>, vector<1x32x64xf32>
    %46 = vector.shape_cast %45 : vector<1x32x64xf32> to vector<32x64xf32>
    %cst_48 = arith.constant dense<0.000000e+00> : vector<18x64xf32>
    %47 = tpu.matmul %44, %46, %cst_48 {dimension_numbers = #tpu.dot_dimension_numbers<[1], [0], [0], [1], [0, 0, 1, 1], [], []>} : vector<18x32xf32>, vector<32x64xf32>, vector<18x64xf32> -> vector<18x64xf32>
    %48 = arith.addf %41, %47 : vector<18x64xf32>
    %c6 = arith.constant 6 : index
    %c0_49 = arith.constant 0 : index
    %c0_50 = arith.constant 0 : index
    %49 = vector.load %arg4[%c6, %c0_49, %c0_50] : memref<16x18x128xf32, #tpu.memory_space<vmem>>, vector<1x18x128xf32>
    %50 = vector.shape_cast %49 : vector<1x18x128xf32> to vector<18x128xf32>
    %cst_51 = arith.constant dense<0.000000e+00> : vector<18x32xf32>
    %51 = tpu.matmul %50, %7, %cst_51 {dimension_numbers = #tpu.dot_dimension_numbers<[1], [0], [0], [1], [0, 0, 1, 1], [], []>} : vector<18x128xf32>, vector<128x32xf32>, vector<18x32xf32> -> vector<18x32xf32>
    %c6_52 = arith.constant 6 : index
    %c0_53 = arith.constant 0 : index
    %c0_54 = arith.constant 0 : index
    %52 = vector.load %arg5[%c6_52, %c0_53, %c0_54] : memref<16x32x64xf32, #tpu.memory_space<vmem>>, vector<1x32x64xf32>
    %53 = vector.shape_cast %52 : vector<1x32x64xf32> to vector<32x64xf32>
    %cst_55 = arith.constant dense<0.000000e+00> : vector<18x64xf32>
    %54 = tpu.matmul %51, %53, %cst_55 {dimension_numbers = #tpu.dot_dimension_numbers<[1], [0], [0], [1], [0, 0, 1, 1], [], []>} : vector<18x32xf32>, vector<32x64xf32>, vector<18x64xf32> -> vector<18x64xf32>
    %55 = arith.addf %48, %54 : vector<18x64xf32>
    %c7 = arith.constant 7 : index
    %c0_56 = arith.constant 0 : index
    %c0_57 = arith.constant 0 : index
    %56 = vector.load %arg4[%c7, %c0_56, %c0_57] : memref<16x18x128xf32, #tpu.memory_space<vmem>>, vector<1x18x128xf32>
    %57 = vector.shape_cast %56 : vector<1x18x128xf32> to vector<18x128xf32>
    %cst_58 = arith.constant dense<0.000000e+00> : vector<18x32xf32>
    %58 = tpu.matmul %57, %7, %cst_58 {dimension_numbers = #tpu.dot_dimension_numbers<[1], [0], [0], [1], [0, 0, 1, 1], [], []>} : vector<18x128xf32>, vector<128x32xf32>, vector<18x32xf32> -> vector<18x32xf32>
    %c7_59 = arith.constant 7 : index
    %c0_60 = arith.constant 0 : index
    %c0_61 = arith.constant 0 : index
    %59 = vector.load %arg5[%c7_59, %c0_60, %c0_61] : memref<16x32x64xf32, #tpu.memory_space<vmem>>, vector<1x32x64xf32>
    %60 = vector.shape_cast %59 : vector<1x32x64xf32> to vector<32x64xf32>
    %cst_62 = arith.constant dense<0.000000e+00> : vector<18x64xf32>
    %61 = tpu.matmul %58, %60, %cst_62 {dimension_numbers = #tpu.dot_dimension_numbers<[1], [0], [0], [1], [0, 0, 1, 1], [], []>} : vector<18x32xf32>, vector<32x64xf32>, vector<18x64xf32> -> vector<18x64xf32>
    %62 = arith.addf %55, %61 : vector<18x64xf32>
    %c8 = arith.constant 8 : index
    %c0_63 = arith.constant 0 : index
    %c0_64 = arith.constant 0 : index
    %63 = vector.load %arg4[%c8, %c0_63, %c0_64] : memref<16x18x128xf32, #tpu.memory_space<vmem>>, vector<1x18x128xf32>
    %64 = vector.shape_cast %63 : vector<1x18x128xf32> to vector<18x128xf32>
    %cst_65 = arith.constant dense<0.000000e+00> : vector<18x32xf32>
    %65 = tpu.matmul %64, %7, %cst_65 {dimension_numbers = #tpu.dot_dimension_numbers<[1], [0], [0], [1], [0, 0, 1, 1], [], []>} : vector<18x128xf32>, vector<128x32xf32>, vector<18x32xf32> -> vector<18x32xf32>
    %c8_66 = arith.constant 8 : index
    %c0_67 = arith.constant 0 : index
    %c0_68 = arith.constant 0 : index
    %66 = vector.load %arg5[%c8_66, %c0_67, %c0_68] : memref<16x32x64xf32, #tpu.memory_space<vmem>>, vector<1x32x64xf32>
    %67 = vector.shape_cast %66 : vector<1x32x64xf32> to vector<32x64xf32>
    %cst_69 = arith.constant dense<0.000000e+00> : vector<18x64xf32>
    %68 = tpu.matmul %65, %67, %cst_69 {dimension_numbers = #tpu.dot_dimension_numbers<[1], [0], [0], [1], [0, 0, 1, 1], [], []>} : vector<18x32xf32>, vector<32x64xf32>, vector<18x64xf32> -> vector<18x64xf32>
    %69 = arith.addf %62, %68 : vector<18x64xf32>
    %c9 = arith.constant 9 : index
    %c0_70 = arith.constant 0 : index
    %c0_71 = arith.constant 0 : index
    %70 = vector.load %arg4[%c9, %c0_70, %c0_71] : memref<16x18x128xf32, #tpu.memory_space<vmem>>, vector<1x18x128xf32>
    %71 = vector.shape_cast %70 : vector<1x18x128xf32> to vector<18x128xf32>
    %cst_72 = arith.constant dense<0.000000e+00> : vector<18x32xf32>
    %72 = tpu.matmul %71, %7, %cst_72 {dimension_numbers = #tpu.dot_dimension_numbers<[1], [0], [0], [1], [0, 0, 1, 1], [], []>} : vector<18x128xf32>, vector<128x32xf32>, vector<18x32xf32> -> vector<18x32xf32>
    %c9_73 = arith.constant 9 : index
    %c0_74 = arith.constant 0 : index
    %c0_75 = arith.constant 0 : index
    %73 = vector.load %arg5[%c9_73, %c0_74, %c0_75] : memref<16x32x64xf32, #tpu.memory_space<vmem>>, vector<1x32x64xf32>
    %74 = vector.shape_cast %73 : vector<1x32x64xf32> to vector<32x64xf32>
    %cst_76 = arith.constant dense<0.000000e+00> : vector<18x64xf32>
    %75 = tpu.matmul %72, %74, %cst_76 {dimension_numbers = #tpu.dot_dimension_numbers<[1], [0], [0], [1], [0, 0, 1, 1], [], []>} : vector<18x32xf32>, vector<32x64xf32>, vector<18x64xf32> -> vector<18x64xf32>
    %76 = arith.addf %69, %75 : vector<18x64xf32>
    %c10 = arith.constant 10 : index
    %c0_77 = arith.constant 0 : index
    %c0_78 = arith.constant 0 : index
    %77 = vector.load %arg4[%c10, %c0_77, %c0_78] : memref<16x18x128xf32, #tpu.memory_space<vmem>>, vector<1x18x128xf32>
    %78 = vector.shape_cast %77 : vector<1x18x128xf32> to vector<18x128xf32>
    %cst_79 = arith.constant dense<0.000000e+00> : vector<18x32xf32>
    %79 = tpu.matmul %78, %7, %cst_79 {dimension_numbers = #tpu.dot_dimension_numbers<[1], [0], [0], [1], [0, 0, 1, 1], [], []>} : vector<18x128xf32>, vector<128x32xf32>, vector<18x32xf32> -> vector<18x32xf32>
    %c10_80 = arith.constant 10 : index
    %c0_81 = arith.constant 0 : index
    %c0_82 = arith.constant 0 : index
    %80 = vector.load %arg5[%c10_80, %c0_81, %c0_82] : memref<16x32x64xf32, #tpu.memory_space<vmem>>, vector<1x32x64xf32>
    %81 = vector.shape_cast %80 : vector<1x32x64xf32> to vector<32x64xf32>
    %cst_83 = arith.constant dense<0.000000e+00> : vector<18x64xf32>
    %82 = tpu.matmul %79, %81, %cst_83 {dimension_numbers = #tpu.dot_dimension_numbers<[1], [0], [0], [1], [0, 0, 1, 1], [], []>} : vector<18x32xf32>, vector<32x64xf32>, vector<18x64xf32> -> vector<18x64xf32>
    %83 = arith.addf %76, %82 : vector<18x64xf32>
    %c11 = arith.constant 11 : index
    %c0_84 = arith.constant 0 : index
    %c0_85 = arith.constant 0 : index
    %84 = vector.load %arg4[%c11, %c0_84, %c0_85] : memref<16x18x128xf32, #tpu.memory_space<vmem>>, vector<1x18x128xf32>
    %85 = vector.shape_cast %84 : vector<1x18x128xf32> to vector<18x128xf32>
    %cst_86 = arith.constant dense<0.000000e+00> : vector<18x32xf32>
    %86 = tpu.matmul %85, %7, %cst_86 {dimension_numbers = #tpu.dot_dimension_numbers<[1], [0], [0], [1], [0, 0, 1, 1], [], []>} : vector<18x128xf32>, vector<128x32xf32>, vector<18x32xf32> -> vector<18x32xf32>
    %c11_87 = arith.constant 11 : index
    %c0_88 = arith.constant 0 : index
    %c0_89 = arith.constant 0 : index
    %87 = vector.load %arg5[%c11_87, %c0_88, %c0_89] : memref<16x32x64xf32, #tpu.memory_space<vmem>>, vector<1x32x64xf32>
    %88 = vector.shape_cast %87 : vector<1x32x64xf32> to vector<32x64xf32>
    %cst_90 = arith.constant dense<0.000000e+00> : vector<18x64xf32>
    %89 = tpu.matmul %86, %88, %cst_90 {dimension_numbers = #tpu.dot_dimension_numbers<[1], [0], [0], [1], [0, 0, 1, 1], [], []>} : vector<18x32xf32>, vector<32x64xf32>, vector<18x64xf32> -> vector<18x64xf32>
    %90 = arith.addf %83, %89 : vector<18x64xf32>
    %c12 = arith.constant 12 : index
    %c0_91 = arith.constant 0 : index
    %c0_92 = arith.constant 0 : index
    %91 = vector.load %arg4[%c12, %c0_91, %c0_92] : memref<16x18x128xf32, #tpu.memory_space<vmem>>, vector<1x18x128xf32>
    %92 = vector.shape_cast %91 : vector<1x18x128xf32> to vector<18x128xf32>
    %cst_93 = arith.constant dense<0.000000e+00> : vector<18x32xf32>
    %93 = tpu.matmul %92, %7, %cst_93 {dimension_numbers = #tpu.dot_dimension_numbers<[1], [0], [0], [1], [0, 0, 1, 1], [], []>} : vector<18x128xf32>, vector<128x32xf32>, vector<18x32xf32> -> vector<18x32xf32>
    %c12_94 = arith.constant 12 : index
    %c0_95 = arith.constant 0 : index
    %c0_96 = arith.constant 0 : index
    %94 = vector.load %arg5[%c12_94, %c0_95, %c0_96] : memref<16x32x64xf32, #tpu.memory_space<vmem>>, vector<1x32x64xf32>
    %95 = vector.shape_cast %94 : vector<1x32x64xf32> to vector<32x64xf32>
    %cst_97 = arith.constant dense<0.000000e+00> : vector<18x64xf32>
    %96 = tpu.matmul %93, %95, %cst_97 {dimension_numbers = #tpu.dot_dimension_numbers<[1], [0], [0], [1], [0, 0, 1, 1], [], []>} : vector<18x32xf32>, vector<32x64xf32>, vector<18x64xf32> -> vector<18x64xf32>
    %97 = arith.addf %90, %96 : vector<18x64xf32>
    %c13 = arith.constant 13 : index
    %c0_98 = arith.constant 0 : index
    %c0_99 = arith.constant 0 : index
    %98 = vector.load %arg4[%c13, %c0_98, %c0_99] : memref<16x18x128xf32, #tpu.memory_space<vmem>>, vector<1x18x128xf32>
    %99 = vector.shape_cast %98 : vector<1x18x128xf32> to vector<18x128xf32>
    %cst_100 = arith.constant dense<0.000000e+00> : vector<18x32xf32>
    %100 = tpu.matmul %99, %7, %cst_100 {dimension_numbers = #tpu.dot_dimension_numbers<[1], [0], [0], [1], [0, 0, 1, 1], [], []>} : vector<18x128xf32>, vector<128x32xf32>, vector<18x32xf32> -> vector<18x32xf32>
    %c13_101 = arith.constant 13 : index
    %c0_102 = arith.constant 0 : index
    %c0_103 = arith.constant 0 : index
    %101 = vector.load %arg5[%c13_101, %c0_102, %c0_103] : memref<16x32x64xf32, #tpu.memory_space<vmem>>, vector<1x32x64xf32>
    %102 = vector.shape_cast %101 : vector<1x32x64xf32> to vector<32x64xf32>
    %cst_104 = arith.constant dense<0.000000e+00> : vector<18x64xf32>
    %103 = tpu.matmul %100, %102, %cst_104 {dimension_numbers = #tpu.dot_dimension_numbers<[1], [0], [0], [1], [0, 0, 1, 1], [], []>} : vector<18x32xf32>, vector<32x64xf32>, vector<18x64xf32> -> vector<18x64xf32>
    %104 = arith.addf %97, %103 : vector<18x64xf32>
    %c14 = arith.constant 14 : index
    %c0_105 = arith.constant 0 : index
    %c0_106 = arith.constant 0 : index
    %105 = vector.load %arg4[%c14, %c0_105, %c0_106] : memref<16x18x128xf32, #tpu.memory_space<vmem>>, vector<1x18x128xf32>
    %106 = vector.shape_cast %105 : vector<1x18x128xf32> to vector<18x128xf32>
    %cst_107 = arith.constant dense<0.000000e+00> : vector<18x32xf32>
    %107 = tpu.matmul %106, %7, %cst_107 {dimension_numbers = #tpu.dot_dimension_numbers<[1], [0], [0], [1], [0, 0, 1, 1], [], []>} : vector<18x128xf32>, vector<128x32xf32>, vector<18x32xf32> -> vector<18x32xf32>
    %c14_108 = arith.constant 14 : index
    %c0_109 = arith.constant 0 : index
    %c0_110 = arith.constant 0 : index
    %108 = vector.load %arg5[%c14_108, %c0_109, %c0_110] : memref<16x32x64xf32, #tpu.memory_space<vmem>>, vector<1x32x64xf32>
    %109 = vector.shape_cast %108 : vector<1x32x64xf32> to vector<32x64xf32>
    %cst_111 = arith.constant dense<0.000000e+00> : vector<18x64xf32>
    %110 = tpu.matmul %107, %109, %cst_111 {dimension_numbers = #tpu.dot_dimension_numbers<[1], [0], [0], [1], [0, 0, 1, 1], [], []>} : vector<18x32xf32>, vector<32x64xf32>, vector<18x64xf32> -> vector<18x64xf32>
    %111 = arith.addf %104, %110 : vector<18x64xf32>
    %c15 = arith.constant 15 : index
    %c0_112 = arith.constant 0 : index
    %c0_113 = arith.constant 0 : index
    %112 = vector.load %arg4[%c15, %c0_112, %c0_113] : memref<16x18x128xf32, #tpu.memory_space<vmem>>, vector<1x18x128xf32>
    %113 = vector.shape_cast %112 : vector<1x18x128xf32> to vector<18x128xf32>
    %cst_114 = arith.constant dense<0.000000e+00> : vector<18x32xf32>
    %114 = tpu.matmul %113, %7, %cst_114 {dimension_numbers = #tpu.dot_dimension_numbers<[1], [0], [0], [1], [0, 0, 1, 1], [], []>} : vector<18x128xf32>, vector<128x32xf32>, vector<18x32xf32> -> vector<18x32xf32>
    %c15_115 = arith.constant 15 : index
    %c0_116 = arith.constant 0 : index
    %c0_117 = arith.constant 0 : index
    %115 = vector.load %arg5[%c15_115, %c0_116, %c0_117] : memref<16x32x64xf32, #tpu.memory_space<vmem>>, vector<1x32x64xf32>
    %116 = vector.shape_cast %115 : vector<1x32x64xf32> to vector<32x64xf32>
    %cst_118 = arith.constant dense<0.000000e+00> : vector<18x64xf32>
    %117 = tpu.matmul %114, %116, %cst_118 {dimension_numbers = #tpu.dot_dimension_numbers<[1], [0], [0], [1], [0, 0, 1, 1], [], []>} : vector<18x32xf32>, vector<32x64xf32>, vector<18x64xf32> -> vector<18x64xf32>
    %118 = arith.addf %111, %117 : vector<18x64xf32>
    %c0_119 = arith.constant 0 : index
    %c0_120 = arith.constant 0 : index
    %119 = vector.load %arg6[%c0_119, %c0_120] : memref<1x64xf32, #tpu.memory_space<vmem>>, vector<1x64xf32>
    %120 = vector.broadcast %119 : vector<1x64xf32> to vector<18x64xf32>
    %121 = arith.addf %118, %120 : vector<18x64xf32>
    %cst_121 = arith.constant 0.000000e+00 : f32
    %122 = vector.broadcast %cst_121 : f32 to vector<18x64xf32>
    %123 = arith.maximumf %121, %122 : vector<18x64xf32>
    %c0_122 = arith.constant 0 : index
    %c0_123 = arith.constant 0 : index
    %c0_124 = arith.constant 0 : index
    %124 = vector.load %arg7[%c0_122, %c0_123, %c0_124] : memref<9x2x18xf32, #tpu.memory_space<vmem>>, vector<1x2x18xf32>
    %125 = vector.shape_cast %124 : vector<1x2x18xf32> to vector<2x18xf32>
    %cst_125 = arith.constant dense<0.000000e+00> : vector<2x64xf32>
    %126 = tpu.matmul %125, %123, %cst_125 {dimension_numbers = #tpu.dot_dimension_numbers<[1], [0], [0], [1], [0, 0, 1, 1], [], []>} : vector<2x18xf32>, vector<18x64xf32>, vector<2x64xf32> -> vector<2x64xf32>
    %c0_126 = arith.constant 0 : index
    %c0_127 = arith.constant 0 : index
    %c0_128 = arith.constant 0 : index
    %127 = vector.load %arg8[%c0_126, %c0_127, %c0_128] : memref<9x64x64xf32, #tpu.memory_space<vmem>>, vector<1x64x64xf32>
    %128 = vector.shape_cast %127 : vector<1x64x64xf32> to vector<64x64xf32>
    %cst_129 = arith.constant dense<0.000000e+00> : vector<2x64xf32>
    %129 = tpu.matmul %126, %128, %cst_129 {dimension_numbers = #tpu.dot_dimension_numbers<[1], [0], [0], [1], [0, 0, 1, 1], [], []>} : vector<2x64xf32>, vector<64x64xf32>, vector<2x64xf32> -> vector<2x64xf32>
    %c1_130 = arith.constant 1 : index
    %c0_131 = arith.constant 0 : index
    %c0_132 = arith.constant 0 : index
    %130 = vector.load %arg7[%c1_130, %c0_131, %c0_132] : memref<9x2x18xf32, #tpu.memory_space<vmem>>, vector<1x2x18xf32>
    %131 = vector.shape_cast %130 : vector<1x2x18xf32> to vector<2x18xf32>
    %cst_133 = arith.constant dense<0.000000e+00> : vector<2x64xf32>
    %132 = tpu.matmul %131, %123, %cst_133 {dimension_numbers = #tpu.dot_dimension_numbers<[1], [0], [0], [1], [0, 0, 1, 1], [], []>} : vector<2x18xf32>, vector<18x64xf32>, vector<2x64xf32> -> vector<2x64xf32>
    %c1_134 = arith.constant 1 : index
    %c0_135 = arith.constant 0 : index
    %c0_136 = arith.constant 0 : index
    %133 = vector.load %arg8[%c1_134, %c0_135, %c0_136] : memref<9x64x64xf32, #tpu.memory_space<vmem>>, vector<1x64x64xf32>
    %134 = vector.shape_cast %133 : vector<1x64x64xf32> to vector<64x64xf32>
    %cst_137 = arith.constant dense<0.000000e+00> : vector<2x64xf32>
    %135 = tpu.matmul %132, %134, %cst_137 {dimension_numbers = #tpu.dot_dimension_numbers<[1], [0], [0], [1], [0, 0, 1, 1], [], []>} : vector<2x64xf32>, vector<64x64xf32>, vector<2x64xf32> -> vector<2x64xf32>
    %136 = arith.addf %129, %135 : vector<2x64xf32>
    %c2_138 = arith.constant 2 : index
    %c0_139 = arith.constant 0 : index
    %c0_140 = arith.constant 0 : index
    %137 = vector.load %arg7[%c2_138, %c0_139, %c0_140] : memref<9x2x18xf32, #tpu.memory_space<vmem>>, vector<1x2x18xf32>
    %138 = vector.shape_cast %137 : vector<1x2x18xf32> to vector<2x18xf32>
    %cst_141 = arith.constant dense<0.000000e+00> : vector<2x64xf32>
    %139 = tpu.matmul %138, %123, %cst_141 {dimension_numbers = #tpu.dot_dimension_numbers<[1], [0], [0], [1], [0, 0, 1, 1], [], []>} : vector<2x18xf32>, vector<18x64xf32>, vector<2x64xf32> -> vector<2x64xf32>
    %c2_142 = arith.constant 2 : index
    %c0_143 = arith.constant 0 : index
    %c0_144 = arith.constant 0 : index
    %140 = vector.load %arg8[%c2_142, %c0_143, %c0_144] : memref<9x64x64xf32, #tpu.memory_space<vmem>>, vector<1x64x64xf32>
    %141 = vector.shape_cast %140 : vector<1x64x64xf32> to vector<64x64xf32>
    %cst_145 = arith.constant dense<0.000000e+00> : vector<2x64xf32>
    %142 = tpu.matmul %139, %141, %cst_145 {dimension_numbers = #tpu.dot_dimension_numbers<[1], [0], [0], [1], [0, 0, 1, 1], [], []>} : vector<2x64xf32>, vector<64x64xf32>, vector<2x64xf32> -> vector<2x64xf32>
    %143 = arith.addf %136, %142 : vector<2x64xf32>
    %c3_146 = arith.constant 3 : index
    %c0_147 = arith.constant 0 : index
    %c0_148 = arith.constant 0 : index
    %144 = vector.load %arg7[%c3_146, %c0_147, %c0_148] : memref<9x2x18xf32, #tpu.memory_space<vmem>>, vector<1x2x18xf32>
    %145 = vector.shape_cast %144 : vector<1x2x18xf32> to vector<2x18xf32>
    %cst_149 = arith.constant dense<0.000000e+00> : vector<2x64xf32>
    %146 = tpu.matmul %145, %123, %cst_149 {dimension_numbers = #tpu.dot_dimension_numbers<[1], [0], [0], [1], [0, 0, 1, 1], [], []>} : vector<2x18xf32>, vector<18x64xf32>, vector<2x64xf32> -> vector<2x64xf32>
    %c3_150 = arith.constant 3 : index
    %c0_151 = arith.constant 0 : index
    %c0_152 = arith.constant 0 : index
    %147 = vector.load %arg8[%c3_150, %c0_151, %c0_152] : memref<9x64x64xf32, #tpu.memory_space<vmem>>, vector<1x64x64xf32>
    %148 = vector.shape_cast %147 : vector<1x64x64xf32> to vector<64x64xf32>
    %cst_153 = arith.constant dense<0.000000e+00> : vector<2x64xf32>
    %149 = tpu.matmul %146, %148, %cst_153 {dimension_numbers = #tpu.dot_dimension_numbers<[1], [0], [0], [1], [0, 0, 1, 1], [], []>} : vector<2x64xf32>, vector<64x64xf32>, vector<2x64xf32> -> vector<2x64xf32>
    %150 = arith.addf %143, %149 : vector<2x64xf32>
    %c4_154 = arith.constant 4 : index
    %c0_155 = arith.constant 0 : index
    %c0_156 = arith.constant 0 : index
    %151 = vector.load %arg7[%c4_154, %c0_155, %c0_156] : memref<9x2x18xf32, #tpu.memory_space<vmem>>, vector<1x2x18xf32>
    %152 = vector.shape_cast %151 : vector<1x2x18xf32> to vector<2x18xf32>
    %cst_157 = arith.constant dense<0.000000e+00> : vector<2x64xf32>
    %153 = tpu.matmul %152, %123, %cst_157 {dimension_numbers = #tpu.dot_dimension_numbers<[1], [0], [0], [1], [0, 0, 1, 1], [], []>} : vector<2x18xf32>, vector<18x64xf32>, vector<2x64xf32> -> vector<2x64xf32>
    %c4_158 = arith.constant 4 : index
    %c0_159 = arith.constant 0 : index
    %c0_160 = arith.constant 0 : index
    %154 = vector.load %arg8[%c4_158, %c0_159, %c0_160] : memref<9x64x64xf32, #tpu.memory_space<vmem>>, vector<1x64x64xf32>
    %155 = vector.shape_cast %154 : vector<1x64x64xf32> to vector<64x64xf32>
    %cst_161 = arith.constant dense<0.000000e+00> : vector<2x64xf32>
    %156 = tpu.matmul %153, %155, %cst_161 {dimension_numbers = #tpu.dot_dimension_numbers<[1], [0], [0], [1], [0, 0, 1, 1], [], []>} : vector<2x64xf32>, vector<64x64xf32>, vector<2x64xf32> -> vector<2x64xf32>
    %157 = arith.addf %150, %156 : vector<2x64xf32>
    %c5_162 = arith.constant 5 : index
    %c0_163 = arith.constant 0 : index
    %c0_164 = arith.constant 0 : index
    %158 = vector.load %arg7[%c5_162, %c0_163, %c0_164] : memref<9x2x18xf32, #tpu.memory_space<vmem>>, vector<1x2x18xf32>
    %159 = vector.shape_cast %158 : vector<1x2x18xf32> to vector<2x18xf32>
    %cst_165 = arith.constant dense<0.000000e+00> : vector<2x64xf32>
    %160 = tpu.matmul %159, %123, %cst_165 {dimension_numbers = #tpu.dot_dimension_numbers<[1], [0], [0], [1], [0, 0, 1, 1], [], []>} : vector<2x18xf32>, vector<18x64xf32>, vector<2x64xf32> -> vector<2x64xf32>
    %c5_166 = arith.constant 5 : index
    %c0_167 = arith.constant 0 : index
    %c0_168 = arith.constant 0 : index
    %161 = vector.load %arg8[%c5_166, %c0_167, %c0_168] : memref<9x64x64xf32, #tpu.memory_space<vmem>>, vector<1x64x64xf32>
    %162 = vector.shape_cast %161 : vector<1x64x64xf32> to vector<64x64xf32>
    %cst_169 = arith.constant dense<0.000000e+00> : vector<2x64xf32>
    %163 = tpu.matmul %160, %162, %cst_169 {dimension_numbers = #tpu.dot_dimension_numbers<[1], [0], [0], [1], [0, 0, 1, 1], [], []>} : vector<2x64xf32>, vector<64x64xf32>, vector<2x64xf32> -> vector<2x64xf32>
    %164 = arith.addf %157, %163 : vector<2x64xf32>
    %c6_170 = arith.constant 6 : index
    %c0_171 = arith.constant 0 : index
    %c0_172 = arith.constant 0 : index
    %165 = vector.load %arg7[%c6_170, %c0_171, %c0_172] : memref<9x2x18xf32, #tpu.memory_space<vmem>>, vector<1x2x18xf32>
    %166 = vector.shape_cast %165 : vector<1x2x18xf32> to vector<2x18xf32>
    %cst_173 = arith.constant dense<0.000000e+00> : vector<2x64xf32>
    %167 = tpu.matmul %166, %123, %cst_173 {dimension_numbers = #tpu.dot_dimension_numbers<[1], [0], [0], [1], [0, 0, 1, 1], [], []>} : vector<2x18xf32>, vector<18x64xf32>, vector<2x64xf32> -> vector<2x64xf32>
    %c6_174 = arith.constant 6 : index
    %c0_175 = arith.constant 0 : index
    %c0_176 = arith.constant 0 : index
    %168 = vector.load %arg8[%c6_174, %c0_175, %c0_176] : memref<9x64x64xf32, #tpu.memory_space<vmem>>, vector<1x64x64xf32>
    %169 = vector.shape_cast %168 : vector<1x64x64xf32> to vector<64x64xf32>
    %cst_177 = arith.constant dense<0.000000e+00> : vector<2x64xf32>
    %170 = tpu.matmul %167, %169, %cst_177 {dimension_numbers = #tpu.dot_dimension_numbers<[1], [0], [0], [1], [0, 0, 1, 1], [], []>} : vector<2x64xf32>, vector<64x64xf32>, vector<2x64xf32> -> vector<2x64xf32>
    %171 = arith.addf %164, %170 : vector<2x64xf32>
    %c7_178 = arith.constant 7 : index
    %c0_179 = arith.constant 0 : index
    %c0_180 = arith.constant 0 : index
    %172 = vector.load %arg7[%c7_178, %c0_179, %c0_180] : memref<9x2x18xf32, #tpu.memory_space<vmem>>, vector<1x2x18xf32>
    %173 = vector.shape_cast %172 : vector<1x2x18xf32> to vector<2x18xf32>
    %cst_181 = arith.constant dense<0.000000e+00> : vector<2x64xf32>
    %174 = tpu.matmul %173, %123, %cst_181 {dimension_numbers = #tpu.dot_dimension_numbers<[1], [0], [0], [1], [0, 0, 1, 1], [], []>} : vector<2x18xf32>, vector<18x64xf32>, vector<2x64xf32> -> vector<2x64xf32>
    %c7_182 = arith.constant 7 : index
    %c0_183 = arith.constant 0 : index
    %c0_184 = arith.constant 0 : index
    %175 = vector.load %arg8[%c7_182, %c0_183, %c0_184] : memref<9x64x64xf32, #tpu.memory_space<vmem>>, vector<1x64x64xf32>
    %176 = vector.shape_cast %175 : vector<1x64x64xf32> to vector<64x64xf32>
    %cst_185 = arith.constant dense<0.000000e+00> : vector<2x64xf32>
    %177 = tpu.matmul %174, %176, %cst_185 {dimension_numbers = #tpu.dot_dimension_numbers<[1], [0], [0], [1], [0, 0, 1, 1], [], []>} : vector<2x64xf32>, vector<64x64xf32>, vector<2x64xf32> -> vector<2x64xf32>
    %178 = arith.addf %171, %177 : vector<2x64xf32>
    %c8_186 = arith.constant 8 : index
    %c0_187 = arith.constant 0 : index
    %c0_188 = arith.constant 0 : index
    %179 = vector.load %arg7[%c8_186, %c0_187, %c0_188] : memref<9x2x18xf32, #tpu.memory_space<vmem>>, vector<1x2x18xf32>
    %180 = vector.shape_cast %179 : vector<1x2x18xf32> to vector<2x18xf32>
    %cst_189 = arith.constant dense<0.000000e+00> : vector<2x64xf32>
    %181 = tpu.matmul %180, %123, %cst_189 {dimension_numbers = #tpu.dot_dimension_numbers<[1], [0], [0], [1], [0, 0, 1, 1], [], []>} : vector<2x18xf32>, vector<18x64xf32>, vector<2x64xf32> -> vector<2x64xf32>
    %c8_190 = arith.constant 8 : index
    %c0_191 = arith.constant 0 : index
    %c0_192 = arith.constant 0 : index
    %182 = vector.load %arg8[%c8_190, %c0_191, %c0_192] : memref<9x64x64xf32, #tpu.memory_space<vmem>>, vector<1x64x64xf32>
    %183 = vector.shape_cast %182 : vector<1x64x64xf32> to vector<64x64xf32>
    %cst_193 = arith.constant dense<0.000000e+00> : vector<2x64xf32>
    %184 = tpu.matmul %181, %183, %cst_193 {dimension_numbers = #tpu.dot_dimension_numbers<[1], [0], [0], [1], [0, 0, 1, 1], [], []>} : vector<2x64xf32>, vector<64x64xf32>, vector<2x64xf32> -> vector<2x64xf32>
    %185 = arith.addf %178, %184 : vector<2x64xf32>
    %c0_194 = arith.constant 0 : index
    %c0_195 = arith.constant 0 : index
    %186 = vector.load %arg9[%c0_194, %c0_195] : memref<1x64xf32, #tpu.memory_space<vmem>>, vector<1x64xf32>
    %187 = vector.broadcast %186 : vector<1x64xf32> to vector<2x64xf32>
    %188 = arith.addf %185, %187 : vector<2x64xf32>
    %cst_196 = arith.constant 0.000000e+00 : f32
    %189 = vector.broadcast %cst_196 : f32 to vector<2x64xf32>
    %190 = arith.maximumf %188, %189 : vector<2x64xf32>
    %c0_197 = arith.constant 0 : index
    %c0_198 = arith.constant 0 : index
    %c0_199 = arith.constant 0 : index
    %191 = vector.load %arg10[%c0_197, %c0_198, %c0_199] : memref<1x2x2xf32, #tpu.memory_space<vmem>>, vector<1x2x2xf32>
    %192 = vector.shape_cast %191 : vector<1x2x2xf32> to vector<2x2xf32>
    %cst_200 = arith.constant dense<0.000000e+00> : vector<2x64xf32>
    %193 = tpu.matmul %192, %190, %cst_200 {dimension_numbers = #tpu.dot_dimension_numbers<[1], [0], [0], [1], [0, 0, 1, 1], [], []>} : vector<2x2xf32>, vector<2x64xf32>, vector<2x64xf32> -> vector<2x64xf32>
    %c0_201 = arith.constant 0 : index
    %c0_202 = arith.constant 0 : index
    %c0_203 = arith.constant 0 : index
    %194 = vector.load %arg11[%c0_201, %c0_202, %c0_203] : memref<1x64x512xf32, #tpu.memory_space<vmem>>, vector<1x64x512xf32>
    %195 = vector.shape_cast %194 : vector<1x64x512xf32> to vector<64x512xf32>
    %cst_204 = arith.constant dense<0.000000e+00> : vector<2x512xf32>
    %196 = tpu.matmul %193, %195, %cst_204 {dimension_numbers = #tpu.dot_dimension_numbers<[1], [0], [0], [1], [0, 0, 1, 1], [], []>} : vector<2x64xf32>, vector<64x512xf32>, vector<2x512xf32> -> vector<2x512xf32>
    %c0_205 = arith.constant 0 : index
    %c0_206 = arith.constant 0 : index
    %197 = vector.load %arg12[%c0_205, %c0_206] : memref<1x512xf32, #tpu.memory_space<vmem>>, vector<1x512xf32>
    %198 = vector.broadcast %197 : vector<1x512xf32> to vector<2x512xf32>
    %199 = arith.addf %196, %198 : vector<2x512xf32>
    %cst_207 = arith.constant 0.000000e+00 : f32
    %200 = vector.broadcast %cst_207 : f32 to vector<2x512xf32>
    %201 = arith.maximumf %199, %200 : vector<2x512xf32>
    %c0_208 = arith.constant 0 : index
    %c0_209 = arith.constant 0 : index
    %202 = vector.load %arg13[%c0_208, %c0_209] : memref<512x128xf32, #tpu.memory_space<vmem>>, vector<512x128xf32>
    %cst_210 = arith.constant dense<0.000000e+00> : vector<2x128xf32>
    %203 = tpu.matmul %201, %202, %cst_210 {dimension_numbers = #tpu.dot_dimension_numbers<[1], [0], [0], [1], [0, 0, 1, 1], [], []>} : vector<2x512xf32>, vector<512x128xf32>, vector<2x128xf32> -> vector<2x128xf32>
    %c0_211 = arith.constant 0 : index
    %c0_212 = arith.constant 0 : index
    %204 = vector.load %arg14[%c0_211, %c0_212] : memref<1x128xf32, #tpu.memory_space<vmem>>, vector<1x128xf32>
    %205 = vector.broadcast %204 : vector<1x128xf32> to vector<2x128xf32>
    %206 = arith.addf %203, %205 : vector<2x128xf32>
    %c0_213 = arith.constant 0 : index
    %c0_214 = arith.constant 0 : index
    %207 = vector.load %arg15[%c0_213, %c0_214] : memref<2x128xf32, #tpu.memory_space<vmem>>, vector<2x128xf32>
    tpu.vector_store %arg15[%c0_213, %c0_214], %206 {strides = array<i32>} : memref<2x128xf32, #tpu.memory_space<vmem>>, vector<2x128xf32>,
    return
  }
  func.func @transform_0(%arg0: i32) -> (i32, i32) {
    %c0_i32 = arith.constant 0 : i32
    %c0_i32_0 = arith.constant 0 : i32
    %c0_i32_1 = arith.constant 0 : i32
    return %c0_i32, %c0_i32_0 : i32, i32
  }
  func.func @transform_1(%arg0: i32) -> (i32, i32) {
    %c0_i32 = arith.constant 0 : i32
    %c0_i32_0 = arith.constant 0 : i32
    %c0_i32_1 = arith.constant 0 : i32
    return %c0_i32, %c0_i32_0 : i32, i32
  }
  func.func @transform_2(%arg0: i32) -> (i32, i32) {
    %c0_i32 = arith.constant 0 : i32
    %c0_i32_0 = arith.constant 0 : i32
    %c0_i32_1 = arith.constant 0 : i32
    return %c0_i32, %c0_i32_0 : i32, i32
  }
  func.func @transform_3(%arg0: i32) -> (i32, i32, i32) {
    %c0_i32 = arith.constant 0 : i32
    %c0_i32_0 = arith.constant 0 : i32
    %c0_i32_1 = arith.constant 0 : i32
    %c0_i32_2 = arith.constant 0 : i32
    return %c0_i32, %c0_i32_0, %c0_i32_1 : i32, i32, i32
  }
  func.func @transform_4(%arg0: i32) -> (i32, i32, i32) {
    %c0_i32 = arith.constant 0 : i32
    %c0_i32_0 = arith.constant 0 : i32
    %c0_i32_1 = arith.constant 0 : i32
    %c0_i32_2 = arith.constant 0 : i32
    return %c0_i32, %c0_i32_0, %c0_i32_1 : i32, i32, i32
  }
  func.func @transform_5(%arg0: i32) -> (i32, i32) {
    %c0_i32 = arith.constant 0 : i32
    %c0_i32_0 = arith.constant 0 : i32
    %c0_i32_1 = arith.constant 0 : i32
    return %c0_i32, %c0_i32_0 : i32, i32
  }
  func.func @transform_6(%arg0: i32) -> (i32, i32, i32) {
    %c0_i32 = arith.constant 0 : i32
    %c0_i32_0 = arith.constant 0 : i32
    %c0_i32_1 = arith.constant 0 : i32
    %c0_i32_2 = arith.constant 0 : i32
    return %c0_i32, %c0_i32_0, %c0_i32_1 : i32, i32, i32
  }
  func.func @transform_7(%arg0: i32) -> (i32, i32, i32) {
    %c0_i32 = arith.constant 0 : i32
    %c0_i32_0 = arith.constant 0 : i32
    %c0_i32_1 = arith.constant 0 : i32
    %c0_i32_2 = arith.constant 0 : i32
    return %c0_i32, %c0_i32_0, %c0_i32_1 : i32, i32, i32
  }
  func.func @transform_8(%arg0: i32) -> (i32, i32) {
    %c0_i32 = arith.constant 0 : i32
    %c0_i32_0 = arith.constant 0 : i32
    %c0_i32_1 = arith.constant 0 : i32
    return %c0_i32, %c0_i32_0 : i32, i32
  }
  func.func @transform_9(%arg0: i32) -> (i32, i32, i32) {
    %c0_i32 = arith.constant 0 : i32
    %c0_i32_0 = arith.constant 0 : i32
    %c0_i32_1 = arith.constant 0 : i32
    %c0_i32_2 = arith.constant 0 : i32
    return %c0_i32, %c0_i32_0, %c0_i32_1 : i32, i32, i32
  }
  func.func @transform_10(%arg0: i32) -> (i32, i32, i32) {
    %c0_i32 = arith.constant 0 : i32
    %c0_i32_0 = arith.constant 0 : i32
    %c0_i32_1 = arith.constant 0 : i32
    %c0_i32_2 = arith.constant 0 : i32
    return %c0_i32, %c0_i32_0, %c0_i32_1 : i32, i32, i32
  }
  func.func @transform_11(%arg0: i32) -> (i32, i32) {
    %c0_i32 = arith.constant 0 : i32
    %c0_i32_0 = arith.constant 0 : i32
    %c0_i32_1 = arith.constant 0 : i32
    return %c0_i32, %c0_i32_0 : i32, i32
  }
  func.func @transform_12(%arg0: i32) -> (i32, i32) {
    %c0_i32 = arith.constant 0 : i32
    %c0_i32_0 = arith.constant 0 : i32
    %c0_i32_1 = arith.constant 0 : i32
    return %c0_i32, %c0_i32_0 : i32, i32
  }
  func.func @transform_13(%arg0: i32) -> (i32, i32) {
    %c0_i32 = arith.constant 0 : i32
    %c0_i32_0 = arith.constant 0 : i32
    %c0_i32_1 = arith.constant 0 : i32
    return %c0_i32, %c0_i32_0 : i32, i32
  }
  func.func @transform_14(%arg0: i32) -> (i32, i32) {
    %c0_i32 = arith.constant 0 : i32
    %c0_i32_0 = arith.constant 0 : i32
    %c0_i32_1 = arith.constant 0 : i32
    return %c0_i32, %c0_i32_0 : i32, i32
  }
}

</mosaic_0001>

<bundles_post_ra>
// kernel: deep_q_net_forward.1
= control target key start
LH: loop header
LB: loop body
LE: loop exit
PB: predicated region body
PF: predicated region fallthrough
CT: control target
= control target key end

     0   :  { %s9645_s0 = inlined_call_operand.vmem [shape: f32[128,256], index: 0, kind: input, shape index: {}]   ;;  %s9646_s1 = inlined_call_operand.vmem [shape: f32[256,32], index: 1, kind: input, shape index: {}]   ;;  %s9647_s2 = inlined_call_operand.vmem [shape: f32[1,32], index: 2, kind: input, shape index: {}]   ;;  %s9648_s3 = inlined_call_operand.vmem [shape: f32[16,18,128], index: 3, kind: input, shape index: {}]   ;;  %s9649_s4 = inlined_call_operand.vmem [shape: f32[16,32,64], index: 4, kind: input, shape index: {}]   ;;  %s9650_s5 = inlined_call_operand.vmem [shape: f32[1,64], index: 5, kind: input, shape index: {}]   ;;  %s9651_s6 = inlined_call_operand.vmem [shape: f32[9,2,18], index: 6, kind: input, shape index: {}]   ;;  %s9652_s7 = inlined_call_operand.vmem [shape: f32[9,64,64], index: 7, kind: input, shape index: {}]   ;;  %s9653_s8 = inlined_call_operand.vmem [shape: f32[1,64], index: 8, kind: input, shape index: {}]   ;;  %s9654_s9 = inlined_call_operand.vmem [shape: f32[1,2,2], index: 9, kind: input, shape index: {}]   ;;  %s9655_s10 = inlined_call_operand.vmem [shape: f32[1,64,512], index: 10, kind: input, shape index: {}]   ;;  %s9656_s11 = inlined_call_operand.vmem [shape: f32[1,512], index: 11, kind: input, shape index: {}]   ;;  %s9657_s12 = inlined_call_operand.vmem [shape: f32[512,128], index: 12, kind: input, shape index: {}]   ;;  %s9658_s13 = inlined_call_operand.vmem [shape: f32[1,128], index: 13, kind: input, shape index: {}]   ;;  %s9659_s14 = inlined_call_operand.hbm [shape: f32[2,128], index: 14, kind: output, shape index: {}]  }
   0x1   :  { %v111_v0 = vld [vmem:[%s9646_s1 + $0xf8] sm:$0xff]  ;;  %v110_v2 = vld [vmem:[%s9646_s1 + $0xf0] sm:$0xff]  ;;  %v109_v4 = vld [vmem:[%s9646_s1 + $0xe8] sm:$0xff] }
   0x2   :  { %v95_v1 = vld [vmem:[%s9646_s1 + $0x78] sm:$0xff]  ;;  %5382 = vmatprep.subr.mxu0 %v111_v0  ;;  %v94_v3 = vld [vmem:[%s9646_s1 + $0x70] sm:$0xff]  ;;  %v93_v5 = vld [vmem:[%s9646_s1 + $0x68] sm:$0xff] }
   0x3   :  { %5383 = vmatpush3.msra.mxu0 %v95_v1  ;;  %v108_v6 = vld [vmem:[%s9646_s1 + $0xe0] sm:$0xff]  ;;  %v107_v8 = vld [vmem:[%s9646_s1 + $0xd8] sm:$0xff]  ;;  %v106_v10 = vld [vmem:[%s9646_s1 + $0xd0] sm:$0xff] }
   0x4   :  { %5384 = vmatprep.subr.mxu0 %v110_v2  ;;  %v92_v7 = vld [vmem:[%s9646_s1 + $0x60] sm:$0xff]  ;;  %v91_v9 = vld [vmem:[%s9646_s1 + $0x58] sm:$0xff]  ;;  %v90_v11 = vld [vmem:[%s9646_s1 + $0x50] sm:$0xff] }
   0x5   :  { %5385 = vmatpush3.msra.mxu0 %v94_v3  ;;  %v105_v12 = vld [vmem:[%s9646_s1 + $0xc8] sm:$0xff]  ;;  %v104_v15 = vld [vmem:[%s9646_s1 + $0xc0] sm:$0xff]  ;;  %v103_v17 = vld [vmem:[%s9646_s1 + $0xb8] sm:$0xff] }
   0x6   :  { %5386 = vmatprep.subr.mxu0 %v109_v4  ;;  %v49_v13 = vld [vmem:[%s9645_s0 + $0x8] sm:$0xff]  ;;  %v88_v16 = vld [vmem:[%s9646_s1 + $0x40] sm:$0xff]  ;;  %v87_v18 = vld [vmem:[%s9646_s1 + $0x38] sm:$0xff] }
   0x7   :  { %5387 = vmatpush3.msra.mxu0 %v93_v5  ;;  %v89_v14 = vld [vmem:[%s9646_s1 + $0x48] sm:$0xff]  ;;  %183 = vmatprep.mubr.f32.mxu0 %v49_v13  ;;  %v102_v19 = vld [vmem:[%s9646_s1 + $0xb0] sm:$0xff]  ;;  %v100_v23 = vld [vmem:[%s9646_s1 + $0xa0] sm:$0xff] }
   0x8   :  { %5388 = vmatprep.subr.mxu0 %v108_v6  ;;  %v86_v20 = vld [vmem:[%s9646_s1 + $0x30] sm:$0xff]  ;;  %v101_v21 = vld [vmem:[%s9646_s1 + $0xa8] sm:$0xff]  ;;  %v84_v24 = vld [vmem:[%s9646_s1 + $0x20] sm:$0xff] }
   0x9   :  { %5389 = vmatpush3.msra.mxu0 %v92_v7  ;;  %v85_v22 = vld [vmem:[%s9646_s1 + $0x28] sm:$0xff] }
   0xa   :  { %5390 = vmatprep.subr.mxu0 %v107_v8 }
   0xb   :  { %5391 = vmatpush3.msra.mxu0 %v91_v9 }
   0xc   :  { %5392 = vmatprep.subr.mxu0 %v106_v10 }
   0xd   :  { %5393 = vmatpush3.msra.mxu0 %v90_v11 }
   0xe   :  { %5394 = vmatprep.subr.mxu0 %v105_v12 }
   0xf   :  { %5395 = vmatpush3.msra.mxu0 %v89_v14 }
  0x10   :  { %5396 = vmatprep.subr.mxu0 %v104_v15 }
  0x11   :  { %5397 = vmatpush3.msra.mxu0 %v88_v16 }
  0x12   :  { %5398 = vmatprep.subr.mxu0 %v103_v17 }
  0x13   :  { %5399 = vmatpush3.msra.mxu0 %v87_v18 }
  0x14   :  { %5400 = vmatprep.subr.mxu0 %v102_v19 }
  0x15   :  { %5401 = vmatpush3.msra.mxu0 %v86_v20 }
  0x16   :  { %5402 = vmatprep.subr.mxu0 %v101_v21 }
  0x17   :  { %19 = vsyncpa [#allocation3], 0  ;;  %5403 = vmatpush3.msra.mxu0 %v85_v22  ;;  %v99_v25 = vld [vmem:[%s9646_s1 + $0x98] sm:$0xff]  ;;  %v98_v27 = vld [vmem:[%s9646_s1 + $0x90] sm:$0xff]  ;;  %v7277_v0 = vmov 0.0   ;;  %vm7278_vm0 = vmmov 0  }
  0x18   :  { %5404 = vmatprep.subr.mxu0 %v100_v23  ;;  %v83_v26 = vld [vmem:[%s9646_s1 + $0x18] sm:$0xff]  ;;  %v82_v28 = vld [vmem:[%s9646_s1 + $0x10] sm:$0xff]  ;;  %v97_v29 = vld [vmem:[%s9646_s1 + $0x88] sm:$0xff]  ;;  %6067 = vmatprep.subr.mxu1 %v7277_v0  ;;  %vm456_vm1 = vcmask 261120   ;;  %vm3187_vm2 = vcmask 1041408   ;;  %vm3183_vm3 = vcmask 146432  }
  0x19   :  { %5405 = vmatpush3.msra.mxu0 %v84_v24  ;;  %v81_v30 = vld [vmem:[%s9646_s1 + $0x8] sm:$0xff]  ;;  %v96_v31 = vld [vmem:[%s9646_s1 + $0x80] sm:$0xff]  ;;  %v51_v34 = vld [vmem:[%s9645_s0 + $0x18] sm:$0xff]  ;;  %6099 = vmatprep.mubr.msk.f32.mxu1 %vm7278_vm0, %v7277_v0  ;;  %vm3353_vm4 = vcmask 523264   ;;  %vm4616_vm5 = vcmask 15360  }
  0x1a   :  { %5406 = vmatprep.subr.mxu0 %v99_v25  ;;  %v80_v32 = vld [vmem:[%s9646_s1] sm:$0xff]  ;;  %v50_v35 = vld [vmem:[%s9645_s0 + $0x10] sm:$0xff]  ;;  %v53_v36 = vld [vmem:[%s9645_s0 + $0x28] sm:$0xff] }
  0x1b   :  { %5407 = vmatpush3.msra.mxu0 %v83_v26  ;;  %v48_v33 = vld [vmem:[%s9645_s0] sm:$0xff]  ;;  %v55_v38 = vld [vmem:[%s9645_s0 + $0x38] sm:$0xff]  ;;  %v54_v39 = vld [vmem:[%s9645_s0 + $0x30] sm:$0xff] }
  0x1c   :  { %5408 = vmatprep.subr.mxu0 %v98_v27  ;;  %v52_v37 = vld [vmem:[%s9645_s0 + $0x20] sm:$0xff]  ;;  %v57_v40 = vld [vmem:[%s9645_s0 + $0x48] sm:$0xff]  ;;  %v59_v42 = vld [vmem:[%s9645_s0 + $0x58] sm:$0xff] }
  0x1d   :  { %5409 = vmatpush3.msra.mxu0 %v82_v28  ;;  %v56_v41 = vld [vmem:[%s9645_s0 + $0x40] sm:$0xff]  ;;  %v58_v43 = vld [vmem:[%s9645_s0 + $0x50] sm:$0xff]  ;;  %v61_v44 = vld [vmem:[%s9645_s0 + $0x68] sm:$0xff] }
  0x1e   :  { %5410 = vmatprep.subr.mxu0 %v97_v29  ;;  %v60_v45 = vld [vmem:[%s9645_s0 + $0x60] sm:$0xff]  ;;  %v63_v46 = vld [vmem:[%s9645_s0 + $0x78] sm:$0xff]  ;;  %v62_v47 = vld [vmem:[%s9645_s0 + $0x70] sm:$0xff] }
  0x1f   :  { %5411 = vmatpush3.msra.mxu0 %v81_v30  ;;  %v65_v48 = vld [vmem:[%s9645_s0 + $0x88] sm:$0xff]  ;;  %v64_v49 = vld [vmem:[%s9645_s0 + $0x80] sm:$0xff]  ;;  %v67_v50 = vld [vmem:[%s9645_s0 + $0x98] sm:$0xff] }
  0x20   :  { %5412 = vmatprep.subr.mxu0 %v96_v31  ;;  %v66_v51 = vld [vmem:[%s9645_s0 + $0x90] sm:$0xff]  ;;  %v69_v52 = vld [vmem:[%s9645_s0 + $0xa8] sm:$0xff]  ;;  %v68_v53 = vld [vmem:[%s9645_s0 + $0xa0] sm:$0xff] }
  0x21   :  { %5413 = vmatpush3.msra.mxu0 %v80_v32  ;;  %v71_v54 = vld [vmem:[%s9645_s0 + $0xb8] sm:$0xff]  ;;  %v70_v55 = vld [vmem:[%s9645_s0 + $0xb0] sm:$0xff]  ;;  %v73_v56 = vld [vmem:[%s9645_s0 + $0xc8] sm:$0xff] }
  0x22   :  { %184 = vmatmul.mubr.f32.vlgmr.msra.gmra.mxu0 %v48_v33  ;;  %v72_v57 = vld [vmem:[%s9645_s0 + $0xc0] sm:$0xff]  ;;  %v75_v58 = vld [vmem:[%s9645_s0 + $0xd8] sm:$0xff]  ;;  %v74_v59 = vld [vmem:[%s9645_s0 + $0xd0] sm:$0xff]  ;;  %6183 = vmatprep.subr.mxu0 %v7277_v0 }
  0x23   :  { %188 = vmatprep.mubr.f32.mxu0 %v51_v34  ;;  %v77_v60 = vld [vmem:[%s9645_s0 + $0xe8] sm:$0xff]  ;;  %v76_v61 = vld [vmem:[%s9645_s0 + $0xe0] sm:$0xff]  ;;  %v79_v62 = vld [vmem:[%s9645_s0 + $0xf8] sm:$0xff] }
  0x24   :  { %v78_v63 = vld [vmem:[%s9645_s0 + $0xf0] sm:$0xff] }
  0x26   :  { %189 = vmatmul.mubr.f32.gmra.mxu0 %v50_v35 }
  0x27   :  { %193 = vmatprep.mubr.f32.mxu0 %v53_v36  ;;  %v7580_v36 = vld [vmem:[%s9647_s2] ss:$0 sm:$0xff] }
  0x2a   :  { %194 = vmatmul.mubr.f32.gmra.mxu0 %v52_v37 }
  0x2b   :  { %198 = vmatprep.mubr.f32.mxu0 %v55_v38 }
  0x2e   :  { %199 = vmatmul.mubr.f32.gmra.mxu0 %v54_v39 }
  0x2f   :  { %203 = vmatprep.mubr.f32.mxu0 %v57_v40 }
  0x32   :  { %204 = vmatmul.mubr.f32.gmra.mxu0 %v56_v41 }
  0x33   :  { %208 = vmatprep.mubr.f32.mxu0 %v59_v42 }
  0x36   :  { %209 = vmatmul.mubr.f32.gmra.mxu0 %v58_v43 }
  0x37   :  { %213 = vmatprep.mubr.f32.mxu0 %v61_v44 }
  0x3a   :  { %214 = vmatmul.mubr.f32.gmra.mxu0 %v60_v45 }
  0x3b   :  { %218 = vmatprep.mubr.f32.mxu0 %v63_v46 }
  0x3e   :  { %219 = vmatmul.mubr.f32.gmra.mxu0 %v62_v47 }
  0x3f   :  { %223 = vmatprep.mubr.f32.mxu0 %v65_v48 }
  0x42   :  { %224 = vmatmul.mubr.f32.gmra.mxu0 %v64_v49 }
  0x43   :  { %228 = vmatprep.mubr.f32.mxu0 %v67_v50 }
  0x46   :  { %229 = vmatmul.mubr.f32.gmra.mxu0 %v66_v51 }
  0x47   :  { %233 = vmatprep.mubr.f32.mxu0 %v69_v52 }
  0x4a   :  { %234 = vmatmul.mubr.f32.gmra.mxu0 %v68_v53 }
  0x4b   :  { %238 = vmatprep.mubr.f32.mxu0 %v71_v54 }
  0x4e   :  { %239 = vmatmul.mubr.f32.gmra.mxu0 %v70_v55 }
  0x4f   :  { %243 = vmatprep.mubr.f32.mxu0 %v73_v56 }
  0x52   :  { %244 = vmatmul.mubr.f32.gmra.mxu0 %v72_v57 }
  0x53   :  { %248 = vmatprep.mubr.f32.mxu0 %v75_v58 }
  0x56   :  { %249 = vmatmul.mubr.f32.gmra.mxu0 %v74_v59 }
  0x57   :  { %253 = vmatprep.mubr.f32.mxu0 %v77_v60 }
  0x5a   :  { %254 = vmatmul.mubr.f32.gmra.mxu0 %v76_v61 }
  0x5b   :  { %258 = vmatprep.mubr.f32.mxu0 %v79_v62 }
  0x5e   :  { %259 = vmatmul.mubr.f32.gmra.mxu0 %v78_v63 }
  0x5f   :  { %6215 = vmatprep.mubr.msk.f32.mxu0 %vm7278_vm0, %v7277_v0 }
  0xe2   :  { %v7553_v1 = vpop.f32.mrf.mxu0 }
  0xe4   :  { %v7555_v2 = vpop.f32.mrf.mxu0 }
  0xe6   :  { %v7557_v3 = vpop.f32.mrf.mxu0 }
  0xe8   :  { %v7559_v4 = vpop.f32.mrf.mxu0 }
  0xea   :  { %v7561_v5 = vpop.f32.mrf.mxu0 }
  0xec   :  { %v7563_v6 = vpop.f32.mrf.mxu0 }
  0xee   :  { %v7565_v7 = vpop.f32.mrf.mxu0 }
  0xf0   :  { %v7567_v8 = vpop.f32.mrf.mxu0 }
  0xf2   :  { %v7569_v9 = vpop.f32.mrf.mxu0 }
  0xf4   :  { %v7571_v10 = vpop.f32.mrf.mxu0 }
  0xf5   :  { %v5428_v61 = vadd.f32 %v7571_v10, %v7569_v9  ;;  %v5422_v9 = vadd.f32 %v7563_v6, %v7561_v5  ;;  %v5416_v5 = vadd.f32 %v7555_v2, %v7553_v1 }
  0xf6   :  { %v7573_v11 = vpop.f32.mrf.mxu0 }
  0xf7   :  { %v206_v10 = vadd.f32 %v5428_v61, %v7580_v36  ;;  %v196_v6 = vadd.f32 %v5422_v9, %v7580_v36  ;;  %v186_v1 = vadd.f32 %v5416_v5, %v7580_v36  ;;  %v5142_v9 = vld [vmem:[%s9649_s4 + $0x58] sm:$0xff]  ;;  %v5140_v5 = vld [vmem:[%s9649_s4 + $0x48] sm:$0xff] }
  0xf8   :  { %v7575_v12 = vpop.f32.mrf.mxu0 }
  0xf9   :  { %v5431_v58 = vadd.f32 %v7575_v12, %v7573_v11  ;;  %v5425_v11 = vadd.f32 %v7567_v8, %v7565_v7  ;;  %v5419_v7 = vadd.f32 %v7559_v4, %v7557_v3  ;;  %v7684_v2 = vmax.f32 %v196_v6, 0.0 }
  0xfa   :  { %v5432_v13 = vpop.f32.mrf.mxu0 }
  0xfb   :  { %v211_v12 = vadd.f32 %v5431_v58, %v7580_v36  ;;  %v201_v8 = vadd.f32 %v5425_v11, %v7580_v36  ;;  %v191_v3 = vadd.f32 %v5419_v7, %v7580_v36  ;;  %v5141_v7 = vld [vmem:[%s9649_s4 + $0x50] sm:$0xff] }
  0xfc   :  { %v5433_v14 = vpop.f32.mrf.mxu0 }
  0xfd   :  { %v5434_v55 = vadd.f32 %v5433_v14, %v5432_v13  ;;  %v7677_v4 = vmax.f32 %v201_v8, 0.0 }
  0xfe   :  { %v5435_v15 = vpop.f32.mrf.mxu0 }
  0xff   :  { %v216_v62 = vadd.f32 %v5434_v55, %v7580_v36 }
 0x100   :  { %v5436_v16 = vpop.f32.mrf.mxu0 }
 0x101   :  { %v5437_v52 = vadd.f32 %v5436_v16, %v5435_v15  ;;  %v7652_v14 = vmax.f32 %v216_v62, 0.0  ;;  %v7661_v15 = vmax.f32 %v211_v12, 0.0  ;;  %v7670_v16 = vmax.f32 %v206_v10, 0.0 }
 0x102   :  { %v5438_v17 = vpop.f32.mrf.mxu0 }
 0x103   :  { %v221_v59 = vadd.f32 %v5437_v52, %v7580_v36  ;;  %v364_v52 = vld [vmem:[%s9649_s4 + $0x8] sm:$0xff] }
 0x104   :  { %v5439_v18 = vpop.f32.mrf.mxu0 }
 0x105   :  { %v5440_v49 = vadd.f32 %v5439_v18, %v5438_v17  ;;  %v7643_v13 = vmax.f32 %v221_v59, 0.0  ;;  %v7690_v17 = vmax.f32 %v191_v3, 0.0  ;;  %v7696_v18 = vmax.f32 %v186_v1, 0.0  ;;  %v5139_v3 = vld [vmem:[%s9649_s4 + $0x40] sm:$0xff] }
 0x106   :  { %v5441_v19 = vpop.f32.mrf.mxu0 }
 0x107   :  { %v226_v56 = vadd.f32 %v5440_v49, %v7580_v36 }
 0x108   :  { %v5442_v20 = vpop.f32.mrf.mxu0 }
 0x109   :  { %v5443_v46 = vadd.f32 %v5442_v20, %v5441_v19  ;;  %v7634_v63 = vmax.f32 %v226_v56, 0.0  ;;  %v280_v19 = vld [vmem:[%s9648_s3] sm:$0xff]  ;;  %v5136_v20 = vld [vmem:[%s9648_s3 + $0x30] sm:$0xff] }
 0x10a   :  { %v5444_v21 = vpop.f32.mrf.mxu0  ;;  %v363_v56 = vld [vmem:[%s9649_s4] sm:$0xff] }
 0x10b   :  { %v231_v53 = vadd.f32 %v5443_v46, %v7580_v36 }
 0x10c   :  { %v5445_v22 = vpop.f32.mrf.mxu0 }
 0x10d   :  { %v5446_v43 = vadd.f32 %v5445_v22, %v5444_v21  ;;  %v7625_v60 = vmax.f32 %v231_v53, 0.0  ;;  %v281_v21 = vld [vmem:[%s9648_s3 + $0x8] sm:$0xff]  ;;  %v282_v22 = vld [vmem:[%s9648_s3 + $0x10] sm:$0x3] }
 0x10e   :  { %v5447_v23 = vpop.f32.mrf.mxu0 }
 0x10f   :  { %v236_v50 = vadd.f32 %v5446_v43, %v7580_v36 }
 0x110   :  { %v5448_v24 = vpop.f32.mrf.mxu0 }
 0x111   :  { %v5449_v40 = vadd.f32 %v5448_v24, %v5447_v23  ;;  %v7616_v57 = vmax.f32 %v236_v50, 0.0  ;;  %v5123_v23 = vld [vmem:[%s9648_s3 + $0x18] sm:$0xff] }
 0x112   :  { %v5450_v25 = vpop.f32.mrf.mxu0  ;;  %v5137_v24 = vld [vmem:[%s9648_s3 + $0x38] sm:$0xff] }
 0x113   :  { %v241_v47 = vadd.f32 %v5449_v40, %v7580_v36 }
 0x114   :  { %v5451_v26 = vpop.f32.mrf.mxu0 }
 0x115   :  { %v5452_v37 = vadd.f32 %v5451_v26, %v5450_v25  ;;  %v7609_v54 = vmax.f32 %v241_v47, 0.0  ;;  %v5124_v25 = vld [vmem:[%s9648_s3 + $0x20] sm:$0xff]  ;;  %v365_v47 = vld [vmem:[%s9649_s4 + $0x10] sm:$0xff] }
 0x116   :  { %v5453_v27 = vpop.f32.mrf.mxu0  ;;  %v5138_v26 = vld [vmem:[%s9648_s3 + $0x40] sm:$0x3] }
 0x117   :  { %v246_v44 = vadd.f32 %v5452_v37, %v7580_v36 }
 0x118   :  { %v5454_v28 = vpop.f32.mrf.mxu0 }
 0x119   :  { %v5455_v34 = vadd.f32 %v5454_v28, %v5453_v27  ;;  %v7602_v51 = vmax.f32 %v246_v44, 0.0  ;;  %v5125_v27 = vld [vmem:[%s9648_s3 + $0x28] sm:$0x3]  ;;  %v366_v44 = vld [vmem:[%s9649_s4 + $0x18] sm:$0xff] }
 0x11a   :  { %v5456_v29 = vpop.f32.mrf.mxu0  ;;  %v5146_v28 = vld [vmem:[%s9648_s3 + $0x48] sm:$0xff] }
 0x11b   :  { %v251_v41 = vadd.f32 %v5455_v34, %v7580_v36  ;;  %v5126_v34 = vld [vmem:[%s9649_s4 + $0x20] sm:$0xff] }
 0x11c   :  { %v5457_v30 = vpop.f32.mrf.mxu0 }
 0x11d   :  { %v5458_v32 = vadd.f32 %v5457_v30, %v5456_v29  ;;  %v7595_v48 = vmax.f32 %v251_v41, 0.0  ;;  %v5147_v29 = vld [vmem:[%s9648_s3 + $0x50] sm:$0xff]  ;;  %v5148_v30 = vld [vmem:[%s9648_s3 + $0x58] sm:$0x3] }
 0x11e   :  { %v5459_v31 = vpop.f32.mrf.mxu0 }
 0x11f   :  { %v256_v38 = vadd.f32 %v5458_v32, %v7580_v36  ;;  %v5128_v32 = vld [vmem:[%s9649_s4 + $0x30] sm:$0xff] }
 0x120   :  { %v5460_v33 = vpop.f32.mrf.mxu0 }
 0x121   :  { %v5461_v35 = vadd.f32 %v5460_v33, %v5459_v31  ;;  %v7588_v45 = vmax.f32 %v256_v38, 0.0  ;;  %v5129_v31 = vld [vmem:[%s9649_s4 + $0x38] sm:$0xff]  ;;  %v5127_v33 = vld [vmem:[%s9649_s4 + $0x28] sm:$0xff] }
 0x123   :  { %v261_v39 = vadd.f32 %v5461_v35, %v7580_v36 }
 0x125   :  { %v7585_v42 = vmax.f32 %v261_v39, 0.0 }
 0x127   :  { %6068 = vmatpush3.msra.mxu1 %v7585_v42  ;;  %6184 = vmatpush3.msra.mxu0 %v7585_v42 }
 0x128   :  { %6069 = vmatprep.subr.mxu1 %v7277_v0  ;;  %6185 = vmatprep.subr.mxu0 %v7277_v0 }
 0x129   :  { %6070 = vmatpush3.msra.mxu1 %v7588_v45  ;;  %6186 = vmatpush3.msra.mxu0 %v7588_v45 }
 0x12a   :  { %6071 = vmatprep.subr.mxu1 %v7277_v0  ;;  %6187 = vmatprep.subr.mxu0 %v7277_v0 }
 0x12b   :  { %6072 = vmatpush3.msra.mxu1 %v7595_v48  ;;  %6188 = vmatpush3.msra.mxu0 %v7595_v48 }
 0x12c   :  { %6073 = vmatprep.subr.mxu1 %v7277_v0  ;;  %6189 = vmatprep.subr.mxu0 %v7277_v0 }
 0x12d   :  { %6074 = vmatpush3.msra.mxu1 %v7602_v51  ;;  %6190 = vmatpush3.msra.mxu0 %v7602_v51 }
 0x12e   :  { %6075 = vmatprep.subr.mxu1 %v7277_v0  ;;  %6191 = vmatprep.subr.mxu0 %v7277_v0 }
 0x12f   :  { %6076 = vmatpush3.msra.mxu1 %v7609_v54  ;;  %6192 = vmatpush3.msra.mxu0 %v7609_v54 }
 0x130   :  { %6077 = vmatprep.subr.mxu1 %v7277_v0  ;;  %6193 = vmatprep.subr.mxu0 %v7277_v0 }
 0x131   :  { %6078 = vmatpush3.msra.mxu1 %v7616_v57  ;;  %6194 = vmatpush3.msra.mxu0 %v7616_v57 }
 0x132   :  { %6079 = vmatprep.subr.mxu1 %v7277_v0  ;;  %6195 = vmatprep.subr.mxu0 %v7277_v0 }
 0x133   :  { %6080 = vmatpush3.msra.mxu1 %v7625_v60  ;;  %6196 = vmatpush3.msra.mxu0 %v7625_v60 }
 0x134   :  { %6081 = vmatprep.subr.mxu1 %v7277_v0  ;;  %6197 = vmatprep.subr.mxu0 %v7277_v0 }
 0x135   :  { %6082 = vmatpush3.msra.mxu1 %v7634_v63  ;;  %6198 = vmatpush3.msra.mxu0 %v7634_v63 }
 0x136   :  { %6083 = vmatprep.subr.mxu1 %v7277_v0  ;;  %6199 = vmatprep.subr.mxu0 %v7277_v0 }
 0x137   :  { %6084 = vmatpush3.msra.mxu1 %v7643_v13  ;;  %6200 = vmatpush3.msra.mxu0 %v7643_v13 }
 0x138   :  { %6085 = vmatprep.subr.mxu1 %v7277_v0  ;;  %6201 = vmatprep.subr.mxu0 %v7277_v0 }
 0x139   :  { %6086 = vmatpush3.msra.mxu1 %v7652_v14  ;;  %6202 = vmatpush3.msra.mxu0 %v7652_v14 }
 0x13a   :  { %6087 = vmatprep.subr.mxu1 %v7277_v0  ;;  %6203 = vmatprep.subr.mxu0 %v7277_v0 }
 0x13b   :  { %6088 = vmatpush3.msra.mxu1 %v7661_v15  ;;  %6204 = vmatpush3.msra.mxu0 %v7661_v15 }
 0x13c   :  { %6089 = vmatprep.subr.mxu1 %v7277_v0  ;;  %6205 = vmatprep.subr.mxu0 %v7277_v0 }
 0x13d   :  { %6090 = vmatpush3.msra.mxu1 %v7670_v16  ;;  %6206 = vmatpush3.msra.mxu0 %v7670_v16 }
 0x13e   :  { %6091 = vmatprep.subr.mxu1 %v7277_v0  ;;  %6207 = vmatprep.subr.mxu0 %v7277_v0 }
 0x13f   :  { %6092 = vmatpush3.msra.mxu1 %v7677_v4  ;;  %6208 = vmatpush3.msra.mxu0 %v7677_v4 }
 0x140   :  { %6093 = vmatprep.subr.mxu1 %v7277_v0  ;;  %6209 = vmatprep.subr.mxu0 %v7277_v0 }
 0x141   :  { %6094 = vmatpush3.msra.mxu1 %v7684_v2  ;;  %6210 = vmatpush3.msra.mxu0 %v7684_v2 }
 0x142   :  { %6095 = vmatprep.subr.mxu1 %v7277_v0  ;;  %6211 = vmatprep.subr.mxu0 %v7277_v0 }
 0x143   :  { %6096 = vmatpush3.msra.mxu1 %v7690_v17  ;;  %6212 = vmatpush3.msra.mxu0 %v7690_v17 }
 0x144   :  { %6097 = vmatprep.subr.mxu1 %v7277_v0  ;;  %6213 = vmatprep.subr.mxu0 %v7277_v0 }
 0x145   :  { %6098 = vmatpush3.msra.mxu1 %v7696_v18  ;;  %6214 = vmatpush3.msra.mxu0 %v7696_v18 }
 0x146   :  { %6100 = vmatmul.mubr.f32.vlgmr.msra.gmra.mxu1 %v280_v19  ;;  %6108 = vmatprep.subr.mxu1 %v7277_v0 }
 0x147   :  { %6241 = vmatprep.subr.mxu0 %v7277_v0  ;;  %6109 = vmatpush3.msra.mxu1 %v7585_v42 }
 0x148   :  { %6216 = vmatmul.mubr.f32.vlgmr.msra.gmra.mxu0 %v5136_v20  ;;  %6110 = vmatprep.subr.mxu1 %v7277_v0  ;;  %v5152_v20 = vld [vmem:[%s9649_s4 + $0x78] sm:$0xff] }
 0x149   :  { %6242 = vmatpush3.msra.mxu0 %v7585_v42  ;;  %6111 = vmatpush3.msra.mxu1 %v7588_v45 }
 0x14a   :  { %6243 = vmatprep.subr.mxu0 %v7277_v0  ;;  %6112 = vmatprep.subr.mxu1 %v7277_v0 }
 0x14b   :  { %6244 = vmatpush3.msra.mxu0 %v7588_v45  ;;  %6113 = vmatpush3.msra.mxu1 %v7595_v48 }
 0x14c   :  { %6245 = vmatprep.subr.mxu0 %v7277_v0  ;;  %6114 = vmatprep.subr.mxu1 %v7277_v0 }
 0x14d   :  { %6246 = vmatpush3.msra.mxu0 %v7595_v48  ;;  %6115 = vmatpush3.msra.mxu1 %v7602_v51 }
 0x14e   :  { %6247 = vmatprep.subr.mxu0 %v7277_v0  ;;  %6116 = vmatprep.subr.mxu1 %v7277_v0 }
 0x14f   :  { %6248 = vmatpush3.msra.mxu0 %v7602_v51  ;;  %6117 = vmatpush3.msra.mxu1 %v7609_v54 }
 0x150   :  { %6249 = vmatprep.subr.mxu0 %v7277_v0  ;;  %6118 = vmatprep.subr.mxu1 %v7277_v0 }
 0x151   :  { %6250 = vmatpush3.msra.mxu0 %v7609_v54  ;;  %6119 = vmatpush3.msra.mxu1 %v7616_v57 }
 0x152   :  { %6251 = vmatprep.subr.mxu0 %v7277_v0  ;;  %6120 = vmatprep.subr.mxu1 %v7277_v0 }
 0x153   :  { %6252 = vmatpush3.msra.mxu0 %v7616_v57  ;;  %6121 = vmatpush3.msra.mxu1 %v7625_v60 }
 0x154   :  { %6253 = vmatprep.subr.mxu0 %v7277_v0  ;;  %6122 = vmatprep.subr.mxu1 %v7277_v0 }
 0x155   :  { %6254 = vmatpush3.msra.mxu0 %v7625_v60  ;;  %6123 = vmatpush3.msra.mxu1 %v7634_v63 }
 0x156   :  { %6255 = vmatprep.subr.mxu0 %v7277_v0  ;;  %6124 = vmatprep.subr.mxu1 %v7277_v0 }
 0x157   :  { %6256 = vmatpush3.msra.mxu0 %v7634_v63  ;;  %6125 = vmatpush3.msra.mxu1 %v7643_v13 }
 0x158   :  { %6257 = vmatprep.subr.mxu0 %v7277_v0  ;;  %6126 = vmatprep.subr.mxu1 %v7277_v0 }
 0x159   :  { %6258 = vmatpush3.msra.mxu0 %v7643_v13  ;;  %6127 = vmatpush3.msra.mxu1 %v7652_v14 }
 0x15a   :  { %6259 = vmatprep.subr.mxu0 %v7277_v0  ;;  %6128 = vmatprep.subr.mxu1 %v7277_v0 }
 0x15b   :  { %6260 = vmatpush3.msra.mxu0 %v7652_v14  ;;  %6102 = vmatprep.mubr.msk.f32.mxu1 %vm7278_vm0, %v7277_v0 }
 0x15c   :  { %6261 = vmatprep.subr.mxu0 %v7277_v0  ;;  %6129 = vmatpush3.msra.mxu1 %v7661_v15 }
 0x15d   :  { %6262 = vmatpush3.msra.mxu0 %v7661_v15  ;;  %6103 = vmatmul.mubr.f32.gmra.mxu1 %v281_v21  ;;  %v5151_v21 = vld [vmem:[%s9649_s4 + $0x70] sm:$0xff] }
 0x15e   :  { %6130 = vmatprep.subr.mxu1 %v7277_v0  ;;  %6263 = vmatprep.subr.mxu0 %v7277_v0 }
 0x15f   :  { %6131 = vmatpush3.msra.mxu1 %v7670_v16  ;;  %6264 = vmatpush3.msra.mxu0 %v7670_v16 }
 0x160   :  { %6132 = vmatprep.subr.mxu1 %v7277_v0  ;;  %6265 = vmatprep.subr.mxu0 %v7277_v0 }
 0x161   :  { %6105 = vmatprep.mubr.msk.f32.mxu1 %vm7278_vm0, %v7277_v0  ;;  %6133 = vmatpush3.msra.mxu1 %v7677_v4 }
 0x162   :  { %6266 = vmatpush3.msra.mxu0 %v7677_v4  ;;  %6106 = vmatmul.mubr.f32.gmra.mxu1 %v282_v22  ;;  %v5150_v22 = vld [vmem:[%s9649_s4 + $0x68] sm:$0xff] }
 0x163   :  { %6134 = vmatprep.subr.mxu1 %v7277_v0  ;;  %6267 = vmatprep.subr.mxu0 %v7277_v0 }
 0x164   :  { %6135 = vmatpush3.msra.mxu1 %v7684_v2  ;;  %6268 = vmatpush3.msra.mxu0 %v7684_v2 }
 0x165   :  { %6136 = vmatprep.subr.mxu1 %v7277_v0  ;;  %6269 = vmatprep.subr.mxu0 %v7277_v0 }
 0x166   :  { %6137 = vmatpush3.msra.mxu1 %v7690_v17  ;;  %6270 = vmatpush3.msra.mxu0 %v7690_v17 }
 0x167   :  { %6138 = vmatprep.subr.mxu1 %v7277_v0  ;;  %6271 = vmatprep.subr.mxu0 %v7277_v0 }
 0x168   :  { %6139 = vmatpush3.msra.mxu1 %v7696_v18  ;;  %6140 = vmatprep.mubr.msk.f32.mxu1 %vm7278_vm0, %v7277_v0 }
 0x169   :  { %6272 = vmatpush3.msra.mxu0 %v7696_v18  ;;  %6141 = vmatmul.mubr.f32.vlgmr.msra.gmra.mxu1 %v5123_v23  ;;  %v5149_v23 = vld [vmem:[%s9649_s4 + $0x60] sm:$0xff] }
 0x16a   :  { %6143 = vmatprep.mubr.msk.f32.mxu1 %vm7278_vm0, %v7277_v0  ;;  %6218 = vmatprep.mubr.msk.f32.mxu0 %vm7278_vm0, %v7277_v0 }
 0x16b   :  { %6219 = vmatmul.mubr.f32.gmra.mxu0 %v5137_v24  ;;  %6149 = vmatprep.subr.mxu1 %v7277_v0  ;;  %v5156_v24 = vld [vmem:[%s9648_s3 + $0x60] sm:$0xff] }
 0x16c   :  { %6221 = vmatprep.mubr.msk.f32.mxu0 %vm7278_vm0, %v7277_v0  ;;  %6340 = vmatprep.subr.mxu0 %v7277_v0 }
 0x16d   :  { %6144 = vmatmul.mubr.f32.gmra.mxu1 %v5124_v25  ;;  %v5157_v25 = vld [vmem:[%s9648_s3 + $0x68] sm:$0xff] }
 0x16e   :  { %6146 = vmatprep.mubr.msk.f32.mxu1 %vm7278_vm0, %v7277_v0  ;;  %6150 = vmatpush3.msra.mxu1 %v5129_v31 }
 0x16f   :  { %6222 = vmatmul.mubr.f32.gmra.mxu0 %v5138_v26  ;;  %6151 = vmatprep.subr.mxu1 %v7277_v0  ;;  %v5158_v26 = vld [vmem:[%s9648_s3 + $0x70] sm:$0x3] }
 0x170   :  { %6273 = vmatprep.mubr.msk.f32.mxu0 %vm7278_vm0, %v7277_v0  ;;  %6152 = vmatpush3.msra.mxu1 %v5128_v32 }
 0x171   :  { %6147 = vmatmul.mubr.f32.gmra.mxu1 %v5125_v27  ;;  %6153 = vmatprep.subr.mxu1 %v7277_v0  ;;  %v5162_v27 = vld [vmem:[%s9649_s4 + $0x98] sm:$0xff] }
 0x172   :  { %6157 = vmatprep.mubr.msk.f32.mxu1 %vm7278_vm0, %v7277_v0  ;;  %6154 = vmatpush3.msra.mxu1 %v5127_v33 }
 0x173   :  { %6274 = vmatmul.mubr.f32.vlgmr.msra.gmra.mxu0 %v5146_v28  ;;  %6155 = vmatprep.subr.mxu1 %v7277_v0  ;;  %v5161_v28 = vld [vmem:[%s9649_s4 + $0x90] sm:$0xff] }
 0x174   :  { %6276 = vmatprep.mubr.msk.f32.mxu0 %vm7278_vm0, %v7277_v0  ;;  %6156 = vmatpush3.msra.mxu1 %v5126_v34 }
 0x175   :  { %6166 = vmatprep.subr.mxu1 %v7277_v0  ;;  %6341 = vmatpush3.msra.mxu0 %v5162_v27  ;;  %v5171_v27 = vld [vmem:[%s9649_s4 + $0xb0] sm:$0xff] }
 0x176   :  { %6342 = vmatprep.subr.mxu0 %v7277_v0 }
 0x177   :  { %6277 = vmatmul.mubr.f32.gmra.mxu0 %v5147_v29  ;;  %v5160_v29 = vld [vmem:[%s9649_s4 + $0x88] sm:$0xff] }
 0x178   :  { %6279 = vmatprep.mubr.msk.f32.mxu0 %vm7278_vm0, %v7277_v0  ;;  %6343 = vmatpush3.msra.mxu0 %v5161_v28  ;;  %v5170_v28 = vld [vmem:[%s9649_s4 + $0xa8] sm:$0xff] }
 0x179   :  { %6344 = vmatprep.subr.mxu0 %v7277_v0 }
 0x17a   :  { %6345 = vmatpush3.msra.mxu0 %v5160_v29  ;;  %v5169_v29 = vld [vmem:[%s9649_s4 + $0xa0] sm:$0xff] }
 0x17b   :  { %6280 = vmatmul.mubr.f32.gmra.mxu0 %v5148_v30  ;;  %v5159_v30 = vld [vmem:[%s9649_s4 + $0x80] sm:$0xff]  ;;  %6346 = vmatprep.subr.mxu0 %v7277_v0 }
 0x17c   :  { %6348 = vmatprep.mubr.msk.f32.mxu0 %vm7278_vm0, %v7277_v0  ;;  %6347 = vmatpush3.msra.mxu0 %v5159_v30 }
 0x17d   :  { %6357 = vmatprep.subr.mxu0 %v7277_v0 }
 0x206   :  { %v349_v35 = vpop.f32.mrf.mxu1 }
 0x208   :  { %v6101_v36 = vpop.f32.mrf.mxu1  ;;  %v705_v37 = vpop.f32.mrf.mxu0 }
 0x20a   :  { %v6217_v38 = vpop.f32.mrf.mxu0 }
 0x21d   :  { %v354_v39 = vpop.f32.mrf.mxu1 }
 0x21f   :  { %v6104_v40 = vpop.f32.mrf.mxu1 }
 0x222   :  { %v359_v41 = vpop.f32.mrf.mxu1 }
 0x224   :  { %v6107_v43 = vpop.f32.mrf.mxu1 }
 0x229   :  { %v437_v46 = vpop.f32.mrf.mxu1 }
 0x22a   :  { %6158 = vmatmul.mubr.msk.f32.vlgmr.msra.gmra.mxu1 %vm456_vm1, %v437_v46 }
 0x22b   :  { %v6142_v49 = vpop.f32.mrf.mxu1  ;;  %6160 = vmatprep.mubr.msk.f32.mxu1 %vm7278_vm0, %v7277_v0  ;;  %6167 = vmatpush3.msra.mxu1 %v366_v44  ;;  %v710_v50 = vpop.f32.mrf.mxu0 }
 0x22c   :  { %6168 = vmatprep.subr.mxu1 %v7277_v0 }
 0x22d   :  { %v442_v53 = vpop.f32.mrf.mxu1  ;;  %6169 = vmatpush3.msra.mxu1 %v365_v47  ;;  %v6220_v55 = vpop.f32.mrf.mxu0 }
 0x22e   :  { %6161 = vmatmul.mubr.msk.f32.gmra.mxu1 %vm456_vm1, %v442_v53  ;;  %6170 = vmatprep.subr.mxu1 %v7277_v0 }
 0x22f   :  { %v6145_v58 = vpop.f32.mrf.mxu1  ;;  %6163 = vmatprep.mubr.msk.f32.mxu1 %vm7278_vm0, %v7277_v0  ;;  %6171 = vmatpush3.msra.mxu1 %v364_v52  ;;  %v715_v59 = vpop.f32.mrf.mxu0 }
 0x230   :  { %6172 = vmatprep.subr.mxu1 %v7277_v0 }
 0x231   :  { %v447_v61 = vpop.f32.mrf.mxu1  ;;  %6173 = vmatpush3.msra.mxu1 %v363_v56  ;;  %v6223_v62 = vpop.f32.mrf.mxu0 }
 0x232   :  { %6164 = vmatmul.mubr.msk.f32.gmra.mxu1 %vm456_vm1, %v447_v61  ;;  %6224 = vmatprep.subr.mxu1 %v7277_v0 }
 0x233   :  { %v6148_v11 = vpop.f32.mrf.mxu1  ;;  %6174 = vmatprep.mubr.msk.f32.mxu1 %vm7278_vm0, %v7277_v0  ;;  %v886_v12 = vpop.f32.mrf.mxu0 }
 0x235   :  { %v6275_v10 = vpop.f32.mrf.mxu0 }
 0x236   :  { %6175 = vmatmul.mubr.msk.f32.vlgmr.msra.gmra.mxu1 %vm456_vm1, %v349_v35 }
 0x237   :  { %6177 = vmatprep.mubr.msk.f32.mxu1 %vm7278_vm0, %v7277_v0  ;;  %6225 = vmatpush3.msra.mxu1 %v5142_v9  ;;  %v891_v8 = vpop.f32.mrf.mxu0 }
 0x238   :  { %6226 = vmatprep.subr.mxu1 %v7277_v0 }
 0x239   :  { %6227 = vmatpush3.msra.mxu1 %v5141_v7  ;;  %v6278_v6 = vpop.f32.mrf.mxu0 }
 0x23a   :  { %6178 = vmatmul.mubr.msk.f32.gmra.mxu1 %vm456_vm1, %v354_v39  ;;  %6228 = vmatprep.subr.mxu1 %v7277_v0 }
 0x23b   :  { %6180 = vmatprep.mubr.msk.f32.mxu1 %vm7278_vm0, %v7277_v0  ;;  %6229 = vmatpush3.msra.mxu1 %v5140_v5  ;;  %v896_v1 = vpop.f32.mrf.mxu0 }
 0x23c   :  { %6230 = vmatprep.subr.mxu1 %v7277_v0 }
 0x23d   :  { %6231 = vmatpush3.msra.mxu1 %v5139_v3  ;;  %v6281_v19 = vpop.f32.mrf.mxu0 }
 0x23e   :  { %6181 = vmatmul.mubr.msk.f32.gmra.mxu1 %vm456_vm1, %v359_v41  ;;  %6282 = vmatprep.subr.mxu1 %v7277_v0 }
 0x23f   :  { %6232 = vmatprep.mubr.msk.f32.mxu1 %vm7278_vm0, %v7277_v0 }
 0x242   :  { %6233 = vmatmul.mubr.msk.f32.vlgmr.msra.gmra.mxu1 %vm456_vm1, %v705_v37 }
 0x243   :  { %6235 = vmatprep.mubr.msk.f32.mxu1 %vm7278_vm0, %v7277_v0  ;;  %6283 = vmatpush3.msra.mxu1 %v5152_v20 }
 0x244   :  { %6284 = vmatprep.subr.mxu1 %v7277_v0 }
 0x245   :  { %6285 = vmatpush3.msra.mxu1 %v5151_v21 }
 0x246   :  { %6236 = vmatmul.mubr.msk.f32.gmra.mxu1 %vm456_vm1, %v710_v50  ;;  %6286 = vmatprep.subr.mxu1 %v7277_v0 }
 0x247   :  { %6238 = vmatprep.mubr.msk.f32.mxu1 %vm7278_vm0, %v7277_v0  ;;  %6287 = vmatpush3.msra.mxu1 %v5150_v22 }
 0x248   :  { %6288 = vmatprep.subr.mxu1 %v7277_v0 }
 0x249   :  { %6289 = vmatpush3.msra.mxu1 %v5149_v23  ;;  %v5166_v23 = vld [vmem:[%s9648_s3 + $0x78] sm:$0xff] }
 0x24a   :  { %6239 = vmatmul.mubr.msk.f32.gmra.mxu1 %vm456_vm1, %v715_v59  ;;  %6299 = vmatprep.subr.mxu1 %v7277_v0 }
 0x24b   :  { %6290 = vmatprep.mubr.msk.f32.mxu1 %vm7278_vm0, %v7277_v0 }
 0x24e   :  { %6291 = vmatmul.mubr.msk.f32.vlgmr.msra.gmra.mxu1 %vm456_vm1, %v886_v12 }
 0x24f   :  { %6300 = vmatpush3.msra.mxu1 %v7585_v42  ;;  %6293 = vmatprep.mubr.msk.f32.mxu1 %vm7278_vm0, %v7277_v0 }
 0x250   :  { %6301 = vmatprep.subr.mxu1 %v7277_v0 }
 0x251   :  { %6302 = vmatpush3.msra.mxu1 %v7588_v45 }
 0x252   :  { %6303 = vmatprep.subr.mxu1 %v7277_v0  ;;  %6294 = vmatmul.mubr.msk.f32.gmra.mxu1 %vm456_vm1, %v891_v8 }
 0x253   :  { %6304 = vmatpush3.msra.mxu1 %v7595_v48  ;;  %6296 = vmatprep.mubr.msk.f32.mxu1 %vm7278_vm0, %v7277_v0 }
 0x254   :  { %6305 = vmatprep.subr.mxu1 %v7277_v0 }
 0x255   :  { %6306 = vmatpush3.msra.mxu1 %v7602_v51 }
 0x256   :  { %6307 = vmatprep.subr.mxu1 %v7277_v0  ;;  %6297 = vmatmul.mubr.msk.f32.gmra.mxu1 %vm456_vm1, %v896_v1 }
 0x257   :  { %6308 = vmatpush3.msra.mxu1 %v7609_v54  ;;  %6331 = vmatprep.mubr.msk.f32.mxu1 %vm7278_vm0, %v7277_v0 }
 0x258   :  { %6309 = vmatprep.subr.mxu1 %v7277_v0 }
 0x259   :  { %6310 = vmatpush3.msra.mxu1 %v7616_v57 }
 0x25a   :  { %6311 = vmatprep.subr.mxu1 %v7277_v0 }
 0x25b   :  { %6312 = vmatpush3.msra.mxu1 %v7625_v60 }
 0x25c   :  { %6313 = vmatprep.subr.mxu1 %v7277_v0 }
 0x25d   :  { %6314 = vmatpush3.msra.mxu1 %v7634_v63 }
 0x25e   :  { %6315 = vmatprep.subr.mxu1 %v7277_v0 }
 0x25f   :  { %6316 = vmatpush3.msra.mxu1 %v7643_v13 }
 0x260   :  { %6317 = vmatprep.subr.mxu1 %v7277_v0 }
 0x261   :  { %6318 = vmatpush3.msra.mxu1 %v7652_v14 }
 0x262   :  { %6319 = vmatprep.subr.mxu1 %v7277_v0 }
 0x263   :  { %6320 = vmatpush3.msra.mxu1 %v7661_v15 }
 0x264   :  { %6321 = vmatprep.subr.mxu1 %v7277_v0 }
 0x265   :  { %6322 = vmatpush3.msra.mxu1 %v7670_v16 }
 0x266   :  { %6323 = vmatprep.subr.mxu1 %v7277_v0 }
 0x267   :  { %6324 = vmatpush3.msra.mxu1 %v7677_v4 }
 0x268   :  { %6325 = vmatprep.subr.mxu1 %v7277_v0 }
 0x269   :  { %6326 = vmatpush3.msra.mxu1 %v7684_v2 }
 0x26a   :  { %6327 = vmatprep.subr.mxu1 %v7277_v0 }
 0x26b   :  { %6328 = vmatpush3.msra.mxu1 %v7690_v17 }
 0x26c   :  { %6329 = vmatprep.subr.mxu1 %v7277_v0 }
 0x26d   :  { %6330 = vmatpush3.msra.mxu1 %v7696_v18 }
 0x26e   :  { %6332 = vmatmul.mubr.f32.vlgmr.msra.gmra.mxu1 %v5156_v24  ;;  %6398 = vmatprep.subr.mxu1 %v7277_v0  ;;  %v5167_v24 = vld [vmem:[%s9648_s3 + $0x80] sm:$0xff] }
 0x26f   :  { %6334 = vmatprep.mubr.msk.f32.mxu1 %vm7278_vm0, %v7277_v0 }
 0x272   :  { %6335 = vmatmul.mubr.f32.gmra.mxu1 %v5157_v25  ;;  %v5168_v25 = vld [vmem:[%s9648_s3 + $0x88] sm:$0x3] }
 0x273   :  { %6337 = vmatprep.mubr.msk.f32.mxu1 %vm7278_vm0, %v7277_v0 }
 0x276   :  { %6338 = vmatmul.mubr.f32.gmra.mxu1 %v5158_v26  ;;  %v5172_v26 = vld [vmem:[%s9649_s4 + $0xb8] sm:$0xff] }
 0x277   :  { %6406 = vmatprep.mubr.msk.f32.mxu1 %vm7278_vm0, %v7277_v0  ;;  %6399 = vmatpush3.msra.mxu1 %v5172_v26  ;;  %v5189_v26 = vld [vmem:[%s9649_s4 + $0xe0] sm:$0xff] }
 0x278   :  { %6400 = vmatprep.subr.mxu1 %v7277_v0 }
 0x279   :  { %6401 = vmatpush3.msra.mxu1 %v5171_v27 }
 0x27a   :  { %6402 = vmatprep.subr.mxu1 %v7277_v0 }
 0x27b   :  { %6403 = vmatpush3.msra.mxu1 %v5170_v28 }
 0x27c   :  { %6404 = vmatprep.subr.mxu1 %v7277_v0 }
 0x27d   :  { %6405 = vmatpush3.msra.mxu1 %v5169_v29 }
 0x27e   :  { %6415 = vmatprep.subr.mxu1 %v7277_v0 }
 0x2ea   :  { %v532_v31 = vpop.f32.mrf.mxu1 }
 0x2ec   :  { %v6159_v32 = vpop.f32.mrf.mxu1 }
 0x2ee   :  { %v537_v33 = vpop.f32.mrf.mxu1 }
 0x2f0   :  { %v6162_v34 = vpop.f32.mrf.mxu1 }
 0x2f2   :  { %v542_v35 = vpop.f32.mrf.mxu1 }
 0x2f4   :  { %v6165_v36 = vpop.f32.mrf.mxu1 }
 0x2f6   :  { %v621_v37 = vpop.f32.mrf.mxu1 }
 0x2f7   :  { %v622_v38 = vadd.f32 %v621_v37, %v532_v31 }
 0x2f8   :  { %v6176_v39 = vpop.f32.mrf.mxu1 }
 0x2fa   :  { %v626_v40 = vpop.f32.mrf.mxu1 }
 0x2fb   :  { %v627_v41 = vadd.f32 %v626_v40, %v537_v33 }
 0x2fc   :  { %v6179_v43 = vpop.f32.mrf.mxu1 }
 0x2fe   :  { %v631_v44 = vpop.f32.mrf.mxu1 }
 0x2ff   :  { %v632_v46 = vadd.f32 %v631_v44, %v542_v35 }
 0x300   :  { %v6182_v47 = vpop.f32.mrf.mxu1 }
 0x301   :  { %v5176_v47 = vld [vmem:[%s9648_s3 + $0x90] sm:$0xff] }
 0x302   :  { %v799_v49 = vpop.f32.mrf.mxu1 }
 0x303   :  { %v813_v50 = vadd.f32 %v799_v49, %v622_v38  ;;  %v5177_v49 = vld [vmem:[%s9648_s3 + $0x98] sm:$0xff] }
 0x304   :  { %v6234_v52 = vpop.f32.mrf.mxu1 }
 0x305   :  { %v5182_v52 = vld [vmem:[%s9649_s4 + $0xd8] sm:$0xff] }
 0x306   :  { %v804_v53 = vpop.f32.mrf.mxu1 }
 0x307   :  { %v814_v55 = vadd.f32 %v804_v53, %v627_v41  ;;  %v5181_v53 = vld [vmem:[%s9649_s4 + $0xd0] sm:$0xff] }
 0x308   :  { %v6237_v56 = vpop.f32.mrf.mxu1 }
 0x309   :  { %v5179_v56 = vld [vmem:[%s9649_s4 + $0xc0] sm:$0xff] }
 0x30a   :  { %v809_v58 = vpop.f32.mrf.mxu1 }
 0x30b   :  { %v815_v59 = vadd.f32 %v809_v58, %v632_v46 }
 0x30c   :  { %v6240_v61 = vpop.f32.mrf.mxu1 }
 0x30e   :  { %v980_v62 = vpop.f32.mrf.mxu1 }
 0x30f   :  { %v7993_v11 = vadd.f32 %v980_v62, %v813_v50  ;;  %v5178_v50 = vld [vmem:[%s9648_s3 + $0xa0] sm:$0x3] }
 0x310   :  { %v6292_v12 = vpop.f32.mrf.mxu1 }
 0x312   :  { %v985_v9 = vpop.f32.mrf.mxu1 }
 0x313   :  { %v7995_v10 = vadd.f32 %v985_v9, %v814_v55  ;;  %v5180_v55 = vld [vmem:[%s9649_s4 + $0xc8] sm:$0xff] }
 0x314   :  { %v6295_v7 = vpop.f32.mrf.mxu1 }
 0x316   :  { %v990_v8 = vpop.f32.mrf.mxu1 }
 0x317   :  { %v7997_v5 = vadd.f32 %v990_v8, %v815_v59 }
 0x318   :  { %v6298_v6 = vpop.f32.mrf.mxu1 }
 0x32e   :  { %v1067_v3 = vpop.f32.mrf.mxu1 }
 0x32f   :  { %6349 = vmatmul.mubr.msk.f32.vlgmr.msra.gmra.mxu0 %vm456_vm1, %v1067_v3 }
 0x330   :  { %6358 = vmatpush3.msra.mxu0 %v7585_v42  ;;  %v6333_v1 = vpop.f32.mrf.mxu1  ;;  %6351 = vmatprep.mubr.msk.f32.mxu0 %vm7278_vm0, %v7277_v0 }
 0x331   :  { %6359 = vmatprep.subr.mxu0 %v7277_v0 }
 0x332   :  { %6360 = vmatpush3.msra.mxu0 %v7588_v45  ;;  %v1072_v19 = vpop.f32.mrf.mxu1 }
 0x333   :  { %6361 = vmatprep.subr.mxu0 %v7277_v0  ;;  %6352 = vmatmul.mubr.msk.f32.gmra.mxu0 %vm456_vm1, %v1072_v19 }
 0x334   :  { %6362 = vmatpush3.msra.mxu0 %v7595_v48  ;;  %v6336_v20 = vpop.f32.mrf.mxu1  ;;  %6354 = vmatprep.mubr.msk.f32.mxu0 %vm7278_vm0, %v7277_v0 }
 0x335   :  { %6363 = vmatprep.subr.mxu0 %v7277_v0  ;;  %v5186_v20 = vld [vmem:[%s9648_s3 + $0xa8] sm:$0xff] }
 0x336   :  { %6364 = vmatpush3.msra.mxu0 %v7602_v51  ;;  %v1077_v21 = vpop.f32.mrf.mxu1 }
 0x337   :  { %6365 = vmatprep.subr.mxu0 %v7277_v0  ;;  %6355 = vmatmul.mubr.msk.f32.gmra.mxu0 %vm456_vm1, %v1077_v21  ;;  %v5187_v21 = vld [vmem:[%s9648_s3 + $0xb0] sm:$0xff] }
 0x338   :  { %6366 = vmatpush3.msra.mxu0 %v7609_v54  ;;  %v6339_v22 = vpop.f32.mrf.mxu1  ;;  %6389 = vmatprep.mubr.msk.f32.mxu0 %vm7278_vm0, %v7277_v0 }
 0x339   :  { %6367 = vmatprep.subr.mxu0 %v7277_v0  ;;  %v5188_v22 = vld [vmem:[%s9648_s3 + $0xb8] sm:$0x3] }
 0x33a   :  { %6368 = vmatpush3.msra.mxu0 %v7616_v57 }
 0x33b   :  { %6369 = vmatprep.subr.mxu0 %v7277_v0 }
 0x33c   :  { %6370 = vmatpush3.msra.mxu0 %v7625_v60 }
 0x33d   :  { %6371 = vmatprep.subr.mxu0 %v7277_v0 }
 0x33e   :  { %6372 = vmatpush3.msra.mxu0 %v7634_v63 }
 0x33f   :  { %6373 = vmatprep.subr.mxu0 %v7277_v0 }
 0x340   :  { %6374 = vmatpush3.msra.mxu0 %v7643_v13 }
 0x341   :  { %6375 = vmatprep.subr.mxu0 %v7277_v0 }
 0x342   :  { %6376 = vmatpush3.msra.mxu0 %v7652_v14 }
 0x343   :  { %6377 = vmatprep.subr.mxu0 %v7277_v0 }
 0x344   :  { %6378 = vmatpush3.msra.mxu0 %v7661_v15 }
 0x345   :  { %6379 = vmatprep.subr.mxu0 %v7277_v0 }
 0x346   :  { %6380 = vmatpush3.msra.mxu0 %v7670_v16 }
 0x347   :  { %6381 = vmatprep.subr.mxu0 %v7277_v0 }
 0x348   :  { %6382 = vmatpush3.msra.mxu0 %v7677_v4 }
 0x349   :  { %6383 = vmatprep.subr.mxu0 %v7277_v0 }
 0x34a   :  { %6384 = vmatpush3.msra.mxu0 %v7684_v2 }
 0x34b   :  { %6385 = vmatprep.subr.mxu0 %v7277_v0 }
 0x34c   :  { %6386 = vmatpush3.msra.mxu0 %v7690_v17 }
 0x34d   :  { %6387 = vmatprep.subr.mxu0 %v7277_v0 }
 0x34e   :  { %6388 = vmatpush3.msra.mxu0 %v7696_v18 }
 0x34f   :  { %6390 = vmatmul.mubr.f32.vlgmr.msra.gmra.mxu0 %v5166_v23  ;;  %6456 = vmatprep.subr.mxu0 %v7277_v0  ;;  %v5192_v23 = vld [vmem:[%s9649_s4 + $0xf8] sm:$0xff] }
 0x350   :  { %6392 = vmatprep.mubr.msk.f32.mxu0 %vm7278_vm0, %v7277_v0  ;;  %6457 = vmatpush3.msra.mxu0 %v5182_v52  ;;  %v5199_v52 = vld [vmem:[%s9649_s4 + $0x100] sm:$0xff] }
 0x351   :  { %6458 = vmatprep.subr.mxu0 %v7277_v0 }
 0x352   :  { %6459 = vmatpush3.msra.mxu0 %v5181_v53 }
 0x353   :  { %6393 = vmatmul.mubr.f32.gmra.mxu0 %v5167_v24  ;;  %6460 = vmatprep.subr.mxu0 %v7277_v0  ;;  %v5191_v24 = vld [vmem:[%s9649_s4 + $0xf0] sm:$0xff] }
 0x354   :  { %6395 = vmatprep.mubr.msk.f32.mxu0 %vm7278_vm0, %v7277_v0  ;;  %6461 = vmatpush3.msra.mxu0 %v5180_v55 }
 0x355   :  { %6462 = vmatprep.subr.mxu0 %v7277_v0 }
 0x356   :  { %6463 = vmatpush3.msra.mxu0 %v5179_v56 }
 0x357   :  { %6396 = vmatmul.mubr.f32.gmra.mxu0 %v5168_v25  ;;  %6473 = vmatprep.subr.mxu0 %v7277_v0  ;;  %v5190_v25 = vld [vmem:[%s9649_s4 + $0xe8] sm:$0xff] }
 0x358   :  { %6464 = vmatprep.mubr.msk.f32.mxu0 %vm7278_vm0, %v7277_v0 }
 0x3ef   :  { %v1161_v30 = vpop.f32.mrf.mxu0 }
 0x3f0   :  { %v8072_v31 = vadd.f32 %v1161_v30, %v7993_v11 }
 0x3f1   :  { %v6350_v32 = vpop.f32.mrf.mxu0 }
 0x3f3   :  { %v1166_v33 = vpop.f32.mrf.mxu0 }
 0x3f4   :  { %v8075_v34 = vadd.f32 %v1166_v33, %v7995_v10 }
 0x3f5   :  { %v6353_v35 = vpop.f32.mrf.mxu0 }
 0x3f7   :  { %v1171_v36 = vpop.f32.mrf.mxu0 }
 0x3f8   :  { %v8078_v37 = vadd.f32 %v1171_v36, %v7997_v5 }
 0x3f9   :  { %v6356_v38 = vpop.f32.mrf.mxu0 }
 0x40f   :  { %v1248_v39 = vpop.f32.mrf.mxu0 }
 0x410   :  { %6407 = vmatmul.mubr.msk.f32.vlgmr.msra.gmra.mxu1 %vm456_vm1, %v1248_v39 }
 0x411   :  { %6416 = vmatpush3.msra.mxu1 %v7585_v42  ;;  %v6391_v40 = vpop.f32.mrf.mxu0  ;;  %6409 = vmatprep.mubr.msk.f32.mxu1 %vm7278_vm0, %v7277_v0 }
 0x412   :  { %6417 = vmatprep.subr.mxu1 %v7277_v0 }
 0x413   :  { %6418 = vmatpush3.msra.mxu1 %v7588_v45  ;;  %v1253_v41 = vpop.f32.mrf.mxu0 }
 0x414   :  { %6419 = vmatprep.subr.mxu1 %v7277_v0  ;;  %6410 = vmatmul.mubr.msk.f32.gmra.mxu1 %vm456_vm1, %v1253_v41 }
 0x415   :  { %6420 = vmatpush3.msra.mxu1 %v7595_v48  ;;  %v6394_v43 = vpop.f32.mrf.mxu0  ;;  %6412 = vmatprep.mubr.msk.f32.mxu1 %vm7278_vm0, %v7277_v0 }
 0x416   :  { %6421 = vmatprep.subr.mxu1 %v7277_v0  ;;  %v5196_v43 = vld [vmem:[%s9648_s3 + $0xc0] sm:$0xff] }
 0x417   :  { %6422 = vmatpush3.msra.mxu1 %v7602_v51  ;;  %v1258_v44 = vpop.f32.mrf.mxu0 }
 0x418   :  { %6423 = vmatprep.subr.mxu1 %v7277_v0  ;;  %6413 = vmatmul.mubr.msk.f32.gmra.mxu1 %vm456_vm1, %v1258_v44  ;;  %v5197_v44 = vld [vmem:[%s9648_s3 + $0xc8] sm:$0xff] }
 0x419   :  { %6424 = vmatpush3.msra.mxu1 %v7609_v54  ;;  %v6397_v46 = vpop.f32.mrf.mxu0  ;;  %6447 = vmatprep.mubr.msk.f32.mxu1 %vm7278_vm0, %v7277_v0 }
 0x41a   :  { %6425 = vmatprep.subr.mxu1 %v7277_v0  ;;  %v5198_v46 = vld [vmem:[%s9648_s3 + $0xd0] sm:$0x3] }
 0x41b   :  { %6426 = vmatpush3.msra.mxu1 %v7616_v57 }
 0x41c   :  { %6427 = vmatprep.subr.mxu1 %v7277_v0 }
 0x41d   :  { %6428 = vmatpush3.msra.mxu1 %v7625_v60 }
 0x41e   :  { %6429 = vmatprep.subr.mxu1 %v7277_v0 }
 0x41f   :  { %6430 = vmatpush3.msra.mxu1 %v7634_v63 }
 0x420   :  { %6431 = vmatprep.subr.mxu1 %v7277_v0 }
 0x421   :  { %6432 = vmatpush3.msra.mxu1 %v7643_v13 }
 0x422   :  { %6433 = vmatprep.subr.mxu1 %v7277_v0 }
 0x423   :  { %6434 = vmatpush3.msra.mxu1 %v7652_v14 }
 0x424   :  { %6435 = vmatprep.subr.mxu1 %v7277_v0 }
 0x425   :  { %6436 = vmatpush3.msra.mxu1 %v7661_v15 }
 0x426   :  { %6437 = vmatprep.subr.mxu1 %v7277_v0 }
 0x427   :  { %6438 = vmatpush3.msra.mxu1 %v7670_v16 }
 0x428   :  { %6439 = vmatprep.subr.mxu1 %v7277_v0 }
 0x429   :  { %6440 = vmatpush3.msra.mxu1 %v7677_v4 }
 0x42a   :  { %6441 = vmatprep.subr.mxu1 %v7277_v0 }
 0x42b   :  { %6442 = vmatpush3.msra.mxu1 %v7684_v2 }
 0x42c   :  { %6443 = vmatprep.subr.mxu1 %v7277_v0 }
 0x42d   :  { %6444 = vmatpush3.msra.mxu1 %v7690_v17 }
 0x42e   :  { %6445 = vmatprep.subr.mxu1 %v7277_v0 }
 0x42f   :  { %6446 = vmatpush3.msra.mxu1 %v7696_v18 }
 0x430   :  { %6448 = vmatmul.mubr.f32.vlgmr.msra.gmra.mxu1 %v5176_v47  ;;  %6514 = vmatprep.subr.mxu1 %v7277_v0  ;;  %v5202_v47 = vld [vmem:[%s9649_s4 + $0x118] sm:$0xff] }
 0x431   :  { %6450 = vmatprep.mubr.msk.f32.mxu1 %vm7278_vm0, %v7277_v0  ;;  %6515 = vmatpush3.msra.mxu1 %v5192_v23  ;;  %v5209_v23 = vld [vmem:[%s9649_s4 + $0x120] sm:$0xff] }
 0x432   :  { %6516 = vmatprep.subr.mxu1 %v7277_v0 }
 0x433   :  { %6517 = vmatpush3.msra.mxu1 %v5191_v24 }
 0x434   :  { %6451 = vmatmul.mubr.f32.gmra.mxu1 %v5177_v49  ;;  %6518 = vmatprep.subr.mxu1 %v7277_v0  ;;  %v5201_v49 = vld [vmem:[%s9649_s4 + $0x110] sm:$0xff] }
 0x435   :  { %6453 = vmatprep.mubr.msk.f32.mxu1 %vm7278_vm0, %v7277_v0  ;;  %6519 = vmatpush3.msra.mxu1 %v5190_v25 }
 0x436   :  { %6520 = vmatprep.subr.mxu1 %v7277_v0 }
 0x437   :  { %6521 = vmatpush3.msra.mxu1 %v5189_v26 }
 0x438   :  { %6454 = vmatmul.mubr.f32.gmra.mxu1 %v5178_v50  ;;  %6531 = vmatprep.subr.mxu1 %v7277_v0  ;;  %v5200_v50 = vld [vmem:[%s9649_s4 + $0x108] sm:$0xff] }
 0x439   :  { %6522 = vmatprep.mubr.msk.f32.mxu1 %vm7278_vm0, %v7277_v0 }
 0x4d0   :  { %v1342_v58 = vpop.f32.mrf.mxu1 }
 0x4d1   :  { %v8153_v59 = vadd.f32 %v1342_v58, %v8072_v31 }
 0x4d2   :  { %v6408_v61 = vpop.f32.mrf.mxu1 }
 0x4d4   :  { %v1347_v62 = vpop.f32.mrf.mxu1 }
 0x4d5   :  { %v8156_v11 = vadd.f32 %v1347_v62, %v8075_v34 }
 0x4d6   :  { %v6411_v12 = vpop.f32.mrf.mxu1 }
 0x4d8   :  { %v1352_v9 = vpop.f32.mrf.mxu1 }
 0x4d9   :  { %v8159_v10 = vadd.f32 %v1352_v9, %v8078_v37 }
 0x4da   :  { %v6414_v7 = vpop.f32.mrf.mxu1 }
 0x4f0   :  { %v1429_v8 = vpop.f32.mrf.mxu1 }
 0x4f1   :  { %6465 = vmatmul.mubr.msk.f32.vlgmr.msra.gmra.mxu0 %vm456_vm1, %v1429_v8 }
 0x4f2   :  { %6474 = vmatpush3.msra.mxu0 %v7585_v42  ;;  %v6449_v5 = vpop.f32.mrf.mxu1  ;;  %6467 = vmatprep.mubr.msk.f32.mxu0 %vm7278_vm0, %v7277_v0 }
 0x4f3   :  { %6475 = vmatprep.subr.mxu0 %v7277_v0 }
 0x4f4   :  { %6476 = vmatpush3.msra.mxu0 %v7588_v45  ;;  %v1434_v6 = vpop.f32.mrf.mxu1 }
 0x4f5   :  { %6477 = vmatprep.subr.mxu0 %v7277_v0  ;;  %6468 = vmatmul.mubr.msk.f32.gmra.mxu0 %vm456_vm1, %v1434_v6 }
 0x4f6   :  { %6478 = vmatpush3.msra.mxu0 %v7595_v48  ;;  %v6452_v3 = vpop.f32.mrf.mxu1  ;;  %6470 = vmatprep.mubr.msk.f32.mxu0 %vm7278_vm0, %v7277_v0 }
 0x4f7   :  { %6479 = vmatprep.subr.mxu0 %v7277_v0  ;;  %v5206_v3 = vld [vmem:[%s9648_s3 + $0xd8] sm:$0xff] }
 0x4f8   :  { %6480 = vmatpush3.msra.mxu0 %v7602_v51  ;;  %v1439_v1 = vpop.f32.mrf.mxu1 }
 0x4f9   :  { %6481 = vmatprep.subr.mxu0 %v7277_v0  ;;  %6471 = vmatmul.mubr.msk.f32.gmra.mxu0 %vm456_vm1, %v1439_v1  ;;  %v5207_v1 = vld [vmem:[%s9648_s3 + $0xe0] sm:$0xff] }
 0x4fa   :  { %6482 = vmatpush3.msra.mxu0 %v7609_v54  ;;  %v6455_v19 = vpop.f32.mrf.mxu1  ;;  %6505 = vmatprep.mubr.msk.f32.mxu0 %vm7278_vm0, %v7277_v0 }
 0x4fb   :  { %6483 = vmatprep.subr.mxu0 %v7277_v0  ;;  %v5208_v19 = vld [vmem:[%s9648_s3 + $0xe8] sm:$0x3] }
 0x4fc   :  { %6484 = vmatpush3.msra.mxu0 %v7616_v57 }
 0x4fd   :  { %6485 = vmatprep.subr.mxu0 %v7277_v0 }
 0x4fe   :  { %6486 = vmatpush3.msra.mxu0 %v7625_v60 }
 0x4ff   :  { %6487 = vmatprep.subr.mxu0 %v7277_v0 }
 0x500   :  { %6488 = vmatpush3.msra.mxu0 %v7634_v63 }
 0x501   :  { %6489 = vmatprep.subr.mxu0 %v7277_v0 }
 0x502   :  { %6490 = vmatpush3.msra.mxu0 %v7643_v13 }
 0x503   :  { %6491 = vmatprep.subr.mxu0 %v7277_v0 }
 0x504   :  { %6492 = vmatpush3.msra.mxu0 %v7652_v14 }
 0x505   :  { %6493 = vmatprep.subr.mxu0 %v7277_v0 }
 0x506   :  { %6494 = vmatpush3.msra.mxu0 %v7661_v15 }
 0x507   :  { %6495 = vmatprep.subr.mxu0 %v7277_v0 }
 0x508   :  { %6496 = vmatpush3.msra.mxu0 %v7670_v16 }
 0x509   :  { %6497 = vmatprep.subr.mxu0 %v7277_v0 }
 0x50a   :  { %6498 = vmatpush3.msra.mxu0 %v7677_v4 }
 0x50b   :  { %6499 = vmatprep.subr.mxu0 %v7277_v0 }
 0x50c   :  { %6500 = vmatpush3.msra.mxu0 %v7684_v2 }
 0x50d   :  { %6501 = vmatprep.subr.mxu0 %v7277_v0 }
 0x50e   :  { %6502 = vmatpush3.msra.mxu0 %v7690_v17 }
 0x50f   :  { %6503 = vmatprep.subr.mxu0 %v7277_v0 }
 0x510   :  { %6504 = vmatpush3.msra.mxu0 %v7696_v18 }
 0x511   :  { %6506 = vmatmul.mubr.f32.vlgmr.msra.gmra.mxu0 %v5186_v20  ;;  %6572 = vmatprep.subr.mxu0 %v7277_v0  ;;  %v5212_v20 = vld [vmem:[%s9649_s4 + $0x138] sm:$0xff] }
 0x512   :  { %6508 = vmatprep.mubr.msk.f32.mxu0 %vm7278_vm0, %v7277_v0  ;;  %6573 = vmatpush3.msra.mxu0 %v5202_v47  ;;  %v5219_v47 = vld [vmem:[%s9649_s4 + $0x140] sm:$0xff] }
 0x513   :  { %6574 = vmatprep.subr.mxu0 %v7277_v0 }
 0x514   :  { %6575 = vmatpush3.msra.mxu0 %v5201_v49 }
 0x515   :  { %6509 = vmatmul.mubr.f32.gmra.mxu0 %v5187_v21  ;;  %6576 = vmatprep.subr.mxu0 %v7277_v0  ;;  %v5211_v21 = vld [vmem:[%s9649_s4 + $0x130] sm:$0xff] }
 0x516   :  { %6511 = vmatprep.mubr.msk.f32.mxu0 %vm7278_vm0, %v7277_v0  ;;  %6577 = vmatpush3.msra.mxu0 %v5200_v50 }
 0x517   :  { %6578 = vmatprep.subr.mxu0 %v7277_v0 }
 0x518   :  { %6579 = vmatpush3.msra.mxu0 %v5199_v52 }
 0x519   :  { %6512 = vmatmul.mubr.f32.gmra.mxu0 %v5188_v22  ;;  %6589 = vmatprep.subr.mxu0 %v7277_v0  ;;  %v5210_v22 = vld [vmem:[%s9649_s4 + $0x128] sm:$0xff] }
 0x51a   :  { %6580 = vmatprep.mubr.msk.f32.mxu0 %vm7278_vm0, %v7277_v0 }
 0x5b1   :  { %v1523_v27 = vpop.f32.mrf.mxu0 }
 0x5b2   :  { %v8234_v28 = vadd.f32 %v1523_v27, %v8153_v59 }
 0x5b3   :  { %v6466_v29 = vpop.f32.mrf.mxu0 }
 0x5b5   :  { %v1528_v30 = vpop.f32.mrf.mxu0 }
 0x5b6   :  { %v8237_v31 = vadd.f32 %v1528_v30, %v8156_v11 }
 0x5b7   :  { %v6469_v32 = vpop.f32.mrf.mxu0 }
 0x5b9   :  { %v1533_v33 = vpop.f32.mrf.mxu0 }
 0x5ba   :  { %v8240_v34 = vadd.f32 %v1533_v33, %v8159_v10 }
 0x5bb   :  { %v6472_v35 = vpop.f32.mrf.mxu0 }
 0x5d1   :  { %v1610_v36 = vpop.f32.mrf.mxu0 }
 0x5d2   :  { %6523 = vmatmul.mubr.msk.f32.vlgmr.msra.gmra.mxu1 %vm456_vm1, %v1610_v36 }
 0x5d3   :  { %6532 = vmatpush3.msra.mxu1 %v7585_v42  ;;  %v6507_v37 = vpop.f32.mrf.mxu0  ;;  %6525 = vmatprep.mubr.msk.f32.mxu1 %vm7278_vm0, %v7277_v0 }
 0x5d4   :  { %6533 = vmatprep.subr.mxu1 %v7277_v0 }
 0x5d5   :  { %6534 = vmatpush3.msra.mxu1 %v7588_v45  ;;  %v1615_v38 = vpop.f32.mrf.mxu0 }
 0x5d6   :  { %6535 = vmatprep.subr.mxu1 %v7277_v0  ;;  %6526 = vmatmul.mubr.msk.f32.gmra.mxu1 %vm456_vm1, %v1615_v38 }
 0x5d7   :  { %6536 = vmatpush3.msra.mxu1 %v7595_v48  ;;  %v6510_v39 = vpop.f32.mrf.mxu0  ;;  %6528 = vmatprep.mubr.msk.f32.mxu1 %vm7278_vm0, %v7277_v0 }
 0x5d8   :  { %6537 = vmatprep.subr.mxu1 %v7277_v0  ;;  %v5216_v39 = vld [vmem:[%s9648_s3 + $0xf0] sm:$0xff] }
 0x5d9   :  { %6538 = vmatpush3.msra.mxu1 %v7602_v51  ;;  %v1620_v40 = vpop.f32.mrf.mxu0 }
 0x5da   :  { %6539 = vmatprep.subr.mxu1 %v7277_v0  ;;  %6529 = vmatmul.mubr.msk.f32.gmra.mxu1 %vm456_vm1, %v1620_v40  ;;  %v5217_v40 = vld [vmem:[%s9648_s3 + $0xf8] sm:$0xff] }
 0x5db   :  { %6540 = vmatpush3.msra.mxu1 %v7609_v54  ;;  %v6513_v41 = vpop.f32.mrf.mxu0  ;;  %6563 = vmatprep.mubr.msk.f32.mxu1 %vm7278_vm0, %v7277_v0 }
 0x5dc   :  { %6541 = vmatprep.subr.mxu1 %v7277_v0  ;;  %v5218_v41 = vld [vmem:[%s9648_s3 + $0x100] sm:$0x3] }
 0x5dd   :  { %6542 = vmatpush3.msra.mxu1 %v7616_v57 }
 0x5de   :  { %6543 = vmatprep.subr.mxu1 %v7277_v0 }
 0x5df   :  { %6544 = vmatpush3.msra.mxu1 %v7625_v60 }
 0x5e0   :  { %6545 = vmatprep.subr.mxu1 %v7277_v0 }
 0x5e1   :  { %6546 = vmatpush3.msra.mxu1 %v7634_v63 }
 0x5e2   :  { %6547 = vmatprep.subr.mxu1 %v7277_v0 }
 0x5e3   :  { %6548 = vmatpush3.msra.mxu1 %v7643_v13 }
 0x5e4   :  { %6549 = vmatprep.subr.mxu1 %v7277_v0 }
 0x5e5   :  { %6550 = vmatpush3.msra.mxu1 %v7652_v14 }
 0x5e6   :  { %6551 = vmatprep.subr.mxu1 %v7277_v0 }
 0x5e7   :  { %6552 = vmatpush3.msra.mxu1 %v7661_v15 }
 0x5e8   :  { %6553 = vmatprep.subr.mxu1 %v7277_v0 }
 0x5e9   :  { %6554 = vmatpush3.msra.mxu1 %v7670_v16 }
 0x5ea   :  { %6555 = vmatprep.subr.mxu1 %v7277_v0 }
 0x5eb   :  { %6556 = vmatpush3.msra.mxu1 %v7677_v4 }
 0x5ec   :  { %6557 = vmatprep.subr.mxu1 %v7277_v0 }
 0x5ed   :  { %6558 = vmatpush3.msra.mxu1 %v7684_v2 }
 0x5ee   :  { %6559 = vmatprep.subr.mxu1 %v7277_v0 }
 0x5ef   :  { %6560 = vmatpush3.msra.mxu1 %v7690_v17 }
 0x5f0   :  { %6561 = vmatprep.subr.mxu1 %v7277_v0 }
 0x5f1   :  { %6562 = vmatpush3.msra.mxu1 %v7696_v18 }
 0x5f2   :  { %6564 = vmatmul.mubr.f32.vlgmr.msra.gmra.mxu1 %v5196_v43  ;;  %6630 = vmatprep.subr.mxu1 %v7277_v0  ;;  %v5222_v43 = vld [vmem:[%s9649_s4 + $0x158] sm:$0xff] }
 0x5f3   :  { %6566 = vmatprep.mubr.msk.f32.mxu1 %vm7278_vm0, %v7277_v0  ;;  %6631 = vmatpush3.msra.mxu1 %v5212_v20  ;;  %v5229_v20 = vld [vmem:[%s9649_s4 + $0x160] sm:$0xff] }
 0x5f4   :  { %6632 = vmatprep.subr.mxu1 %v7277_v0 }
 0x5f5   :  { %6633 = vmatpush3.msra.mxu1 %v5211_v21 }
 0x5f6   :  { %6567 = vmatmul.mubr.f32.gmra.mxu1 %v5197_v44  ;;  %6634 = vmatprep.subr.mxu1 %v7277_v0  ;;  %v5221_v44 = vld [vmem:[%s9649_s4 + $0x150] sm:$0xff] }
 0x5f7   :  { %6569 = vmatprep.mubr.msk.f32.mxu1 %vm7278_vm0, %v7277_v0  ;;  %6635 = vmatpush3.msra.mxu1 %v5210_v22 }
 0x5f8   :  { %6636 = vmatprep.subr.mxu1 %v7277_v0 }
 0x5f9   :  { %6637 = vmatpush3.msra.mxu1 %v5209_v23 }
 0x5fa   :  { %6570 = vmatmul.mubr.f32.gmra.mxu1 %v5198_v46  ;;  %6647 = vmatprep.subr.mxu1 %v7277_v0  ;;  %v5220_v46 = vld [vmem:[%s9649_s4 + $0x148] sm:$0xff] }
 0x5fb   :  { %6638 = vmatprep.mubr.msk.f32.mxu1 %vm7278_vm0, %v7277_v0 }
 0x692   :  { %v1704_v53 = vpop.f32.mrf.mxu1 }
 0x693   :  { %v8315_v55 = vadd.f32 %v1704_v53, %v8234_v28 }
 0x694   :  { %v6524_v56 = vpop.f32.mrf.mxu1 }
 0x696   :  { %v1709_v58 = vpop.f32.mrf.mxu1 }
 0x697   :  { %v8318_v59 = vadd.f32 %v1709_v58, %v8237_v31 }
 0x698   :  { %v6527_v61 = vpop.f32.mrf.mxu1 }
 0x69a   :  { %v1714_v62 = vpop.f32.mrf.mxu1 }
 0x69b   :  { %v8321_v11 = vadd.f32 %v1714_v62, %v8240_v34 }
 0x69c   :  { %v6530_v12 = vpop.f32.mrf.mxu1 }
 0x6b2   :  { %v1791_v9 = vpop.f32.mrf.mxu1 }
 0x6b3   :  { %6581 = vmatmul.mubr.msk.f32.vlgmr.msra.gmra.mxu0 %vm456_vm1, %v1791_v9 }
 0x6b4   :  { %6590 = vmatpush3.msra.mxu0 %v7585_v42  ;;  %v6565_v10 = vpop.f32.mrf.mxu1  ;;  %6583 = vmatprep.mubr.msk.f32.mxu0 %vm7278_vm0, %v7277_v0 }
 0x6b5   :  { %6591 = vmatprep.subr.mxu0 %v7277_v0 }
 0x6b6   :  { %6592 = vmatpush3.msra.mxu0 %v7588_v45  ;;  %v1796_v7 = vpop.f32.mrf.mxu1 }
 0x6b7   :  { %6593 = vmatprep.subr.mxu0 %v7277_v0  ;;  %6584 = vmatmul.mubr.msk.f32.gmra.mxu0 %vm456_vm1, %v1796_v7 }
 0x6b8   :  { %6594 = vmatpush3.msra.mxu0 %v7595_v48  ;;  %v6568_v8 = vpop.f32.mrf.mxu1  ;;  %6586 = vmatprep.mubr.msk.f32.mxu0 %vm7278_vm0, %v7277_v0 }
 0x6b9   :  { %6595 = vmatprep.subr.mxu0 %v7277_v0  ;;  %v5226_v8 = vld [vmem:[%s9648_s3 + $0x108] sm:$0xff] }
 0x6ba   :  { %6596 = vmatpush3.msra.mxu0 %v7602_v51  ;;  %v1801_v5 = vpop.f32.mrf.mxu1 }
 0x6bb   :  { %6597 = vmatprep.subr.mxu0 %v7277_v0  ;;  %6587 = vmatmul.mubr.msk.f32.gmra.mxu0 %vm456_vm1, %v1801_v5  ;;  %v5227_v5 = vld [vmem:[%s9648_s3 + $0x110] sm:$0xff] }
 0x6bc   :  { %6598 = vmatpush3.msra.mxu0 %v7609_v54  ;;  %v6571_v6 = vpop.f32.mrf.mxu1  ;;  %6621 = vmatprep.mubr.msk.f32.mxu0 %vm7278_vm0, %v7277_v0 }
 0x6bd   :  { %6599 = vmatprep.subr.mxu0 %v7277_v0  ;;  %v5228_v6 = vld [vmem:[%s9648_s3 + $0x118] sm:$0x3] }
 0x6be   :  { %6600 = vmatpush3.msra.mxu0 %v7616_v57 }
 0x6bf   :  { %6601 = vmatprep.subr.mxu0 %v7277_v0 }
 0x6c0   :  { %6602 = vmatpush3.msra.mxu0 %v7625_v60 }
 0x6c1   :  { %6603 = vmatprep.subr.mxu0 %v7277_v0 }
 0x6c2   :  { %6604 = vmatpush3.msra.mxu0 %v7634_v63 }
 0x6c3   :  { %6605 = vmatprep.subr.mxu0 %v7277_v0 }
 0x6c4   :  { %6606 = vmatpush3.msra.mxu0 %v7643_v13 }
 0x6c5   :  { %6607 = vmatprep.subr.mxu0 %v7277_v0 }
 0x6c6   :  { %6608 = vmatpush3.msra.mxu0 %v7652_v14 }
 0x6c7   :  { %6609 = vmatprep.subr.mxu0 %v7277_v0 }
 0x6c8   :  { %6610 = vmatpush3.msra.mxu0 %v7661_v15 }
 0x6c9   :  { %6611 = vmatprep.subr.mxu0 %v7277_v0 }
 0x6ca   :  { %6612 = vmatpush3.msra.mxu0 %v7670_v16 }
 0x6cb   :  { %6613 = vmatprep.subr.mxu0 %v7277_v0 }
 0x6cc   :  { %6614 = vmatpush3.msra.mxu0 %v7677_v4 }
 0x6cd   :  { %6615 = vmatprep.subr.mxu0 %v7277_v0 }
 0x6ce   :  { %6616 = vmatpush3.msra.mxu0 %v7684_v2 }
 0x6cf   :  { %6617 = vmatprep.subr.mxu0 %v7277_v0 }
 0x6d0   :  { %6618 = vmatpush3.msra.mxu0 %v7690_v17 }
 0x6d1   :  { %6619 = vmatprep.subr.mxu0 %v7277_v0 }
 0x6d2   :  { %6620 = vmatpush3.msra.mxu0 %v7696_v18 }
 0x6d3   :  { %6622 = vmatmul.mubr.f32.vlgmr.msra.gmra.mxu0 %v5206_v3  ;;  %6688 = vmatprep.subr.mxu0 %v7277_v0  ;;  %v5232_v3 = vld [vmem:[%s9649_s4 + $0x178] sm:$0xff] }
 0x6d4   :  { %6624 = vmatprep.mubr.msk.f32.mxu0 %vm7278_vm0, %v7277_v0  ;;  %6689 = vmatpush3.msra.mxu0 %v5222_v43  ;;  %v5239_v43 = vld [vmem:[%s9649_s4 + $0x180] sm:$0xff] }
 0x6d5   :  { %6690 = vmatprep.subr.mxu0 %v7277_v0 }
 0x6d6   :  { %6691 = vmatpush3.msra.mxu0 %v5221_v44 }
 0x6d7   :  { %6625 = vmatmul.mubr.f32.gmra.mxu0 %v5207_v1  ;;  %6692 = vmatprep.subr.mxu0 %v7277_v0  ;;  %v5231_v1 = vld [vmem:[%s9649_s4 + $0x170] sm:$0xff] }
 0x6d8   :  { %6627 = vmatprep.mubr.msk.f32.mxu0 %vm7278_vm0, %v7277_v0  ;;  %6693 = vmatpush3.msra.mxu0 %v5220_v46 }
 0x6d9   :  { %6694 = vmatprep.subr.mxu0 %v7277_v0 }
 0x6da   :  { %6695 = vmatpush3.msra.mxu0 %v5219_v47 }
 0x6db   :  { %6628 = vmatmul.mubr.f32.gmra.mxu0 %v5208_v19  ;;  %6705 = vmatprep.subr.mxu0 %v7277_v0  ;;  %v5230_v19 = vld [vmem:[%s9649_s4 + $0x168] sm:$0xff] }
 0x6dc   :  { %6696 = vmatprep.mubr.msk.f32.mxu0 %vm7278_vm0, %v7277_v0 }
 0x773   :  { %v1885_v24 = vpop.f32.mrf.mxu0 }
 0x774   :  { %v8396_v25 = vadd.f32 %v1885_v24, %v8315_v55 }
 0x775   :  { %v6582_v26 = vpop.f32.mrf.mxu0 }
 0x777   :  { %v1890_v27 = vpop.f32.mrf.mxu0 }
 0x778   :  { %v8399_v28 = vadd.f32 %v1890_v27, %v8318_v59 }
 0x779   :  { %v6585_v29 = vpop.f32.mrf.mxu0 }
 0x77b   :  { %v1895_v30 = vpop.f32.mrf.mxu0 }
 0x77c   :  { %v8402_v31 = vadd.f32 %v1895_v30, %v8321_v11 }
 0x77d   :  { %v6588_v32 = vpop.f32.mrf.mxu0 }
 0x793   :  { %v1972_v33 = vpop.f32.mrf.mxu0 }
 0x794   :  { %6639 = vmatmul.mubr.msk.f32.vlgmr.msra.gmra.mxu1 %vm456_vm1, %v1972_v33 }
 0x795   :  { %6648 = vmatpush3.msra.mxu1 %v7585_v42  ;;  %v6623_v34 = vpop.f32.mrf.mxu0  ;;  %6641 = vmatprep.mubr.msk.f32.mxu1 %vm7278_vm0, %v7277_v0 }
 0x796   :  { %6649 = vmatprep.subr.mxu1 %v7277_v0 }
 0x797   :  { %6650 = vmatpush3.msra.mxu1 %v7588_v45  ;;  %v1977_v35 = vpop.f32.mrf.mxu0 }
 0x798   :  { %6651 = vmatprep.subr.mxu1 %v7277_v0  ;;  %6642 = vmatmul.mubr.msk.f32.gmra.mxu1 %vm456_vm1, %v1977_v35 }
 0x799   :  { %6652 = vmatpush3.msra.mxu1 %v7595_v48  ;;  %v6626_v36 = vpop.f32.mrf.mxu0  ;;  %6644 = vmatprep.mubr.msk.f32.mxu1 %vm7278_vm0, %v7277_v0 }
 0x79a   :  { %6653 = vmatprep.subr.mxu1 %v7277_v0  ;;  %v5236_v36 = vld [vmem:[%s9648_s3 + $0x120] sm:$0xff] }
 0x79b   :  { %6654 = vmatpush3.msra.mxu1 %v7602_v51  ;;  %v1982_v37 = vpop.f32.mrf.mxu0 }
 0x79c   :  { %6655 = vmatprep.subr.mxu1 %v7277_v0  ;;  %6645 = vmatmul.mubr.msk.f32.gmra.mxu1 %vm456_vm1, %v1982_v37  ;;  %v5237_v37 = vld [vmem:[%s9648_s3 + $0x128] sm:$0xff] }
 0x79d   :  { %6656 = vmatpush3.msra.mxu1 %v7609_v54  ;;  %v6629_v38 = vpop.f32.mrf.mxu0  ;;  %6679 = vmatprep.mubr.msk.f32.mxu1 %vm7278_vm0, %v7277_v0 }
 0x79e   :  { %6657 = vmatprep.subr.mxu1 %v7277_v0  ;;  %v5238_v38 = vld [vmem:[%s9648_s3 + $0x130] sm:$0x3] }
 0x79f   :  { %6658 = vmatpush3.msra.mxu1 %v7616_v57 }
 0x7a0   :  { %6659 = vmatprep.subr.mxu1 %v7277_v0 }
 0x7a1   :  { %6660 = vmatpush3.msra.mxu1 %v7625_v60 }
 0x7a2   :  { %6661 = vmatprep.subr.mxu1 %v7277_v0 }
 0x7a3   :  { %6662 = vmatpush3.msra.mxu1 %v7634_v63 }
 0x7a4   :  { %6663 = vmatprep.subr.mxu1 %v7277_v0 }
 0x7a5   :  { %6664 = vmatpush3.msra.mxu1 %v7643_v13 }
 0x7a6   :  { %6665 = vmatprep.subr.mxu1 %v7277_v0 }
 0x7a7   :  { %6666 = vmatpush3.msra.mxu1 %v7652_v14 }
 0x7a8   :  { %6667 = vmatprep.subr.mxu1 %v7277_v0 }
 0x7a9   :  { %6668 = vmatpush3.msra.mxu1 %v7661_v15 }
 0x7aa   :  { %6669 = vmatprep.subr.mxu1 %v7277_v0 }
 0x7ab   :  { %6670 = vmatpush3.msra.mxu1 %v7670_v16 }
 0x7ac   :  { %6671 = vmatprep.subr.mxu1 %v7277_v0 }
 0x7ad   :  { %6672 = vmatpush3.msra.mxu1 %v7677_v4 }
 0x7ae   :  { %6673 = vmatprep.subr.mxu1 %v7277_v0 }
 0x7af   :  { %6674 = vmatpush3.msra.mxu1 %v7684_v2 }
 0x7b0   :  { %6675 = vmatprep.subr.mxu1 %v7277_v0 }
 0x7b1   :  { %6676 = vmatpush3.msra.mxu1 %v7690_v17 }
 0x7b2   :  { %6677 = vmatprep.subr.mxu1 %v7277_v0 }
 0x7b3   :  { %6678 = vmatpush3.msra.mxu1 %v7696_v18 }
 0x7b4   :  { %6680 = vmatmul.mubr.f32.vlgmr.msra.gmra.mxu1 %v5216_v39  ;;  %6746 = vmatprep.subr.mxu1 %v7277_v0  ;;  %v5242_v39 = vld [vmem:[%s9649_s4 + $0x198] sm:$0xff] }
 0x7b5   :  { %6682 = vmatprep.mubr.msk.f32.mxu1 %vm7278_vm0, %v7277_v0  ;;  %6747 = vmatpush3.msra.mxu1 %v5232_v3  ;;  %v5249_v3 = vld [vmem:[%s9649_s4 + $0x1a0] sm:$0xff] }
 0x7b6   :  { %6748 = vmatprep.subr.mxu1 %v7277_v0 }
 0x7b7   :  { %6749 = vmatpush3.msra.mxu1 %v5231_v1 }
 0x7b8   :  { %6683 = vmatmul.mubr.f32.gmra.mxu1 %v5217_v40  ;;  %6750 = vmatprep.subr.mxu1 %v7277_v0  ;;  %v5241_v40 = vld [vmem:[%s9649_s4 + $0x190] sm:$0xff] }
 0x7b9   :  { %6685 = vmatprep.mubr.msk.f32.mxu1 %vm7278_vm0, %v7277_v0  ;;  %6751 = vmatpush3.msra.mxu1 %v5230_v19 }
 0x7ba   :  { %6752 = vmatprep.subr.mxu1 %v7277_v0 }
 0x7bb   :  { %6753 = vmatpush3.msra.mxu1 %v5229_v20 }
 0x7bc   :  { %6686 = vmatmul.mubr.f32.gmra.mxu1 %v5218_v41  ;;  %6763 = vmatprep.subr.mxu1 %v7277_v0  ;;  %v5240_v41 = vld [vmem:[%s9649_s4 + $0x188] sm:$0xff] }
 0x7bd   :  { %6754 = vmatprep.mubr.msk.f32.mxu1 %vm7278_vm0, %v7277_v0 }
 0x854   :  { %v2066_v49 = vpop.f32.mrf.mxu1 }
 0x855   :  { %v8477_v50 = vadd.f32 %v2066_v49, %v8396_v25 }
 0x856   :  { %v6640_v52 = vpop.f32.mrf.mxu1 }
 0x858   :  { %v2071_v53 = vpop.f32.mrf.mxu1 }
 0x859   :  { %v8480_v55 = vadd.f32 %v2071_v53, %v8399_v28 }
 0x85a   :  { %v6643_v56 = vpop.f32.mrf.mxu1 }
 0x85c   :  { %v2076_v58 = vpop.f32.mrf.mxu1 }
 0x85d   :  { %v8483_v59 = vadd.f32 %v2076_v58, %v8402_v31 }
 0x85e   :  { %v6646_v61 = vpop.f32.mrf.mxu1 }
 0x874   :  { %v2153_v62 = vpop.f32.mrf.mxu1 }
 0x875   :  { %6697 = vmatmul.mubr.msk.f32.vlgmr.msra.gmra.mxu0 %vm456_vm1, %v2153_v62 }
 0x876   :  { %6706 = vmatpush3.msra.mxu0 %v7585_v42  ;;  %v6681_v11 = vpop.f32.mrf.mxu1  ;;  %6699 = vmatprep.mubr.msk.f32.mxu0 %vm7278_vm0, %v7277_v0 }
 0x877   :  { %6707 = vmatprep.subr.mxu0 %v7277_v0 }
 0x878   :  { %6708 = vmatpush3.msra.mxu0 %v7588_v45  ;;  %v2158_v12 = vpop.f32.mrf.mxu1 }
 0x879   :  { %6709 = vmatprep.subr.mxu0 %v7277_v0  ;;  %6700 = vmatmul.mubr.msk.f32.gmra.mxu0 %vm456_vm1, %v2158_v12 }
 0x87a   :  { %6710 = vmatpush3.msra.mxu0 %v7595_v48  ;;  %v6684_v9 = vpop.f32.mrf.mxu1  ;;  %6702 = vmatprep.mubr.msk.f32.mxu0 %vm7278_vm0, %v7277_v0 }
 0x87b   :  { %6711 = vmatprep.subr.mxu0 %v7277_v0  ;;  %v5246_v9 = vld [vmem:[%s9648_s3 + $0x138] sm:$0xff] }
 0x87c   :  { %6712 = vmatpush3.msra.mxu0 %v7602_v51  ;;  %v2163_v10 = vpop.f32.mrf.mxu1 }
 0x87d   :  { %6713 = vmatprep.subr.mxu0 %v7277_v0  ;;  %6703 = vmatmul.mubr.msk.f32.gmra.mxu0 %vm456_vm1, %v2163_v10  ;;  %v5247_v10 = vld [vmem:[%s9648_s3 + $0x140] sm:$0xff] }
 0x87e   :  { %6714 = vmatpush3.msra.mxu0 %v7609_v54  ;;  %v6687_v7 = vpop.f32.mrf.mxu1  ;;  %6737 = vmatprep.mubr.msk.f32.mxu0 %vm7278_vm0, %v7277_v0 }
 0x87f   :  { %6715 = vmatprep.subr.mxu0 %v7277_v0  ;;  %v5248_v7 = vld [vmem:[%s9648_s3 + $0x148] sm:$0x3] }
 0x880   :  { %6716 = vmatpush3.msra.mxu0 %v7616_v57 }
 0x881   :  { %6717 = vmatprep.subr.mxu0 %v7277_v0 }
 0x882   :  { %6718 = vmatpush3.msra.mxu0 %v7625_v60 }
 0x883   :  { %6719 = vmatprep.subr.mxu0 %v7277_v0 }
 0x884   :  { %6720 = vmatpush3.msra.mxu0 %v7634_v63 }
 0x885   :  { %6721 = vmatprep.subr.mxu0 %v7277_v0 }
 0x886   :  { %6722 = vmatpush3.msra.mxu0 %v7643_v13 }
 0x887   :  { %6723 = vmatprep.subr.mxu0 %v7277_v0 }
 0x888   :  { %6724 = vmatpush3.msra.mxu0 %v7652_v14 }
 0x889   :  { %6725 = vmatprep.subr.mxu0 %v7277_v0 }
 0x88a   :  { %6726 = vmatpush3.msra.mxu0 %v7661_v15 }
 0x88b   :  { %6727 = vmatprep.subr.mxu0 %v7277_v0 }
 0x88c   :  { %6728 = vmatpush3.msra.mxu0 %v7670_v16 }
 0x88d   :  { %6729 = vmatprep.subr.mxu0 %v7277_v0 }
 0x88e   :  { %6730 = vmatpush3.msra.mxu0 %v7677_v4 }
 0x88f   :  { %6731 = vmatprep.subr.mxu0 %v7277_v0 }
 0x890   :  { %6732 = vmatpush3.msra.mxu0 %v7684_v2 }
 0x891   :  { %6733 = vmatprep.subr.mxu0 %v7277_v0 }
 0x892   :  { %6734 = vmatpush3.msra.mxu0 %v7690_v17 }
 0x893   :  { %6735 = vmatprep.subr.mxu0 %v7277_v0 }
 0x894   :  { %6736 = vmatpush3.msra.mxu0 %v7696_v18 }
 0x895   :  { %6738 = vmatmul.mubr.f32.vlgmr.msra.gmra.mxu0 %v5226_v8  ;;  %6804 = vmatprep.subr.mxu0 %v7277_v0  ;;  %v5252_v8 = vld [vmem:[%s9649_s4 + $0x1b8] sm:$0xff] }
 0x896   :  { %6740 = vmatprep.mubr.msk.f32.mxu0 %vm7278_vm0, %v7277_v0  ;;  %6805 = vmatpush3.msra.mxu0 %v5242_v39  ;;  %v5259_v39 = vld [vmem:[%s9649_s4 + $0x1c0] sm:$0xff] }
 0x897   :  { %6806 = vmatprep.subr.mxu0 %v7277_v0 }
 0x898   :  { %6807 = vmatpush3.msra.mxu0 %v5241_v40 }
 0x899   :  { %6741 = vmatmul.mubr.f32.gmra.mxu0 %v5227_v5  ;;  %6808 = vmatprep.subr.mxu0 %v7277_v0  ;;  %v5251_v5 = vld [vmem:[%s9649_s4 + $0x1b0] sm:$0xff] }
 0x89a   :  { %6743 = vmatprep.mubr.msk.f32.mxu0 %vm7278_vm0, %v7277_v0  ;;  %6809 = vmatpush3.msra.mxu0 %v5240_v41 }
 0x89b   :  { %6810 = vmatprep.subr.mxu0 %v7277_v0 }
 0x89c   :  { %6811 = vmatpush3.msra.mxu0 %v5239_v43 }
 0x89d   :  { %6744 = vmatmul.mubr.f32.gmra.mxu0 %v5228_v6  ;;  %6821 = vmatprep.subr.mxu0 %v7277_v0  ;;  %v5250_v6 = vld [vmem:[%s9649_s4 + $0x1a8] sm:$0xff] }
 0x89e   :  { %6812 = vmatprep.mubr.msk.f32.mxu0 %vm7278_vm0, %v7277_v0 }
 0x935   :  { %v2247_v21 = vpop.f32.mrf.mxu0 }
 0x936   :  { %v8558_v22 = vadd.f32 %v2247_v21, %v8477_v50 }
 0x937   :  { %v6698_v23 = vpop.f32.mrf.mxu0 }
 0x939   :  { %v2252_v24 = vpop.f32.mrf.mxu0 }
 0x93a   :  { %v8561_v25 = vadd.f32 %v2252_v24, %v8480_v55 }
 0x93b   :  { %v6701_v26 = vpop.f32.mrf.mxu0 }
 0x93d   :  { %v2257_v27 = vpop.f32.mrf.mxu0 }
 0x93e   :  { %v8564_v28 = vadd.f32 %v2257_v27, %v8483_v59 }
 0x93f   :  { %v6704_v29 = vpop.f32.mrf.mxu0 }
 0x955   :  { %v2334_v30 = vpop.f32.mrf.mxu0 }
 0x956   :  { %6755 = vmatmul.mubr.msk.f32.vlgmr.msra.gmra.mxu1 %vm456_vm1, %v2334_v30 }
 0x957   :  { %6764 = vmatpush3.msra.mxu1 %v7585_v42  ;;  %v6739_v31 = vpop.f32.mrf.mxu0  ;;  %6757 = vmatprep.mubr.msk.f32.mxu1 %vm7278_vm0, %v7277_v0 }
 0x958   :  { %6765 = vmatprep.subr.mxu1 %v7277_v0 }
 0x959   :  { %6766 = vmatpush3.msra.mxu1 %v7588_v45  ;;  %v2339_v32 = vpop.f32.mrf.mxu0 }
 0x95a   :  { %6767 = vmatprep.subr.mxu1 %v7277_v0  ;;  %6758 = vmatmul.mubr.msk.f32.gmra.mxu1 %vm456_vm1, %v2339_v32 }
 0x95b   :  { %6768 = vmatpush3.msra.mxu1 %v7595_v48  ;;  %v6742_v33 = vpop.f32.mrf.mxu0  ;;  %6760 = vmatprep.mubr.msk.f32.mxu1 %vm7278_vm0, %v7277_v0 }
 0x95c   :  { %6769 = vmatprep.subr.mxu1 %v7277_v0  ;;  %v5256_v33 = vld [vmem:[%s9648_s3 + $0x150] sm:$0xff] }
 0x95d   :  { %6770 = vmatpush3.msra.mxu1 %v7602_v51  ;;  %v2344_v34 = vpop.f32.mrf.mxu0 }
 0x95e   :  { %6771 = vmatprep.subr.mxu1 %v7277_v0  ;;  %6761 = vmatmul.mubr.msk.f32.gmra.mxu1 %vm456_vm1, %v2344_v34  ;;  %v5257_v34 = vld [vmem:[%s9648_s3 + $0x158] sm:$0xff] }
 0x95f   :  { %6772 = vmatpush3.msra.mxu1 %v7609_v54  ;;  %v6745_v35 = vpop.f32.mrf.mxu0  ;;  %6795 = vmatprep.mubr.msk.f32.mxu1 %vm7278_vm0, %v7277_v0 }
 0x960   :  { %6773 = vmatprep.subr.mxu1 %v7277_v0  ;;  %v5258_v35 = vld [vmem:[%s9648_s3 + $0x160] sm:$0x3] }
 0x961   :  { %6774 = vmatpush3.msra.mxu1 %v7616_v57 }
 0x962   :  { %6775 = vmatprep.subr.mxu1 %v7277_v0 }
 0x963   :  { %6776 = vmatpush3.msra.mxu1 %v7625_v60 }
 0x964   :  { %6777 = vmatprep.subr.mxu1 %v7277_v0 }
 0x965   :  { %6778 = vmatpush3.msra.mxu1 %v7634_v63 }
 0x966   :  { %6779 = vmatprep.subr.mxu1 %v7277_v0 }
 0x967   :  { %6780 = vmatpush3.msra.mxu1 %v7643_v13 }
 0x968   :  { %6781 = vmatprep.subr.mxu1 %v7277_v0 }
 0x969   :  { %6782 = vmatpush3.msra.mxu1 %v7652_v14 }
 0x96a   :  { %6783 = vmatprep.subr.mxu1 %v7277_v0 }
 0x96b   :  { %6784 = vmatpush3.msra.mxu1 %v7661_v15 }
 0x96c   :  { %6785 = vmatprep.subr.mxu1 %v7277_v0 }
 0x96d   :  { %6786 = vmatpush3.msra.mxu1 %v7670_v16 }
 0x96e   :  { %6787 = vmatprep.subr.mxu1 %v7277_v0 }
 0x96f   :  { %6788 = vmatpush3.msra.mxu1 %v7677_v4 }
 0x970   :  { %6789 = vmatprep.subr.mxu1 %v7277_v0 }
 0x971   :  { %6790 = vmatpush3.msra.mxu1 %v7684_v2 }
 0x972   :  { %6791 = vmatprep.subr.mxu1 %v7277_v0 }
 0x973   :  { %6792 = vmatpush3.msra.mxu1 %v7690_v17 }
 0x974   :  { %6793 = vmatprep.subr.mxu1 %v7277_v0 }
 0x975   :  { %6794 = vmatpush3.msra.mxu1 %v7696_v18 }
 0x976   :  { %6796 = vmatmul.mubr.f32.vlgmr.msra.gmra.mxu1 %v5236_v36  ;;  %6862 = vmatprep.subr.mxu1 %v7277_v0  ;;  %v5262_v36 = vld [vmem:[%s9649_s4 + $0x1d8] sm:$0xff] }
 0x977   :  { %6798 = vmatprep.mubr.msk.f32.mxu1 %vm7278_vm0, %v7277_v0  ;;  %6863 = vmatpush3.msra.mxu1 %v5252_v8  ;;  %v5289_v8 = vld [vmem:[%s9652_s7 + $0x78] sm:$0xff] }
 0x978   :  { %6864 = vmatprep.subr.mxu1 %v7277_v0 }
 0x979   :  { %6865 = vmatpush3.msra.mxu1 %v5251_v5  ;;  %v5288_v5 = vld [vmem:[%s9652_s7 + $0x70] sm:$0xff] }
 0x97a   :  { %6799 = vmatmul.mubr.f32.gmra.mxu1 %v5237_v37  ;;  %6866 = vmatprep.subr.mxu1 %v7277_v0  ;;  %v5261_v37 = vld [vmem:[%s9649_s4 + $0x1d0] sm:$0xff] }
 0x97b   :  { %6801 = vmatprep.mubr.msk.f32.mxu1 %vm7278_vm0, %v7277_v0  ;;  %6867 = vmatpush3.msra.mxu1 %v5250_v6  ;;  %v5287_v6 = vld [vmem:[%s9652_s7 + $0x68] sm:$0xff] }
 0x97c   :  { %6868 = vmatprep.subr.mxu1 %v7277_v0 }
 0x97d   :  { %6869 = vmatpush3.msra.mxu1 %v5249_v3  ;;  %v5286_v3 = vld [vmem:[%s9652_s7 + $0x60] sm:$0xff] }
 0x97e   :  { %6802 = vmatmul.mubr.f32.gmra.mxu1 %v5238_v38  ;;  %6879 = vmatprep.subr.mxu1 %v7277_v0  ;;  %v5260_v38 = vld [vmem:[%s9649_s4 + $0x1c8] sm:$0xff] }
 0x97f   :  { %6870 = vmatprep.mubr.msk.f32.mxu1 %vm7278_vm0, %v7277_v0 }
 0xa16   :  { %v2428_v44 = vpop.f32.mrf.mxu1 }
 0xa17   :  { %v8639_v46 = vadd.f32 %v2428_v44, %v8558_v22 }
 0xa18   :  { %v6756_v47 = vpop.f32.mrf.mxu1 }
 0xa1a   :  { %v2433_v49 = vpop.f32.mrf.mxu1 }
 0xa1b   :  { %v8642_v50 = vadd.f32 %v2433_v49, %v8561_v25 }
 0xa1c   :  { %v6759_v52 = vpop.f32.mrf.mxu1 }
 0xa1e   :  { %v2438_v53 = vpop.f32.mrf.mxu1 }
 0xa1f   :  { %v8645_v55 = vadd.f32 %v2438_v53, %v8564_v28 }
 0xa20   :  { %v6762_v56 = vpop.f32.mrf.mxu1 }
 0xa36   :  { %v2515_v58 = vpop.f32.mrf.mxu1 }
 0xa37   :  { %6813 = vmatmul.mubr.msk.f32.vlgmr.msra.gmra.mxu0 %vm456_vm1, %v2515_v58 }
 0xa38   :  { %6822 = vmatpush3.msra.mxu0 %v7585_v42  ;;  %v6797_v59 = vpop.f32.mrf.mxu1  ;;  %6815 = vmatprep.mubr.msk.f32.mxu0 %vm7278_vm0, %v7277_v0 }
 0xa39   :  { %6823 = vmatprep.subr.mxu0 %v7277_v0 }
 0xa3a   :  { %6824 = vmatpush3.msra.mxu0 %v7588_v45  ;;  %v2520_v61 = vpop.f32.mrf.mxu1 }
 0xa3b   :  { %6825 = vmatprep.subr.mxu0 %v7277_v0  ;;  %6816 = vmatmul.mubr.msk.f32.gmra.mxu0 %vm456_vm1, %v2520_v61 }
 0xa3c   :  { %6826 = vmatpush3.msra.mxu0 %v7595_v48  ;;  %v6800_v62 = vpop.f32.mrf.mxu1  ;;  %6818 = vmatprep.mubr.msk.f32.mxu0 %vm7278_vm0, %v7277_v0 }
 0xa3d   :  { %6827 = vmatprep.subr.mxu0 %v7277_v0 }
 0xa3e   :  { %6828 = vmatpush3.msra.mxu0 %v7602_v51  ;;  %v2525_v11 = vpop.f32.mrf.mxu1 }
 0xa3f   :  { %6829 = vmatprep.subr.mxu0 %v7277_v0  ;;  %6819 = vmatmul.mubr.msk.f32.gmra.mxu0 %vm456_vm1, %v2525_v11 }
 0xa40   :  { %6830 = vmatpush3.msra.mxu0 %v7609_v54  ;;  %v6803_v12 = vpop.f32.mrf.mxu1  ;;  %6853 = vmatprep.mubr.msk.f32.mxu0 %vm7278_vm0, %v7277_v0 }
 0xa41   :  { %6831 = vmatprep.subr.mxu0 %v7277_v0 }
 0xa42   :  { %6832 = vmatpush3.msra.mxu0 %v7616_v57 }
 0xa43   :  { %6833 = vmatprep.subr.mxu0 %v7277_v0 }
 0xa44   :  { %6834 = vmatpush3.msra.mxu0 %v7625_v60 }
 0xa45   :  { %6835 = vmatprep.subr.mxu0 %v7277_v0 }
 0xa46   :  { %6836 = vmatpush3.msra.mxu0 %v7634_v63 }
 0xa47   :  { %6837 = vmatprep.subr.mxu0 %v7277_v0 }
 0xa48   :  { %6838 = vmatpush3.msra.mxu0 %v7643_v13 }
 0xa49   :  { %6839 = vmatprep.subr.mxu0 %v7277_v0 }
 0xa4a   :  { %6840 = vmatpush3.msra.mxu0 %v7652_v14 }
 0xa4b   :  { %6841 = vmatprep.subr.mxu0 %v7277_v0 }
 0xa4c   :  { %6842 = vmatpush3.msra.mxu0 %v7661_v15 }
 0xa4d   :  { %6843 = vmatprep.subr.mxu0 %v7277_v0 }
 0xa4e   :  { %6844 = vmatpush3.msra.mxu0 %v7670_v16 }
 0xa4f   :  { %6845 = vmatprep.subr.mxu0 %v7277_v0 }
 0xa50   :  { %6846 = vmatpush3.msra.mxu0 %v7677_v4 }
 0xa51   :  { %6847 = vmatprep.subr.mxu0 %v7277_v0 }
 0xa52   :  { %6848 = vmatpush3.msra.mxu0 %v7684_v2 }
 0xa53   :  { %6849 = vmatprep.subr.mxu0 %v7277_v0 }
 0xa54   :  { %6850 = vmatpush3.msra.mxu0 %v7690_v17 }
 0xa55   :  { %6851 = vmatprep.subr.mxu0 %v7277_v0 }
 0xa56   :  { %6852 = vmatpush3.msra.mxu0 %v7696_v18 }
 0xa57   :  { %6854 = vmatmul.mubr.f32.vlgmr.msra.gmra.mxu0 %v5246_v9  ;;  %6920 = vmatprep.subr.mxu0 %v7277_v0 }
 0xa58   :  { %6856 = vmatprep.mubr.msk.f32.mxu0 %vm7278_vm0, %v7277_v0  ;;  %6921 = vmatpush3.msra.mxu0 %v5262_v36  ;;  %v3182_v36 = vld [vmem:[%s9651_s6] sm:$0x3] }
 0xa59   :  { %6922 = vmatprep.subr.mxu0 %v7277_v0 }
 0xa5a   :  { %6923 = vmatpush3.msra.mxu0 %v5261_v37  ;;  %v5279_v37 = vld [vmem:[%s9651_s6 + $0x2] sm:$0x3] }
 0xa5b   :  { %6857 = vmatmul.mubr.f32.gmra.mxu0 %v5247_v10  ;;  %6924 = vmatprep.subr.mxu0 %v7277_v0 }
 0xa5c   :  { %6859 = vmatprep.mubr.msk.f32.mxu0 %vm7278_vm0, %v7277_v0  ;;  %6925 = vmatpush3.msra.mxu0 %v5260_v38  ;;  %v3268_v38 = vld [vmem:[%s9652_s7 + $0x38] sm:$0xff] }
 0xa5d   :  { %6926 = vmatprep.subr.mxu0 %v7277_v0 }
 0xa5e   :  { %6927 = vmatpush3.msra.mxu0 %v5259_v39  ;;  %v3267_v39 = vld [vmem:[%s9652_s7 + $0x30] sm:$0xff] }
 0xa5f   :  { %6860 = vmatmul.mubr.f32.gmra.mxu0 %v5248_v7  ;;  %6937 = vmatprep.subr.mxu0 %v7277_v0 }
 0xa60   :  { %6928 = vmatprep.mubr.msk.f32.mxu0 %vm7278_vm0, %v7277_v0 }
 0xaf7   :  { %v2609_v1 = vpop.f32.mrf.mxu0 }
 0xaf8   :  { %v8720_v19 = vadd.f32 %v2609_v1, %v8639_v46  ;;  %v5285_v1 = vld [vmem:[%s9652_s7 + $0x58] sm:$0xff] }
 0xaf9   :  { %v6814_v20 = vpop.f32.mrf.mxu0 }
 0xafb   :  { %v2614_v21 = vpop.f32.mrf.mxu0 }
 0xafc   :  { %v8723_v22 = vadd.f32 %v2614_v21, %v8642_v50 }
 0xafd   :  { %v6817_v23 = vpop.f32.mrf.mxu0 }
 0xaff   :  { %v2619_v24 = vpop.f32.mrf.mxu0 }
 0xb00   :  { %v8726_v25 = vadd.f32 %v2619_v24, %v8645_v55 }
 0xb01   :  { %v6820_v26 = vpop.f32.mrf.mxu0 }
 0xb17   :  { %v2696_v27 = vpop.f32.mrf.mxu0 }
 0xb18   :  { %6871 = vmatmul.mubr.msk.f32.vlgmr.msra.gmra.mxu1 %vm456_vm1, %v2696_v27 }
 0xb19   :  { %6880 = vmatpush3.msra.mxu1 %v7585_v42  ;;  %v6855_v28 = vpop.f32.mrf.mxu0  ;;  %6873 = vmatprep.mubr.msk.f32.mxu1 %vm7278_vm0, %v7277_v0 }
 0xb1a   :  { %6881 = vmatprep.subr.mxu1 %v7277_v0  ;;  %v5276_v28 = vld [vmem:[%s9650_s5] ss:$0 sm:$0xff] }
 0xb1b   :  { %6882 = vmatpush3.msra.mxu1 %v7588_v45  ;;  %v2701_v29 = vpop.f32.mrf.mxu0 }
 0xb1c   :  { %6883 = vmatprep.subr.mxu1 %v7277_v0  ;;  %6874 = vmatmul.mubr.msk.f32.gmra.mxu1 %vm456_vm1, %v2701_v29 }
 0xb1d   :  { %6884 = vmatpush3.msra.mxu1 %v7595_v48  ;;  %v6858_v30 = vpop.f32.mrf.mxu0  ;;  %6876 = vmatprep.mubr.msk.f32.mxu1 %vm7278_vm0, %v7277_v0 }
 0xb1e   :  { %6885 = vmatprep.subr.mxu1 %v7277_v0 }
 0xb1f   :  { %6886 = vmatpush3.msra.mxu1 %v7602_v51  ;;  %v2706_v31 = vpop.f32.mrf.mxu0 }
 0xb20   :  { %6887 = vmatprep.subr.mxu1 %v7277_v0  ;;  %6877 = vmatmul.mubr.msk.f32.gmra.mxu1 %vm456_vm1, %v2706_v31 }
 0xb21   :  { %6888 = vmatpush3.msra.mxu1 %v7609_v54  ;;  %v6861_v32 = vpop.f32.mrf.mxu0  ;;  %6911 = vmatprep.mubr.msk.f32.mxu1 %vm7278_vm0, %v7277_v0 }
 0xb22   :  { %6889 = vmatprep.subr.mxu1 %v7277_v0 }
 0xb23   :  { %6890 = vmatpush3.msra.mxu1 %v7616_v57 }
 0xb24   :  { %6891 = vmatprep.subr.mxu1 %v7277_v0 }
 0xb25   :  { %6892 = vmatpush3.msra.mxu1 %v7625_v60 }
 0xb26   :  { %6893 = vmatprep.subr.mxu1 %v7277_v0 }
 0xb27   :  { %6894 = vmatpush3.msra.mxu1 %v7634_v63 }
 0xb28   :  { %6895 = vmatprep.subr.mxu1 %v7277_v0 }
 0xb29   :  { %6896 = vmatpush3.msra.mxu1 %v7643_v13 }
 0xb2a   :  { %6897 = vmatprep.subr.mxu1 %v7277_v0 }
 0xb2b   :  { %6898 = vmatpush3.msra.mxu1 %v7652_v14 }
 0xb2c   :  { %6899 = vmatprep.subr.mxu1 %v7277_v0 }
 0xb2d   :  { %6900 = vmatpush3.msra.mxu1 %v7661_v15 }
 0xb2e   :  { %6901 = vmatprep.subr.mxu1 %v7277_v0 }
 0xb2f   :  { %6902 = vmatpush3.msra.mxu1 %v7670_v16 }
 0xb30   :  { %6903 = vmatprep.subr.mxu1 %v7277_v0 }
 0xb31   :  { %6904 = vmatpush3.msra.mxu1 %v7677_v4 }
 0xb32   :  { %6905 = vmatprep.subr.mxu1 %v7277_v0 }
 0xb33   :  { %6906 = vmatpush3.msra.mxu1 %v7684_v2 }
 0xb34   :  { %6907 = vmatprep.subr.mxu1 %v7277_v0 }
 0xb35   :  { %6908 = vmatpush3.msra.mxu1 %v7690_v17 }
 0xb36   :  { %6909 = vmatprep.subr.mxu1 %v7277_v0 }
 0xb37   :  { %6910 = vmatpush3.msra.mxu1 %v7696_v18 }
 0xb38   :  { %6912 = vmatmul.mubr.f32.vlgmr.msra.gmra.mxu1 %v5256_v33  ;;  %6978 = vmatprep.subr.mxu1 %v7277_v0 }
 0xb39   :  { %6914 = vmatprep.mubr.msk.f32.mxu1 %vm7278_vm0, %v7277_v0 }
 0xb3c   :  { %6915 = vmatmul.mubr.f32.gmra.mxu1 %v5257_v34 }
 0xb3d   :  { %6917 = vmatprep.mubr.msk.f32.mxu1 %vm7278_vm0, %v7277_v0 }
 0xb40   :  { %6918 = vmatmul.mubr.f32.gmra.mxu1 %v5258_v35 }
 0xb41   :  { %6986 = vmatprep.mubr.msk.f32.mxu1 %vm7278_vm0, %v7277_v0 }
 0xbd8   :  { %v2790_v40 = vpop.f32.mrf.mxu1 }
 0xbd9   :  { %v8801_v41 = vadd.f32 %v2790_v40, %v8720_v19  ;;  %v5284_v19 = vld [vmem:[%s9652_s7 + $0x50] sm:$0xff]  ;;  %v3266_v40 = vld [vmem:[%s9652_s7 + $0x28] sm:$0xff] }
 0xbda   :  { %v6872_v43 = vpop.f32.mrf.mxu1 }
 0xbdb   :  { %v3264_v43 = vld [vmem:[%s9652_s7 + $0x18] sm:$0xff] }
 0xbdc   :  { %v2795_v44 = vpop.f32.mrf.mxu1 }
 0xbdd   :  { %v8804_v46 = vadd.f32 %v2795_v44, %v8723_v22  ;;  %v3263_v44 = vld [vmem:[%s9652_s7 + $0x10] sm:$0xff] }
 0xbde   :  { %v6875_v47 = vpop.f32.mrf.mxu1 }
 0xbdf   :  { %v3261_v47 = vld [vmem:[%s9652_s7] sm:$0xff] }
 0xbe0   :  { %v2800_v49 = vpop.f32.mrf.mxu1 }
 0xbe1   :  { %v8807_v50 = vadd.f32 %v2800_v49, %v8726_v25  ;;  %v5283_v49 = vld [vmem:[%s9652_s7 + $0x48] sm:$0xff] }
 0xbe2   :  { %v6878_v52 = vpop.f32.mrf.mxu1 }
 0xbe3   :  { %v5302_v52 = vld [vmem:[%s9652_s7 + $0xb8] sm:$0xff] }
 0xbf8   :  { %v2877_v53 = vpop.f32.mrf.mxu1 }
 0xbf9   :  { %6929 = vmatmul.mubr.msk.f32.vlgmr.msra.gmra.mxu0 %vm456_vm1, %v2877_v53 }
 0xbfa   :  { %6938 = vmatpush3.msra.mxu0 %v7585_v42  ;;  %v6913_v55 = vpop.f32.mrf.mxu1  ;;  %6931 = vmatprep.mubr.msk.f32.mxu0 %vm7278_vm0, %v7277_v0 }
 0xbfb   :  { %6939 = vmatprep.subr.mxu0 %v7277_v0  ;;  %v5301_v55 = vld [vmem:[%s9652_s7 + $0xb0] sm:$0xff] }
 0xbfc   :  { %6940 = vmatpush3.msra.mxu0 %v7588_v45  ;;  %v2882_v56 = vpop.f32.mrf.mxu1 }
 0xbfd   :  { %6941 = vmatprep.subr.mxu0 %v7277_v0  ;;  %6932 = vmatmul.mubr.msk.f32.gmra.mxu0 %vm456_vm1, %v2882_v56 }
 0xbfe   :  { %6942 = vmatpush3.msra.mxu0 %v7595_v48  ;;  %v6916_v58 = vpop.f32.mrf.mxu1  ;;  %6934 = vmatprep.mubr.msk.f32.mxu0 %vm7278_vm0, %v7277_v0  ;;  %v5266_v48 = vld [vmem:[%s9648_s3 + $0x168] sm:$0xff] }
 0xbff   :  { %6943 = vmatprep.subr.mxu0 %v7277_v0  ;;  %v5300_v58 = vld [vmem:[%s9652_s7 + $0xa8] sm:$0xff] }
 0xc00   :  { %6944 = vmatpush3.msra.mxu0 %v7602_v51  ;;  %v2887_v42 = vpop.f32.mrf.mxu1  ;;  %v5267_v51 = vld [vmem:[%s9648_s3 + $0x170] sm:$0xff] }
 0xc01   :  { %6945 = vmatprep.subr.mxu0 %v7277_v0  ;;  %6935 = vmatmul.mubr.msk.f32.gmra.mxu0 %vm456_vm1, %v2887_v42 }
 0xc02   :  { %6946 = vmatpush3.msra.mxu0 %v7609_v54  ;;  %v6919_v45 = vpop.f32.mrf.mxu1  ;;  %6969 = vmatprep.mubr.msk.f32.mxu0 %vm7278_vm0, %v7277_v0  ;;  %v5268_v54 = vld [vmem:[%s9648_s3 + $0x178] sm:$0x3] }
 0xc03   :  { %6947 = vmatprep.subr.mxu0 %v7277_v0 }
 0xc04   :  { %6948 = vmatpush3.msra.mxu0 %v7616_v57  ;;  %v5272_v57 = vld [vmem:[%s9649_s4 + $0x1f8] sm:$0xff] }
 0xc05   :  { %6949 = vmatprep.subr.mxu0 %v7277_v0  ;;  %6979 = vmatpush3.msra.mxu1 %v5272_v57  ;;  %v5299_v57 = vld [vmem:[%s9652_s7 + $0xa0] sm:$0xff] }
 0xc06   :  { %6950 = vmatpush3.msra.mxu0 %v7625_v60  ;;  %v5271_v60 = vld [vmem:[%s9649_s4 + $0x1f0] sm:$0xff]  ;;  %6980 = vmatprep.subr.mxu1 %v7277_v0 }
 0xc07   :  { %6951 = vmatprep.subr.mxu0 %v7277_v0  ;;  %6981 = vmatpush3.msra.mxu1 %v5271_v60  ;;  %v5313_v60 = vld [vmem:[%s9652_s7 + $0xf0] sm:$0xff] }
 0xc08   :  { %6952 = vmatpush3.msra.mxu0 %v7634_v63  ;;  %v5270_v63 = vld [vmem:[%s9649_s4 + $0x1e8] sm:$0xff]  ;;  %6982 = vmatprep.subr.mxu1 %v7277_v0 }
 0xc09   :  { %6953 = vmatprep.subr.mxu0 %v7277_v0  ;;  %6983 = vmatpush3.msra.mxu1 %v5270_v63  ;;  %v5298_v63 = vld [vmem:[%s9652_s7 + $0x98] sm:$0xff] }
 0xc0a   :  { %6954 = vmatpush3.msra.mxu0 %v7643_v13  ;;  %6984 = vmatprep.subr.mxu1 %v7277_v0  ;;  %v5269_v13 = vld [vmem:[%s9649_s4 + $0x1e0] sm:$0xff] }
 0xc0b   :  { %6955 = vmatprep.subr.mxu0 %v7277_v0  ;;  %6985 = vmatpush3.msra.mxu1 %v5269_v13  ;;  %v5312_v13 = vld [vmem:[%s9652_s7 + $0xe8] sm:$0xff] }
 0xc0c   :  { %6956 = vmatpush3.msra.mxu0 %v7652_v14  ;;  %6995 = vmatprep.subr.mxu1 %v7277_v0 }
 0xc0d   :  { %6957 = vmatprep.subr.mxu0 %v7277_v0 }
 0xc0e   :  { %6958 = vmatpush3.msra.mxu0 %v7661_v15 }
 0xc0f   :  { %6959 = vmatprep.subr.mxu0 %v7277_v0 }
 0xc10   :  { %6960 = vmatpush3.msra.mxu0 %v7670_v16 }
 0xc11   :  { %6961 = vmatprep.subr.mxu0 %v7277_v0 }
 0xc12   :  { %6962 = vmatpush3.msra.mxu0 %v7677_v4 }
 0xc13   :  { %6963 = vmatprep.subr.mxu0 %v7277_v0 }
 0xc14   :  { %6964 = vmatpush3.msra.mxu0 %v7684_v2 }
 0xc15   :  { %6965 = vmatprep.subr.mxu0 %v7277_v0 }
 0xc16   :  { %6966 = vmatpush3.msra.mxu0 %v7690_v17 }
 0xc17   :  { %6967 = vmatprep.subr.mxu0 %v7277_v0 }
 0xc18   :  { %6968 = vmatpush3.msra.mxu0 %v7696_v18 }
 0xc19   :  { %6970 = vmatmul.mubr.f32.vlgmr.msra.gmra.mxu0 %v5266_v48  ;;  %7013 = vmatprep.subr.mxu0 %v7277_v0  ;;  %v5292_v48 = vld [vmem:[%s9651_s6 + $0x4] sm:$0x3] }
 0xc1a   :  { %6972 = vmatprep.mubr.msk.f32.mxu0 %vm7278_vm0, %v7277_v0  ;;  %7014 = vmatpush3.msra.mxu0 %v5289_v8  ;;  %v5325_v8 = vld [vmem:[%s9652_s7 + $0x130] sm:$0xff] }
 0xc1b   :  { %7015 = vmatprep.subr.mxu0 %v7277_v0 }
 0xc1c   :  { %7016 = vmatpush3.msra.mxu0 %v5288_v5 }
 0xc1d   :  { %6973 = vmatmul.mubr.f32.gmra.mxu0 %v5267_v51  ;;  %7017 = vmatprep.subr.mxu0 %v7277_v0  ;;  %v5304_v51 = vld [vmem:[%s9651_s6 + $0x6] sm:$0x3] }
 0xc1e   :  { %6975 = vmatprep.mubr.msk.f32.mxu0 %vm7278_vm0, %v7277_v0  ;;  %7018 = vmatpush3.msra.mxu0 %v5287_v6 }
 0xc1f   :  { %7019 = vmatprep.subr.mxu0 %v7277_v0 }
 0xc20   :  { %7020 = vmatpush3.msra.mxu0 %v5286_v3 }
 0xc21   :  { %6976 = vmatmul.mubr.f32.gmra.mxu0 %v5268_v54  ;;  %7021 = vmatprep.subr.mxu0 %v7277_v0  ;;  %v5314_v54 = vld [vmem:[%s9652_s7 + $0xf8] sm:$0xff] }
 0xc22   :  { %7029 = vmatprep.mubr.msk.f32.mxu0 %vm7278_vm0, %v7277_v0  ;;  %7022 = vmatpush3.msra.mxu0 %v5285_v1  ;;  %v5316_v1 = vld [vmem:[%s9651_s6 + $0x8] sm:$0x3] }
 0xc23   :  { %7023 = vmatprep.subr.mxu0 %v7277_v0 }
 0xc24   :  { %7024 = vmatpush3.msra.mxu0 %v5284_v19  ;;  %v5328_v19 = vld [vmem:[%s9651_s6 + $0xa] sm:$0x3] }
 0xc25   :  { %7025 = vmatprep.subr.mxu0 %v7277_v0 }
 0xc26   :  { %7026 = vmatpush3.msra.mxu0 %v5283_v49 }
 0xc27   :  { %7027 = vmatprep.subr.mxu0 %v7277_v0 }
 0xcb9   :  { %v2971_v14 = vpop.f32.mrf.mxu0 }
 0xcba   :  { %v2985_v15 = vadd.f32 %v2971_v14, %v8801_v41  ;;  %v3265_v41 = vld [vmem:[%s9652_s7 + $0x20] sm:$0xff]  ;;  %v5297_v14 = vld [vmem:[%s9652_s7 + $0x90] sm:$0xff] }
 0xcbb   :  { %v6930_v16 = vpop.f32.mrf.mxu0 }
 0xcbc   :  { %v5296_v16 = vld [vmem:[%s9652_s7 + $0x88] sm:$0xff] }
 0xcbd   :  { %v2976_v4 = vpop.f32.mrf.mxu0 }
 0xcbe   :  { %v2986_v2 = vadd.f32 %v2976_v4, %v8804_v46  ;;  %v3262_v46 = vld [vmem:[%s9652_s7 + $0x8] sm:$0xff]  ;;  %v5310_v4 = vld [vmem:[%s9652_s7 + $0xd8] sm:$0xff] }
 0xcbf   :  { %v6933_v17 = vpop.f32.mrf.mxu0 }
 0xcc0   :  { %v5309_v17 = vld [vmem:[%s9652_s7 + $0xd0] sm:$0xff] }
 0xcc1   :  { %v2981_v18 = vpop.f32.mrf.mxu0 }
 0xcc2   :  { %v2987_v59 = vadd.f32 %v2981_v18, %v8807_v50  ;;  %v5282_v50 = vld [vmem:[%s9652_s7 + $0x40] sm:$0xff]  ;;  %v5308_v18 = vld [vmem:[%s9652_s7 + $0xc8] sm:$0xff] }
 0xcc3   :  { %v6936_v61 = vpop.f32.mrf.mxu0  ;;  %7028 = vmatpush3.msra.mxu0 %v5282_v50  ;;  %v5350_v50 = vld [vmem:[%s9652_s7 + $0x1b8] sm:$0xff] }
 0xcc4   :  { %7051 = vmatprep.subr.mxu0 %v7277_v0 }
 0xcd9   :  { %v3058_v62 = vpop.f32.mrf.mxu0 }
 0xcda   :  { %6987 = vmatmul.mubr.msk.f32.vlgmr.msra.gmra.mxu1 %vm456_vm1, %v3058_v62 }
 0xcdb   :  { %v6971_v11 = vpop.f32.mrf.mxu0  ;;  %6989 = vmatprep.mubr.msk.f32.mxu1 %vm7278_vm0, %v7277_v0 }
 0xcdd   :  { %v3063_v12 = vpop.f32.mrf.mxu0 }
 0xcde   :  { %6990 = vmatmul.mubr.msk.f32.gmra.mxu1 %vm456_vm1, %v3063_v12 }
 0xcdf   :  { %v6974_v9 = vpop.f32.mrf.mxu0  ;;  %6992 = vmatprep.mubr.msk.f32.mxu1 %vm7278_vm0, %v7277_v0 }
 0xce1   :  { %v3068_v10 = vpop.f32.mrf.mxu0 }
 0xce2   :  { %6993 = vmatmul.mubr.msk.f32.gmra.mxu1 %vm456_vm1, %v3068_v10  ;;  %v5326_v10 = vld [vmem:[%s9652_s7 + $0x138] sm:$0xff] }
 0xce3   :  { %v6977_v7 = vpop.f32.mrf.mxu0  ;;  %7001 = vmatprep.mubr.msk.f32.mxu1 %vm7278_vm0, %v7277_v0 }
 0xd9a   :  { %v3152_v20 = vpop.f32.mrf.mxu1 }
 0xd9b   :  { %v3166_v26 = vadd.f32 %v3152_v20, %v2985_v15  ;;  %v5311_v15 = vld [vmem:[%s9652_s7 + $0xe0] sm:$0xff]  ;;  %v5324_v20 = vld [vmem:[%s9652_s7 + $0x128] sm:$0xff] }
 0xd9c   :  { %v6988_v21 = vpop.f32.mrf.mxu1 }
 0xd9d   :  { %v3176_v32 = vadd.f32 %v5276_v28, %v3166_v26  ;;  %v5323_v21 = vld [vmem:[%s9652_s7 + $0x120] sm:$0xff]  ;;  %v5336_v26 = vld [vmem:[%s9652_s7 + $0x168] sm:$0xff] }
 0xd9e   :  { %v3157_v22 = vpop.f32.mrf.mxu1 }
 0xd9f   :  { %v3167_v24 = vadd.f32 %v3157_v22, %v2986_v2  ;;  %v8927_v35 = vmax.f32 %v3176_v32, 0.0  ;;  %v5295_v2 = vld [vmem:[%s9652_s7 + $0x80] sm:$0xff]  ;;  %v5338_v22 = vld [vmem:[%s9652_s7 + $0x178] sm:$0xff]  ;;  %v5332_v32 = vld [vmem:[%s9652_s7 + $0x148] sm:$0xff] }
 0xda0   :  { %v6991_v23 = vpop.f32.mrf.mxu1 }
 0xda1   :  { %v3177_v30 = vadd.f32 %v5276_v28, %v3167_v24  ;;  %v5322_v23 = vld [vmem:[%s9652_s7 + $0x118] sm:$0xff]  ;;  %v5337_v24 = vld [vmem:[%s9652_s7 + $0x170] sm:$0xff] }
 0xda2   :  { %v3162_v25 = vpop.f32.mrf.mxu1 }
 0xda3   :  { %v3168_v27 = vadd.f32 %v3162_v25, %v2987_v59  ;;  %v8922_v34 = vmax.f32 %v3177_v30, 0.0  ;;  %v5307_v59 = vld [vmem:[%s9652_s7 + $0xc0] sm:$0xff]  ;;  %v5321_v25 = vld [vmem:[%s9652_s7 + $0x110] sm:$0xff]  ;;  %v5334_v30 = vld [vmem:[%s9652_s7 + $0x158] sm:$0xff] }
 0xda4   :  { %v6994_v29 = vpop.f32.mrf.mxu1 }
 0xda5   :  { %v3178_v31 = vadd.f32 %v5276_v28, %v3168_v27  ;;  %v5320_v27 = vld [vmem:[%s9652_s7 + $0x108] sm:$0xff]  ;;  %v5335_v28 = vld [vmem:[%s9652_s7 + $0x160] sm:$0xff] }
 0xda6   :  { %v5319_v29 = vld [vmem:[%s9652_s7 + $0x100] sm:$0xff] }
 0xda7   :  { %v8920_v33 = vmax.f32 %v3178_v31, 0.0  ;;  %v5333_v31 = vld [vmem:[%s9652_s7 + $0x150] sm:$0xff] }
 0xda9   :  { %6996 = vmatpush3.msk.msra.mxu1 %vm3187_vm2, %v8920_v33 }
 0xdaa   :  { %6997 = vmatprep.subr.mxu1 %v7277_v0 }
 0xdab   :  { %6998 = vmatpush3.msra.mxu1 %v8922_v34 }
 0xdac   :  { %6999 = vmatprep.subr.mxu1 %v7277_v0 }
 0xdad   :  { %7000 = vmatpush3.msra.mxu1 %v8927_v35 }
 0xdae   :  { %7004 = vmatprep.subr.mxu1 %v7277_v0  ;;  %7002 = vmatmul.mubr.msk.f32.vlgmr.msra.gmra.mxu1 %vm3183_vm3, %v3182_v36  ;;  %v5331_v36 = vld [vmem:[%s9652_s7 + $0x140] sm:$0xff] }
 0xdaf   :  { %7005 = vmatpush3.msk.msra.mxu1 %vm3187_vm2, %v8920_v33  ;;  %7010 = vmatprep.mubr.msk.f32.mxu1 %vm7278_vm0, %v7277_v0 }
 0xdb0   :  { %7006 = vmatprep.subr.mxu1 %v7277_v0 }
 0xdb1   :  { %7007 = vmatpush3.msra.mxu1 %v8922_v34 }
 0xdb2   :  { %7008 = vmatprep.subr.mxu1 %v7277_v0 }
 0xdb3   :  { %7009 = vmatpush3.msra.mxu1 %v8927_v35 }
 0xdb4   :  { %7011 = vmatmul.mubr.msk.f32.vlgmr.msra.gmra.mxu1 %vm3183_vm3, %v5279_v37  ;;  %7032 = vmatprep.subr.mxu1 %v7277_v0 }
 0xdb5   :  { %7033 = vmatpush3.msra.mxu1 %v3268_v38  ;;  %7048 = vmatprep.mubr.msk.f32.mxu1 %vm7278_vm0, %v7277_v0 }
 0xdb6   :  { %7034 = vmatprep.subr.mxu1 %v7277_v0 }
 0xdb7   :  { %7035 = vmatpush3.msra.mxu1 %v3267_v39 }
 0xdb8   :  { %7036 = vmatprep.subr.mxu1 %v7277_v0 }
 0xdb9   :  { %7037 = vmatpush3.msra.mxu1 %v3266_v40 }
 0xdba   :  { %7038 = vmatprep.subr.mxu1 %v7277_v0 }
 0xdbb   :  { %7039 = vmatpush3.msra.mxu1 %v3265_v41 }
 0xdbc   :  { %7040 = vmatprep.subr.mxu1 %v7277_v0 }
 0xdbd   :  { %7041 = vmatpush3.msra.mxu1 %v3264_v43 }
 0xdbe   :  { %7042 = vmatprep.subr.mxu1 %v7277_v0 }
 0xdbf   :  { %7043 = vmatpush3.msra.mxu1 %v3263_v44 }
 0xdc0   :  { %7044 = vmatprep.subr.mxu1 %v7277_v0 }
 0xdc1   :  { %7045 = vmatpush3.msra.mxu1 %v3262_v46 }
 0xdc2   :  { %7046 = vmatprep.subr.mxu1 %v7277_v0 }
 0xdc3   :  { %7047 = vmatpush3.msra.mxu1 %v3261_v47  ;;  %v5340_v47 = vld [vmem:[%s9651_s6 + $0xc] sm:$0x3] }
 0xdc4   :  { %7060 = vmatprep.subr.mxu1 %v7277_v0 }
 0xe6e   :  { %v3257_v53 = vpop.f32.mrf.mxu1 }
 0xe6f   :  { %7049 = vmatmul.mubr.msk.f32.vlgmr.msra.gmra.mxu1 %vm3353_vm4, %v3257_v53  ;;  %v5349_v53 = vld [vmem:[%s9652_s7 + $0x1b0] sm:$0xff] }
 0xe70   :  { %v7003_v56 = vpop.f32.mrf.mxu1  ;;  %7061 = vmatpush3.msra.mxu1 %v5302_v52  ;;  %7076 = vmatprep.mubr.msk.f32.mxu1 %vm7278_vm0, %v7277_v0 }
 0xe71   :  { %7062 = vmatprep.subr.mxu1 %v7277_v0  ;;  %v5348_v56 = vld [vmem:[%s9652_s7 + $0x1a8] sm:$0xff] }
 0xe72   :  { %7063 = vmatpush3.msra.mxu1 %v5301_v55  ;;  %v5352_v55 = vld [vmem:[%s9651_s6 + $0xe] sm:$0x3] }
 0xe73   :  { %7064 = vmatprep.subr.mxu1 %v7277_v0 }
 0xe74   :  { %v3340_v42 = vpop.f32.mrf.mxu1  ;;  %7065 = vmatpush3.msra.mxu1 %v5300_v58  ;;  %v5362_v58 = vld [vmem:[%s9652_s7 + $0x1f8] sm:$0xff] }
 0xe75   :  { %7030 = vmatmul.mubr.msk.f32.vlgmr.msra.gmra.mxu0 %vm3353_vm4, %v3340_v42  ;;  %7066 = vmatprep.subr.mxu1 %v7277_v0  ;;  %v5347_v42 = vld [vmem:[%s9652_s7 + $0x1a0] sm:$0xff] }
 0xe76   :  { %7052 = vmatpush3.msk.msra.mxu0 %vm3187_vm2, %v8920_v33  ;;  %v7012_v45 = vpop.f32.mrf.mxu1  ;;  %7057 = vmatprep.mubr.msk.f32.mxu0 %vm7278_vm0, %v7277_v0 }
 0xe77   :  { %7053 = vmatprep.subr.mxu0 %v7277_v0  ;;  %7067 = vmatpush3.msra.mxu1 %v5299_v57  ;;  %v5361_v45 = vld [vmem:[%s9652_s7 + $0x1f0] sm:$0xff]  ;;  %v5344_v57 = vld [vmem:[%s9652_s7 + $0x188] sm:$0xff] }
 0xe78   :  { %7054 = vmatpush3.msra.mxu0 %v8922_v34  ;;  %7068 = vmatprep.subr.mxu1 %v7277_v0 }
 0xe79   :  { %7055 = vmatprep.subr.mxu0 %v7277_v0  ;;  %7069 = vmatpush3.msra.mxu1 %v5298_v63  ;;  %v5343_v63 = vld [vmem:[%s9652_s7 + $0x180] sm:$0xff] }
 0xe7a   :  { %7056 = vmatpush3.msra.mxu0 %v8927_v35  ;;  %7070 = vmatprep.subr.mxu1 %v7277_v0 }
 0xe7b   :  { %7058 = vmatmul.mubr.msk.f32.vlgmr.msra.gmra.mxu0 %vm3183_vm3, %v5292_v48  ;;  %7079 = vmatprep.subr.mxu0 %v7277_v0  ;;  %v5346_v48 = vld [vmem:[%s9652_s7 + $0x198] sm:$0xff] }
 0xe7c   :  { %7080 = vmatpush3.msk.msra.mxu0 %vm3187_vm2, %v8920_v33  ;;  %7085 = vmatprep.mubr.msk.f32.mxu0 %vm7278_vm0, %v7277_v0 }
 0xe7d   :  { %7081 = vmatprep.subr.mxu0 %v7277_v0  ;;  %7071 = vmatpush3.msra.mxu1 %v5297_v14  ;;  %v5357_v14 = vld [vmem:[%s9652_s7 + $0x1d0] sm:$0xff] }
 0xe7e   :  { %7082 = vmatpush3.msra.mxu0 %v8922_v34  ;;  %7072 = vmatprep.subr.mxu1 %v7277_v0 }
 0xe7f   :  { %7083 = vmatprep.subr.mxu0 %v7277_v0  ;;  %7073 = vmatpush3.msra.mxu1 %v5296_v16  ;;  %v5355_v16 = vld [vmem:[%s9652_s7 + $0x1c0] sm:$0xff] }
 0xe80   :  { %7084 = vmatpush3.msra.mxu0 %v8927_v35  ;;  %7074 = vmatprep.subr.mxu1 %v7277_v0 }
 0xe81   :  { %7086 = vmatmul.mubr.msk.f32.vlgmr.msra.gmra.mxu0 %vm3183_vm3, %v5304_v51  ;;  %7088 = vmatprep.subr.mxu0 %v7277_v0  ;;  %v5345_v51 = vld [vmem:[%s9652_s7 + $0x190] sm:$0xff] }
 0xe82   :  { %7104 = vmatprep.mubr.msk.f32.mxu0 %vm7278_vm0, %v7277_v0  ;;  %7089 = vmatpush3.msra.mxu0 %v5314_v54  ;;  %v5360_v54 = vld [vmem:[%s9652_s7 + $0x1e8] sm:$0xff] }
 0xe83   :  { %7090 = vmatprep.subr.mxu0 %v7277_v0  ;;  %7075 = vmatpush3.msra.mxu1 %v5295_v2 }
 0xe84   :  { %7091 = vmatpush3.msra.mxu0 %v5313_v60  ;;  %7116 = vmatprep.subr.mxu1 %v7277_v0  ;;  %v5359_v60 = vld [vmem:[%s9652_s7 + $0x1e0] sm:$0xff] }
 0xe85   :  { %7092 = vmatprep.subr.mxu0 %v7277_v0 }
 0xe86   :  { %7093 = vmatpush3.msra.mxu0 %v5312_v13  ;;  %v5358_v13 = vld [vmem:[%s9652_s7 + $0x1d8] sm:$0xff] }
 0xe87   :  { %7094 = vmatprep.subr.mxu0 %v7277_v0 }
 0xe88   :  { %7095 = vmatpush3.msra.mxu0 %v5311_v15  ;;  %v5356_v15 = vld [vmem:[%s9652_s7 + $0x1c8] sm:$0xff] }
 0xe89   :  { %7096 = vmatprep.subr.mxu0 %v7277_v0 }
 0xe8a   :  { %7097 = vmatpush3.msra.mxu0 %v5310_v4 }
 0xe8b   :  { %7098 = vmatprep.subr.mxu0 %v7277_v0 }
 0xe8c   :  { %7099 = vmatpush3.msra.mxu0 %v5309_v17 }
 0xe8d   :  { %7100 = vmatprep.subr.mxu0 %v7277_v0 }
 0xe8e   :  { %7101 = vmatpush3.msra.mxu0 %v5308_v18 }
 0xe8f   :  { %7102 = vmatprep.subr.mxu0 %v7277_v0 }
 0xe90   :  { %7103 = vmatpush3.msra.mxu0 %v5307_v59 }
 0xe91   :  { %7107 = vmatprep.subr.mxu0 %v7277_v0 }
 0xf2f   :  { %v3496_v61 = vpop.f32.mrf.mxu1 }
 0xf31   :  { %v7050_v62 = vpop.f32.mrf.mxu1 }
 0xf35   :  { %v3423_v11 = vpop.f32.mrf.mxu0 }
 0xf36   :  { %v9088_v12 = vadd.f32 %v3496_v61, %v3423_v11 }
 0xf37   :  { %v7031_v9 = vpop.f32.mrf.mxu0 }
 0xf3b   :  { %v3571_v7 = vpop.f32.mrf.mxu0 }
 0xf3c   :  { %7077 = vmatmul.mubr.msk.f32.vlgmr.msra.gmra.mxu1 %vm3353_vm4, %v3571_v7  ;;  %v5371_v7 = vld [vmem:[%s9652_s7 + $0x220] sm:$0xff] }
 0xf3d   :  { %v7059_v5 = vpop.f32.mrf.mxu0  ;;  %7117 = vmatpush3.msra.mxu1 %v5326_v10  ;;  %7132 = vmatprep.mubr.msk.f32.mxu1 %vm7278_vm0, %v7277_v0 }
 0xf3e   :  { %7118 = vmatprep.subr.mxu1 %v7277_v0  ;;  %v5369_v5 = vld [vmem:[%s9652_s7 + $0x210] sm:$0xff] }
 0xf3f   :  { %7119 = vmatpush3.msra.mxu1 %v5325_v8  ;;  %v5370_v8 = vld [vmem:[%s9652_s7 + $0x218] sm:$0xff] }
 0xf40   :  { %7120 = vmatprep.subr.mxu1 %v7277_v0 }
 0xf41   :  { %v3729_v6 = vpop.f32.mrf.mxu0  ;;  %7121 = vmatpush3.msra.mxu1 %v5324_v20 }
 0xf42   :  { %7105 = vmatmul.mubr.msk.f32.vlgmr.msra.gmra.mxu0 %vm3353_vm4, %v3729_v6  ;;  %7122 = vmatprep.subr.mxu1 %v7277_v0  ;;  %v5368_v6 = vld [vmem:[%s9652_s7 + $0x208] sm:$0xff] }
 0xf43   :  { %7108 = vmatpush3.msk.msra.mxu0 %vm3187_vm2, %v8920_v33  ;;  %v7087_v3 = vpop.f32.mrf.mxu0  ;;  %7113 = vmatprep.mubr.msk.f32.mxu0 %vm7278_vm0, %v7277_v0 }
 0xf44   :  { %7109 = vmatprep.subr.mxu0 %v7277_v0  ;;  %7123 = vmatpush3.msra.mxu1 %v5323_v21  ;;  %v5367_v3 = vld [vmem:[%s9652_s7 + $0x200] sm:$0xff] }
 0xf45   :  { %7110 = vmatpush3.msra.mxu0 %v8922_v34  ;;  %7124 = vmatprep.subr.mxu1 %v7277_v0 }
 0xf46   :  { %7111 = vmatprep.subr.mxu0 %v7277_v0  ;;  %7125 = vmatpush3.msra.mxu1 %v5322_v23 }
 0xf47   :  { %7112 = vmatpush3.msra.mxu0 %v8927_v35  ;;  %7126 = vmatprep.subr.mxu1 %v7277_v0 }
 0xf48   :  { %7114 = vmatmul.mubr.msk.f32.vlgmr.msra.gmra.mxu0 %vm3183_vm3, %v5316_v1  ;;  %7135 = vmatprep.subr.mxu0 %v7277_v0 }
 0xf49   :  { %7136 = vmatpush3.msk.msra.mxu0 %vm3187_vm2, %v8920_v33  ;;  %7141 = vmatprep.mubr.msk.f32.mxu0 %vm7278_vm0, %v7277_v0 }
 0xf4a   :  { %7137 = vmatprep.subr.mxu0 %v7277_v0  ;;  %7127 = vmatpush3.msra.mxu1 %v5321_v25 }
 0xf4b   :  { %7138 = vmatpush3.msra.mxu0 %v8922_v34  ;;  %7128 = vmatprep.subr.mxu1 %v7277_v0 }
 0xf4c   :  { %7139 = vmatprep.subr.mxu0 %v7277_v0  ;;  %7129 = vmatpush3.msra.mxu1 %v5320_v27  ;;  %v4723_v27 = vld [vmem:[%s9655_s10 + $0xf0] sm:$0xff] }
 0xf4d   :  { %7140 = vmatpush3.msra.mxu0 %v8927_v35  ;;  %7130 = vmatprep.subr.mxu1 %v7277_v0 }
 0xf4e   :  { %7142 = vmatmul.mubr.msk.f32.vlgmr.msra.gmra.mxu0 %vm3183_vm3, %v5328_v19  ;;  %7144 = vmatprep.subr.mxu0 %v7277_v0 }
 0xf4f   :  { %7160 = vmatprep.mubr.msk.f32.mxu0 %vm7278_vm0, %v7277_v0  ;;  %7145 = vmatpush3.msra.mxu0 %v5338_v22 }
 0xf50   :  { %7146 = vmatprep.subr.mxu0 %v7277_v0  ;;  %7131 = vmatpush3.msra.mxu1 %v5319_v29  ;;  %v4719_v29 = vld [vmem:[%s9655_s10 + $0xd0] sm:$0xff] }
 0xf51   :  { %7147 = vmatpush3.msra.mxu0 %v5337_v24  ;;  %7163 = vmatprep.subr.mxu1 %v7277_v0 }
 0xf52   :  { %7148 = vmatprep.subr.mxu0 %v7277_v0 }
 0xf53   :  { %7149 = vmatpush3.msra.mxu0 %v5336_v26  ;;  %v4724_v26 = vld [vmem:[%s9655_s10 + $0xf8] sm:$0xff] }
 0xf54   :  { %7150 = vmatprep.subr.mxu0 %v7277_v0 }
 0xf55   :  { %7151 = vmatpush3.msra.mxu0 %v5335_v28  ;;  %v4720_v28 = vld [vmem:[%s9655_s10 + $0xd8] sm:$0xff] }
 0xf56   :  { %7152 = vmatprep.subr.mxu0 %v7277_v0 }
 0xf57   :  { %7153 = vmatpush3.msra.mxu0 %v5334_v30  ;;  %v4716_v30 = vld [vmem:[%s9655_s10 + $0xb8] sm:$0xff] }
 0xf58   :  { %7154 = vmatprep.subr.mxu0 %v7277_v0 }
 0xf59   :  { %7155 = vmatpush3.msra.mxu0 %v5333_v31  ;;  %v4715_v31 = vld [vmem:[%s9655_s10 + $0xb0] sm:$0xff] }
 0xf5a   :  { %7156 = vmatprep.subr.mxu0 %v7277_v0 }
 0xf5b   :  { %7157 = vmatpush3.msra.mxu0 %v5332_v32  ;;  %v4712_v32 = vld [vmem:[%s9655_s10 + $0x98] sm:$0xff] }
 0xf5c   :  { %7158 = vmatprep.subr.mxu0 %v7277_v0 }
 0xf5d   :  { %7159 = vmatpush3.msra.mxu0 %v5331_v36  ;;  %v4711_v36 = vld [vmem:[%s9655_s10 + $0x90] sm:$0xff] }
 0xf5e   :  { %7191 = vmatprep.subr.mxu0 %v7277_v0 }
 0xffc   :  { %v3653_v37 = vpop.f32.mrf.mxu1 }
 0xffd   :  { %v3657_v38 = vadd.f32 %v3653_v37, %v9088_v12  ;;  %v5364_v12 = vld [vmem:[%s9651_s6 + $0x10] sm:$0x3]  ;;  %v4708_v37 = vld [vmem:[%s9655_s10 + $0x78] sm:$0xff]  ;;  %s7279_s6 = smov [#allocation2]  }
 0xffe   :  { %v7078_v39 = vpop.f32.mrf.mxu1  ;;  %s5114_s3 = sshll.u32 %s7279_s6, 4  ;;  %s5115_s3 = int_to_ptr.vmem [resolvable:$true] %s5114_s3 }
 0xfff   :  { %v4704_v39 = vld [vmem:[%s9655_s10 + $0x58] sm:$0xff]  ;;  %s7255_s22 = scalar_lea.vmem %s5115_s3, 32  ;;  %p7260_p1 = scmp.lt.s32.totalorder %s5115_s3, %s5115_s3 }
0x1000   :  { %p7256_p0 = scmp.ne.s32.totalorder %s5115_s3, %s7255_s22  ;;  %p7261_p2 = scmp.lt.s32.totalorder %s7255_s22, %s7255_s22 }
0x1002   :  { %v3811_v40 = vpop.f32.mrf.mxu0  ;;  %p7262_p3 = por %p7261_p2, %p7260_p1 }
0x1003   :  { %v9187_v41 = vadd.f32 %v3811_v40, %v3657_v38  ;;  %v4707_v38 = vld [vmem:[%s9655_s10 + $0x70] sm:$0xff] }
0x1004   :  { %v7106_v43 = vpop.f32.mrf.mxu0  ;;  %v4703_v40 = vld [vmem:[%s9655_s10 + $0x50] sm:$0xff]  ;;  %p7263_p4 = pnand %p7262_p3, %p7256_p0 }
0x1005   :  { %v4699_v43 = vld [vmem:[%s9655_s10 + $0x30] sm:$0xff] }
0x1008   :  { %v3887_v44 = vpop.f32.mrf.mxu0 }
0x1009   :  { %7133 = vmatmul.mubr.msk.f32.vlgmr.msra.gmra.mxu1 %vm3353_vm4, %v3887_v44 }
0x100a   :  { %7164 = vmatpush3.msk.msra.mxu1 %vm3187_vm2, %v8920_v33  ;;  %v7115_v46 = vpop.f32.mrf.mxu0  ;;  %7169 = vmatprep.mubr.msk.f32.mxu1 %vm7278_vm0, %v7277_v0 }
0x100b   :  { %7165 = vmatprep.subr.mxu1 %v7277_v0  ;;  %v5376_v46 = vld [vmem:[%s9653_s8] ss:$0 sm:$0xff] }
0x100c   :  { %7166 = vmatpush3.msra.mxu1 %v8922_v34 }
0x100d   :  { %7167 = vmatprep.subr.mxu1 %v7277_v0 }
0x100e   :  { %7168 = vmatpush3.msra.mxu1 %v8927_v35  ;;  %v4045_v49 = vpop.f32.mrf.mxu0 }
0x100f   :  { %7170 = vmatmul.mubr.msk.f32.vlgmr.msra.gmra.mxu1 %vm3183_vm3, %v5340_v47  ;;  %7161 = vmatmul.mubr.msk.f32.vlgmr.msra.gmra.mxu0 %vm3353_vm4, %v4045_v49 }
0x1010   :  { %7192 = vmatpush3.msk.msra.mxu0 %vm3187_vm2, %v8920_v33  ;;  %7197 = vmatprep.mubr.msk.f32.mxu0 %vm7278_vm0, %v7277_v0  ;;  %v7143_v52 = vpop.f32.mrf.mxu0 }
0x1011   :  { %7193 = vmatprep.subr.mxu0 %v7277_v0  ;;  %7172 = vmatprep.subr.mxu1 %v7277_v0 }
0x1012   :  { %7194 = vmatpush3.msra.mxu0 %v8922_v34  ;;  %7173 = vmatpush3.msra.mxu1 %v5350_v50 }
0x1013   :  { %7195 = vmatprep.subr.mxu0 %v7277_v0  ;;  %7174 = vmatprep.subr.mxu1 %v7277_v0 }
0x1014   :  { %7196 = vmatpush3.msra.mxu0 %v8927_v35  ;;  %7175 = vmatpush3.msra.mxu1 %v5349_v53  ;;  %v4615_v53 = vld [vmem:[%s9654_s9] sm:$0x3] }
0x1015   :  { %7198 = vmatmul.mubr.msk.f32.vlgmr.msra.gmra.mxu0 %vm3183_vm3, %v5352_v55  ;;  %7176 = vmatprep.subr.mxu1 %v7277_v0  ;;  %v4722_v55 = vld [vmem:[%s9655_s10 + $0xe8] sm:$0xff] }
0x1016   :  { %7177 = vmatpush3.msra.mxu1 %v5348_v56  ;;  %7200 = vmatprep.subr.mxu0 %v7277_v0  ;;  %v4721_v56 = vld [vmem:[%s9655_s10 + $0xe0] sm:$0xff] }
0x1017   :  { %7178 = vmatprep.subr.mxu1 %v7277_v0  ;;  %7201 = vmatpush3.msra.mxu0 %v5362_v58  ;;  %v4718_v58 = vld [vmem:[%s9655_s10 + $0xc8] sm:$0xff] }
0x1018   :  { %7179 = vmatpush3.msra.mxu1 %v5347_v42  ;;  %7202 = vmatprep.subr.mxu0 %v7277_v0  ;;  %v4717_v42 = vld [vmem:[%s9655_s10 + $0xc0] sm:$0xff] }
0x1019   :  { %7180 = vmatprep.subr.mxu1 %v7277_v0  ;;  %7203 = vmatpush3.msra.mxu0 %v5361_v45  ;;  %v4714_v45 = vld [vmem:[%s9655_s10 + $0xa8] sm:$0xff] }
0x101a   :  { %7181 = vmatpush3.msra.mxu1 %v5346_v48  ;;  %7204 = vmatprep.subr.mxu0 %v7277_v0  ;;  %v4713_v48 = vld [vmem:[%s9655_s10 + $0xa0] sm:$0xff] }
0x101b   :  { %7182 = vmatprep.subr.mxu1 %v7277_v0  ;;  %7188 = vmatprep.mubr.msk.f32.mxu1 %vm7278_vm0, %v7277_v0 }
0x101c   :  { %7216 = vmatprep.mubr.msk.f32.mxu0 %vm7278_vm0, %v7277_v0  ;;  %7183 = vmatpush3.msra.mxu1 %v5345_v51  ;;  %v4710_v51 = vld [vmem:[%s9655_s10 + $0x88] sm:$0xff] }
0x101d   :  { %7184 = vmatprep.subr.mxu1 %v7277_v0  ;;  %7205 = vmatpush3.msra.mxu0 %v5360_v54  ;;  %v4709_v54 = vld [vmem:[%s9655_s10 + $0x80] sm:$0xff] }
0x101e   :  { %7185 = vmatpush3.msra.mxu1 %v5344_v57  ;;  %7206 = vmatprep.subr.mxu0 %v7277_v0  ;;  %v4705_v57 = vld [vmem:[%s9655_s10 + $0x60] sm:$0xff] }
0x101f   :  { %7186 = vmatprep.subr.mxu1 %v7277_v0  ;;  %7207 = vmatpush3.msra.mxu0 %v5359_v60  ;;  %v4702_v60 = vld [vmem:[%s9655_s10 + $0x48] sm:$0xff] }
0x1020   :  { %7187 = vmatpush3.msra.mxu1 %v5343_v63  ;;  %7208 = vmatprep.subr.mxu0 %v7277_v0  ;;  %v4701_v63 = vld [vmem:[%s9655_s10 + $0x40] sm:$0xff] }
0x1021   :  { %7209 = vmatpush3.msra.mxu0 %v5358_v13  ;;  %7219 = vmatprep.subr.mxu1 %v7277_v0  ;;  %v4698_v13 = vld [vmem:[%s9655_s10 + $0x28] sm:$0xff] }
0x1022   :  { %7210 = vmatprep.subr.mxu0 %v7277_v0 }
0x1023   :  { %7211 = vmatpush3.msra.mxu0 %v5357_v14  ;;  %v4697_v14 = vld [vmem:[%s9655_s10 + $0x20] sm:$0xff] }
0x1024   :  { %7212 = vmatprep.subr.mxu0 %v7277_v0 }
0x1025   :  { %7213 = vmatpush3.msra.mxu0 %v5356_v15  ;;  %v4694_v15 = vld [vmem:[%s9655_s10 + $0x8] sm:$0xff] }
0x1026   :  { %7214 = vmatprep.subr.mxu0 %v7277_v0 }
0x1027   :  { %7215 = vmatpush3.msra.mxu0 %v5355_v16  ;;  %v4696_v16 = vld [vmem:[%s9655_s10 + $0x18] sm:$0xff] }
0x1028   :  { %7247 = vmatprep.subr.mxu0 %v7277_v0 }
0x10c9   :  { %v3969_v4 = vpop.f32.mrf.mxu1 }
0x10ca   :  { %v3973_v2 = vadd.f32 %v3969_v4, %v9187_v41  ;;  %v4700_v41 = vld [vmem:[%s9655_s10 + $0x38] sm:$0xff]  ;;  %v4693_v4 = vld [vmem:[%s9655_s10] sm:$0xff] }
0x10cb   :  { %v7134_v17 = vpop.f32.mrf.mxu1 }
0x10cc   :  { %v4927_v17 = vld [vmem:[%s9657_s12 + $0xf8] sm:$0xff] }
0x10cf   :  { %v4203_v18 = vpop.f32.mrf.mxu1  ;;  %v4127_v59 = vpop.f32.mrf.mxu0 }
0x10d0   :  { %v4131_v61 = vadd.f32 %v4127_v59, %v3973_v2  ;;  %7189 = vmatmul.mubr.msk.f32.vlgmr.msra.gmra.mxu1 %vm3353_vm4, %v4203_v18  ;;  %v4695_v2 = vld [vmem:[%s9655_s10 + $0x10] sm:$0xff]  ;;  %v4959_v18 = vld [vmem:[%s9657_s12 + $0x1f8] sm:$0xff] }
0x10d1   :  { %7220 = vmatpush3.msk.msra.mxu1 %vm3187_vm2, %v8920_v33  ;;  %v7171_v62 = vpop.f32.mrf.mxu1  ;;  %v7162_v11 = vpop.f32.mrf.mxu0  ;;  %7225 = vmatprep.mubr.msk.f32.mxu1 %vm7278_vm0, %v7277_v0  ;;  %v5374_v33 = vld [vmem:[%s9652_s7 + $0x238] sm:$0xff] }
0x10d2   :  { %7221 = vmatprep.subr.mxu1 %v7277_v0  ;;  %v4911_v59 = vld [vmem:[%s9657_s12 + $0x78] sm:$0xff]  ;;  %v4926_v11 = vld [vmem:[%s9657_s12 + $0xf0] sm:$0xff] }
0x10d3   :  { %7222 = vmatpush3.msra.mxu1 %v8922_v34  ;;  %v5373_v34 = vld [vmem:[%s9652_s7 + $0x230] sm:$0xff] }
0x10d4   :  { %7223 = vmatprep.subr.mxu1 %v7277_v0 }
0x10d5   :  { %7224 = vmatpush3.msra.mxu1 %v8927_v35  ;;  %v4361_v9 = vpop.f32.mrf.mxu0  ;;  %v5372_v35 = vld [vmem:[%s9652_s7 + $0x228] sm:$0xff] }
0x10d6   :  { %7226 = vmatmul.mubr.msk.f32.vlgmr.msra.gmra.mxu1 %vm3183_vm3, %v5364_v12  ;;  %7217 = vmatmul.mubr.msk.f32.vlgmr.msra.gmra.mxu0 %vm3353_vm4, %v4361_v9  ;;  %v4958_v12 = vld [vmem:[%s9657_s12 + $0x1f0] sm:$0xff] }
0x10d7   :  { %7228 = vmatprep.subr.mxu1 %v7277_v0  ;;  %v7199_v10 = vpop.f32.mrf.mxu0  ;;  %7244 = vmatprep.mubr.msk.f32.mxu1 %vm7278_vm0, %v7277_v0  ;;  %v4910_v9 = vld [vmem:[%s9657_s12 + $0x70] sm:$0xff] }
0x10d8   :  { %7229 = vmatpush3.msra.mxu1 %v5374_v33  ;;  %7249 = vmatprep.mubr.msk.f32.mxu0 %vm7278_vm0, %v7277_v0  ;;  %v4942_v33 = vld [vmem:[%s9657_s12 + $0x170] sm:$0xff]  ;;  %v4925_v10 = vld [vmem:[%s9657_s12 + $0xe8] sm:$0xff] }
0x10d9   :  { %7230 = vmatprep.subr.mxu1 %v7277_v0 }
0x10da   :  { %7231 = vmatpush3.msra.mxu1 %v5373_v34 }
0x10db   :  { %7232 = vmatprep.subr.mxu1 %v7277_v0 }
0x10dc   :  { %7233 = vmatpush3.msra.mxu1 %v5372_v35  ;;  %v4957_v35 = vld [vmem:[%s9657_s12 + $0x1e8] sm:$0xff] }
0x10dd   :  { %7234 = vmatprep.subr.mxu1 %v7277_v0 }
0x10de   :  { %7235 = vmatpush3.msra.mxu1 %v5371_v7  ;;  %v4909_v7 = vld [vmem:[%s9657_s12 + $0x68] sm:$0xff] }
0x10df   :  { %7236 = vmatprep.subr.mxu1 %v7277_v0 }
0x10e0   :  { %7237 = vmatpush3.msra.mxu1 %v5370_v8  ;;  %v4941_v8 = vld [vmem:[%s9657_s12 + $0x168] sm:$0xff] }
0x10e1   :  { %7238 = vmatprep.subr.mxu1 %v7277_v0 }
0x10e2   :  { %7239 = vmatpush3.msra.mxu1 %v5369_v5  ;;  %v4924_v5 = vld [vmem:[%s9657_s12 + $0xe0] sm:$0xff] }
0x10e3   :  { %7240 = vmatprep.subr.mxu1 %v7277_v0 }
0x10e4   :  { %7241 = vmatpush3.msra.mxu1 %v5368_v6  ;;  %v4956_v6 = vld [vmem:[%s9657_s12 + $0x1e0] sm:$0xff] }
0x10e5   :  { %7242 = vmatprep.subr.mxu1 %v7277_v0 }
0x10e6   :  { %7243 = vmatpush3.msra.mxu1 %v5367_v3  ;;  %v4908_v3 = vld [vmem:[%s9657_s12 + $0x60] sm:$0xff] }
0x10e7   :  { %4837 = vmatprep.subr.mxu1 %v4724_v26  ;;  %v4938_v26 = vld [vmem:[%s9657_s12 + $0x150] sm:$0xff] }
0x1190   :  { %v4285_v1 = vpop.f32.mrf.mxu1 }
0x1191   :  { %v4289_v19 = vadd.f32 %v4285_v1, %v4131_v61  ;;  %v4943_v61 = vld [vmem:[%s9657_s12 + $0x178] sm:$0xff]  ;;  %v4940_v1 = vld [vmem:[%s9657_s12 + $0x160] sm:$0xff] }
0x1192   :  { %v7190_v20 = vpop.f32.mrf.mxu1 }
0x1193   :  { %v4955_v20 = vld [vmem:[%s9657_s12 + $0x1d8] sm:$0xff] }
0x1196   :  { %v4519_v21 = vpop.f32.mrf.mxu1  ;;  %v4443_v22 = vpop.f32.mrf.mxu0 }
0x1197   :  { %v4447_v23 = vadd.f32 %v4443_v22, %v4289_v19  ;;  %7245 = vmatmul.mubr.msk.f32.vlgmr.msra.gmra.mxu1 %vm3353_vm4, %v4519_v21  ;;  %v4923_v19 = vld [vmem:[%s9657_s12 + $0xd8] sm:$0xff] }
0x1198   :  { %v7227_v24 = vpop.f32.mrf.mxu1  ;;  %v7218_v25 = vpop.f32.mrf.mxu0  ;;  %4885 = vmatprep.mubr.f32.mxu1 %v7277_v0  ;;  %4838 = vmatpush1.msra.mxu1 %v4723_v27  ;;  %v4907_v21 = vld [vmem:[%s9657_s12 + $0x58] sm:$0xff]  ;;  %v4921_v27 = vld [vmem:[%s9657_s12 + $0xc8] sm:$0xff] }
0x1199   :  { %4839 = vmatprep.subr.mxu1 %v4720_v28  ;;  %v4939_v22 = vld [vmem:[%s9657_s12 + $0x158] sm:$0xff]  ;;  %v4954_v24 = vld [vmem:[%s9657_s12 + $0x1d0] sm:$0xff]  ;;  %v4953_v28 = vld [vmem:[%s9657_s12 + $0x1c8] sm:$0xff] }
0x119a   :  { %4840 = vmatpush1.msra.mxu1 %v4719_v29  ;;  %v4906_v25 = vld [vmem:[%s9657_s12 + $0x50] sm:$0xff]  ;;  %v4905_v29 = vld [vmem:[%s9657_s12 + $0x48] sm:$0xff] }
0x119b   :  { %4841 = vmatprep.subr.mxu1 %v4716_v30  ;;  %v4937_v30 = vld [vmem:[%s9657_s12 + $0x148] sm:$0xff] }
0x119c   :  { %4842 = vmatpush1.msra.mxu1 %v4715_v31  ;;  %v4920_v31 = vld [vmem:[%s9657_s12 + $0xc0] sm:$0xff] }
0x119d   :  { %4843 = vmatprep.subr.mxu1 %v4712_v32  ;;  %v4952_v32 = vld [vmem:[%s9657_s12 + $0x1c0] sm:$0xff] }
0x119e   :  { %4844 = vmatpush1.msra.mxu1 %v4711_v36  ;;  %v4904_v36 = vld [vmem:[%s9657_s12 + $0x40] sm:$0xff] }
0x119f   :  { %4845 = vmatprep.subr.mxu1 %v4708_v37  ;;  %v4936_v37 = vld [vmem:[%s9657_s12 + $0x140] sm:$0xff] }
0x11a0   :  { %4846 = vmatpush1.msra.mxu1 %v4707_v38  ;;  %v4919_v38 = vld [vmem:[%s9657_s12 + $0xb8] sm:$0xff] }
0x11a1   :  { %4847 = vmatprep.subr.mxu1 %v4704_v39  ;;  %v4951_v39 = vld [vmem:[%s9657_s12 + $0x1b8] sm:$0xff] }
0x11a2   :  { %4848 = vmatpush1.msra.mxu1 %v4703_v40  ;;  %v4903_v40 = vld [vmem:[%s9657_s12 + $0x38] sm:$0xff] }
0x11a3   :  { %4849 = vmatprep.subr.mxu1 %v4700_v41  ;;  %v4935_v41 = vld [vmem:[%s9657_s12 + $0x138] sm:$0xff] }
0x11a4   :  { %4850 = vmatpush1.msra.mxu1 %v4699_v43  ;;  %v4918_v43 = vld [vmem:[%s9657_s12 + $0xb0] sm:$0xff] }
0x11a5   :  { %4851 = vmatprep.subr.mxu1 %v4696_v16  ;;  %v4929_v16 = vld [vmem:[%s9657_s12 + $0x108] sm:$0xff] }
0x11a6   :  { %4852 = vmatpush1.msra.mxu1 %v4695_v2  ;;  %v4896_v2 = vld [vmem:[%s9657_s12] sm:$0xff] }
0x11a7   :  { %6032 = vmatprep.subr.mxu1 %v4959_v18  ;;  %v4928_v18 = vld [vmem:[%s9657_s12 + $0x100] sm:$0xff] }
0x1257   :  { %v4601_v44 = vpop.f32.mrf.mxu1 }
0x1258   :  { %v4605_v47 = vadd.f32 %v4601_v44, %v4447_v23  ;;  %v4922_v23 = vld [vmem:[%s9657_s12 + $0xd0] sm:$0xff] }
0x1259   :  { %v7246_v49 = vpop.f32.mrf.mxu1  ;;  %v4950_v44 = vld [vmem:[%s9657_s12 + $0x1b0] sm:$0xff] }
0x125a   :  { %v4613_v50 = vadd.f32 %v5376_v46, %v4605_v47  ;;  %v4902_v46 = vld [vmem:[%s9657_s12 + $0x30] sm:$0xff]  ;;  %v4917_v49 = vld [vmem:[%s9657_s12 + $0xa8] sm:$0xff] }
0x125b   :  { %v4934_v47 = vld [vmem:[%s9657_s12 + $0x130] sm:$0xff] }
0x125c   :  { %v4614_v52 = vmax.f32 %v4613_v50, 0.0  ;;  %v4949_v50 = vld [vmem:[%s9657_s12 + $0x1a8] sm:$0xff] }
0x125e   :  { %7248 = vmatpush3.msk.msra.mxu0 %vm3187_vm2, %v4614_v52  ;;  %v4901_v52 = vld [vmem:[%s9657_s12 + $0x28] sm:$0xff] }
0x125f   :  { %7250 = vmatmul.mubr.msk.f32.vlgmr.msra.gmra.mxu0 %vm4616_vm5, %v4615_v53  ;;  %4766 = vmatprep.subr.mxu0 %v4722_v55  ;;  %v4933_v53 = vld [vmem:[%s9657_s12 + $0x128] sm:$0xff]  ;;  %v4916_v55 = vld [vmem:[%s9657_s12 + $0xa0] sm:$0xff] }
0x1260   :  { %4767 = vmatpush1.msra.mxu0 %v4721_v56  ;;  %4814 = vmatprep.mubr.f32.mxu0 %v7277_v0  ;;  %v4706_v0 = vld [vmem:[%s9655_s10 + $0x68] sm:$0xff]  ;;  %v4948_v56 = vld [vmem:[%s9657_s12 + $0x1a0] sm:$0xff] }
0x1261   :  { %4768 = vmatprep.subr.mxu0 %v4718_v58  ;;  %v4900_v58 = vld [vmem:[%s9657_s12 + $0x20] sm:$0xff] }
0x1262   :  { %4769 = vmatpush1.msra.mxu0 %v4717_v42  ;;  %v4932_v42 = vld [vmem:[%s9657_s12 + $0x120] sm:$0xff] }
0x1263   :  { %4770 = vmatprep.subr.mxu0 %v4714_v45  ;;  %v4915_v45 = vld [vmem:[%s9657_s12 + $0x98] sm:$0xff] }
0x1264   :  { %4771 = vmatpush1.msra.mxu0 %v4713_v48  ;;  %v4947_v48 = vld [vmem:[%s9657_s12 + $0x198] sm:$0xff] }
0x1265   :  { %4772 = vmatprep.subr.mxu0 %v4710_v51  ;;  %v4899_v51 = vld [vmem:[%s9657_s12 + $0x18] sm:$0xff] }
0x1266   :  { %4773 = vmatpush1.msra.mxu0 %v4709_v54  ;;  %v4931_v54 = vld [vmem:[%s9657_s12 + $0x118] sm:$0xff] }
0x1267   :  { %4774 = vmatprep.subr.mxu0 %v4706_v0  ;;  %v4914_v0 = vld [vmem:[%s9657_s12 + $0x90] sm:$0xff] }
0x1268   :  { %4775 = vmatpush1.msra.mxu0 %v4705_v57  ;;  %v4946_v57 = vld [vmem:[%s9657_s12 + $0x190] sm:$0xff] }
0x1269   :  { %4776 = vmatprep.subr.mxu0 %v4702_v60  ;;  %v4898_v60 = vld [vmem:[%s9657_s12 + $0x10] sm:$0xff] }
0x126a   :  { %4777 = vmatpush1.msra.mxu0 %v4701_v63  ;;  %v4930_v63 = vld [vmem:[%s9657_s12 + $0x110] sm:$0xff] }
0x126b   :  { %4778 = vmatprep.subr.mxu0 %v4698_v13  ;;  %v4913_v13 = vld [vmem:[%s9657_s12 + $0x88] sm:$0xff] }
0x126c   :  { %4779 = vmatpush1.msra.mxu0 %v4697_v14  ;;  %v4945_v14 = vld [vmem:[%s9657_s12 + $0x188] sm:$0xff] }
0x126d   :  { %4780 = vmatprep.subr.mxu0 %v4694_v15  ;;  %v4897_v15 = vld [vmem:[%s9657_s12 + $0x8] sm:$0xff] }
0x126e   :  { %4781 = vmatpush1.msra.mxu0 %v4693_v4  ;;  %v4912_v4 = vld [vmem:[%s9657_s12 + $0x80] sm:$0xff] }
0x126f   :  { %5997 = vmatprep.subr.mxu0 %v4927_v17  ;;  %v4944_v17 = vld [vmem:[%s9657_s12 + $0x180] sm:$0xff] }
0x131f   :  { %v4689_v62 = vpop.f32.mrf.mxu0 }
0x1320   :  { %5379 = vmatmul.mubr.msk.f32.vlgmr.msra.gmra.mxu0 %vm3353_vm4, %v4689_v62  ;;  %5380 = vmatmul.mubr.msk.f32.vlgmr.msra.gmra.mxu1 %vm3353_vm4, %v4689_v62 }
0x1321   :  { %v7251_v34 = vpop.f32.mrf.mxu0  ;;  %5998 = vmatpush3.msra.mxu0 %v4911_v59  ;;  %6033 = vmatpush3.msra.mxu1 %v4943_v61  ;;  %v4727_v59 = vlaneseq }
0x1322   :  { %5999 = vmatprep.subr.mxu0 %v4926_v11  ;;  %6034 = vmatprep.subr.mxu1 %v4958_v12  ;;  %v4725_v12 = vld [vmem:[%s9656_s11] sm:$0xf] }
0x1323   :  { %6000 = vmatpush3.msra.mxu0 %v4910_v9  ;;  %6035 = vmatpush3.msra.mxu1 %v4942_v33  ;;  %v4728_v61 = vshrl.u32 %v4727_v59, 7 }
0x1324   :  { %6001 = vmatprep.subr.mxu0 %v4925_v10  ;;  %6036 = vmatprep.subr.mxu1 %v4957_v35 }
0x1325   :  { %6002 = vmatpush3.msra.mxu0 %v4909_v7  ;;  %6037 = vmatpush3.msra.mxu1 %v4941_v8  ;;  %v4729_v62 = vsub.s32 0, %v4728_v61  ;;  %v4737_v11 = vsub.s32 2, %v4728_v61  ;;  %v4733_v9 = vsub.s32 1, %v4728_v61  ;;  %v4741_v33 = vsub.s32 3, %v4728_v61 }
0x1326   :  { %6003 = vmatprep.subr.mxu0 %v4924_v5  ;;  %6038 = vmatprep.subr.mxu1 %v4956_v6 }
0x1327   :  { %6004 = vmatpush3.msra.mxu0 %v4908_v3  ;;  %6039 = vmatpush3.msra.mxu1 %v4940_v1  ;;  %v4730_v34 = vrot.slane %v4725_v12, %v4729_v62  ;;  %v4738_v10 = vrot.slane %v4725_v12, %v4737_v11  ;;  %v4734_v35 = vrot.slane %v4725_v12, %v4733_v9 }
0x1328   :  { %6005 = vmatprep.subr.mxu0 %v4923_v19  ;;  %6040 = vmatprep.subr.mxu1 %v4955_v20  ;;  %v4742_v7 = vrot.slane %v4725_v12, %v4741_v33 }
0x1329   :  { %6006 = vmatpush3.msra.mxu0 %v4907_v21  ;;  %6041 = vmatpush3.msra.mxu1 %v4939_v22 }
0x132a   :  { %6007 = vmatprep.subr.mxu0 %v4922_v23  ;;  %6042 = vmatprep.subr.mxu1 %v4954_v24 }
0x132b   :  { %6008 = vmatpush3.msra.mxu0 %v4906_v25  ;;  %6043 = vmatpush3.msra.mxu1 %v4938_v26 }
0x132c   :  { %6009 = vmatprep.subr.mxu0 %v4921_v27  ;;  %6044 = vmatprep.subr.mxu1 %v4953_v28  ;;  %v5381_v28 = vld [vmem:[%s9658_s13] ss:$0 sm:$0xff] }
0x132d   :  { %6010 = vmatpush3.msra.mxu0 %v4905_v29  ;;  %6045 = vmatpush3.msra.mxu1 %v4937_v30 }
0x132e   :  { %6011 = vmatprep.subr.mxu0 %v4920_v31  ;;  %6046 = vmatprep.subr.mxu1 %v4952_v32 }
0x132f   :  { %6012 = vmatpush3.msra.mxu0 %v4904_v36  ;;  %6047 = vmatpush3.msra.mxu1 %v4936_v37 }
0x1330   :  { %6013 = vmatprep.subr.mxu0 %v4919_v38  ;;  %6048 = vmatprep.subr.mxu1 %v4951_v39 }
0x1331   :  { %6014 = vmatpush3.msra.mxu0 %v4903_v40  ;;  %6049 = vmatpush3.msra.mxu1 %v4935_v41 }
0x1332   :  { %6015 = vmatprep.subr.mxu0 %v4918_v43  ;;  %6050 = vmatprep.subr.mxu1 %v4950_v44 }
0x1333   :  { %6016 = vmatpush3.msra.mxu0 %v4902_v46  ;;  %6051 = vmatpush3.msra.mxu1 %v4934_v47 }
0x1334   :  { %6017 = vmatprep.subr.mxu0 %v4917_v49  ;;  %6052 = vmatprep.subr.mxu1 %v4949_v50 }
0x1335   :  { %6018 = vmatpush3.msra.mxu0 %v4901_v52  ;;  %6053 = vmatpush3.msra.mxu1 %v4933_v53 }
0x1336   :  { %6019 = vmatprep.subr.mxu0 %v4916_v55  ;;  %6054 = vmatprep.subr.mxu1 %v4948_v56 }
0x1337   :  { %6020 = vmatpush3.msra.mxu0 %v4900_v58  ;;  %6055 = vmatpush3.msra.mxu1 %v4932_v42 }
0x1338   :  { %6021 = vmatprep.subr.mxu0 %v4915_v45  ;;  %6056 = vmatprep.subr.mxu1 %v4947_v48 }
0x1339   :  { %6022 = vmatpush3.msra.mxu0 %v4899_v51  ;;  %6057 = vmatpush3.msra.mxu1 %v4931_v54 }
0x133a   :  { %6023 = vmatprep.subr.mxu0 %v4914_v0  ;;  %6058 = vmatprep.subr.mxu1 %v4946_v57 }
0x133b   :  { %6024 = vmatpush3.msra.mxu0 %v4898_v60  ;;  %6059 = vmatpush3.msra.mxu1 %v4930_v63 }
0x133c   :  { %6025 = vmatprep.subr.mxu0 %v4913_v13  ;;  %6060 = vmatprep.subr.mxu1 %v4945_v14 }
0x133d   :  { %6026 = vmatpush3.msra.mxu0 %v4897_v15  ;;  %6061 = vmatpush3.msra.mxu1 %v4929_v16 }
0x133e   :  { %6027 = vmatprep.subr.mxu0 %v4912_v4  ;;  %6062 = vmatprep.subr.mxu1 %v4944_v17 }
0x133f   :  { %6028 = vmatpush3.msra.mxu0 %v4896_v2  ;;  %6063 = vmatpush3.msra.mxu1 %v4928_v18 }
0x13e0   :  { %v4816_v8 = vpop.f32.mrf.mxu0  ;;  %v4887_v5 = vpop.f32.mrf.mxu1 }
0x13e1   :  { %v4817_v6 = vadd.f32 %v4816_v8, %v4730_v34  ;;  %v4888_v3 = vadd.f32 %v4887_v5, %v4738_v10 }
0x13e2   :  { %v4818_v1 = vpop.f32.mrf.mxu0  ;;  %v4889_v19 = vpop.f32.mrf.mxu1 }
0x13e3   :  { %v4819_v20 = vadd.f32 %v4818_v1, %v4734_v35  ;;  %v4890_v21 = vadd.f32 %v4889_v19, %v4742_v7  ;;  %v4892_v24 = vmax.f32 %v4817_v6, 0.0  ;;  %v4894_v25 = vmax.f32 %v4888_v3, 0.0 }
0x13e5   :  { %v4893_v22 = vmax.f32 %v4819_v20, 0.0  ;;  %v4895_v23 = vmax.f32 %v4890_v21, 0.0 }
0x13e7   :  { %5031 = vmatprep.mubr.f32.mxu0 %v4893_v22  ;;  %5101 = vmatprep.mubr.f32.mxu1 %v4895_v23 }
0x13e8   :  { %5032 = vmatmul.mubr.f32.vlgmr.msra.gmra.mxu0 %v4892_v24  ;;  %5102 = vmatmul.mubr.f32.vlgmr.msra.gmra.mxu1 %v4894_v25 }
0x14a8   :  { %v6029_v26 = vpop.f32.mrf.mxu0  ;;  %v6064_v27 = vpop.f32.mrf.mxu1 }
0x14aa   :  { %v6030_v29 = vpop.f32.mrf.mxu0  ;;  %v6065_v30 = vpop.f32.mrf.mxu1 }
0x14ab   :  { %v6031_v31 = vadd.f32 %v6030_v29, %v6029_v26  ;;  %v6066_v36 = vadd.f32 %v6065_v30, %v6064_v27 }
0x14ad   :  { %v5034_v32 = vadd.f32 %v6031_v31, %v5381_v28 }
0x14af   :  { %v5104_v37 = vadd.f32 %v6066_v36, %v5034_v32 }
0x14b1   :  { %5107 = vst [vmem:[#allocation2] sm:$0x3] %v5104_v37 }
0x14b2   :  { %7266 = shalt.err (!%p7263_p4)
}
0x14b3   :  { %5117 = dma.vmem_to_hbm [thread:$0]  %s5115_s3, 32, %s9659_s14, [#allocation3]  }
0x14b4   :  { %7275 = dma.done.wait [#allocation3], 32  }
0x14b5   :  { %7276 = vsyncadd [#allocation3], 4294967264 }
0x14b6   :  { %5121 = vsyncpa [#allocation3], 1 }

</bundles_post_ra>
